<compile_context>
chip_gen: v7x
topology: tpu7x:2x2x1
jax: 0.10.0
libtpu: 0.0.40
codegen_flags: <defaults>
</compile_context>

<pallas_src>
import functools
import math

import jax
import jax.numpy as jnp
import numpy as np
from jax.experimental import pallas as pl
from jax.experimental.pallas import tpu as pltpu

_LANE = 128
_SUBLANE = 16                     # min second-minor tile for bf16 (ok for f32)
_VMEM_LIMIT_BYTES = 48 * 1024 * 1024


def _round_up(n, m):
    return ((n + m - 1) // m) * m


def _pad2(a, rows, cols):
    return jnp.pad(a, ((0, rows - a.shape[0]), (0, cols - a.shape[1])))


def _gelu_tanh(x):
    # nn.GELU(approximate='tanh'), evaluated in the dtype of x (bf16 on the
    # default path -> bf16 VPU/EUP on v6e/v7x, auto-extended on v5e).
    c = math.sqrt(2.0 / math.pi)
    return 0.5 * x * (1.0 + jnp.tanh(c * (x + 0.044715 * x * x * x)))


# ---------------------------------------------------------------------------
# Non-Pallas pieces of the module (preprocessing + sparse scatter pooling).
# ---------------------------------------------------------------------------

def scale_tensor(dat, inp_scale=None, tgt_scale=None):
    if inp_scale is None:
        inp_scale = (-0.5, 0.5)
    if tgt_scale is None:
        tgt_scale = (0.0, 1.0)
    assert tgt_scale[1] > tgt_scale[0] and inp_scale[1] > inp_scale[0]
    dat = (dat - inp_scale[0]) / (inp_scale[1] - inp_scale[0])
    dat = dat * (tgt_scale[1] - tgt_scale[0]) + tgt_scale[0]
    return jnp.clip(dat, tgt_scale[0] + 1e-6, tgt_scale[1] - 1e-6)


def coordinate2sparseindex(coord_int, sparse_coords, res):
    # TODO(synk): per-batch searchsorted over ragged sparse-coordinate lists is
    # host-side integer preprocessing (mirrors the @torch.no_grad block); no
    # Pallas equivalent.  NOTE: like torch, points whose voxel is absent from
    # sparse_coords are silently mapped to a neighbouring sparse index.
    B, Np, _ = coord_int.shape
    pt_idx = (coord_int[..., 0] * res + coord_int[..., 1]) * res + coord_int[..., 2]
    sc = sparse_coords.astype(np.int64)
    flat = (sc[:, 1] * res + sc[:, 2]) * res + sc[:, 3]
    out = np.zeros((B, Np), dtype=np.int32)
    for i in range(B):
        coords_i = flat[sc[:, 0] == i]
        out[i] = np.searchsorted(coords_i, pt_idx[i])
    return out


def _scatter_mean(feats, idx, num_segments):
    # feats: [Np, C], idx: [Np]  ->  [num_segments, C]
    sums = jax.ops.segment_sum(feats, idx, num_segments=num_segments)
    cnts = jax.ops.segment_sum(jnp.ones((feats.shape[0],), feats.dtype), idx,
                               num_segments=num_segments)
    return sums / jnp.maximum(cnts, 1.0)[:, None]


def pool_sparse_local(index, c, max_coord_num):
    # Reference-path pooling (per-batch scatter-mean + gather).
    def one(idx, feat):
        mean = _scatter_mean(feat, idx, max_coord_num)
        return mean[idx]
    return jax.vmap(one)(index, c)


def generate_sparse_grid_features(index, c, max_coord_num):
    return jax.vmap(lambda idx, feat: _scatter_mean(feat, idx, max_coord_num))(index, c)


@functools.partial(jax.jit, static_argnames=("num_segments",))
def _flat_pool_gather(flat_idx, feats, num_segments):
    # TODO(synk): the gather half could be fused into the mid/tail kernels
    # (VMEM-resident mean table + in-kernel row gather) when
    # num_segments * hp fits VMEM; the scatter-mean itself is data-dependent
    # and stays in XLA segment_sum.
    sums = jax.ops.segment_sum(feats.astype(jnp.float32), flat_idx,
                               num_segments=num_segments)
    cnts = jax.ops.segment_sum(jnp.ones((feats.shape[0],), jnp.float32), flat_idx,
                               num_segments=num_segments)
    mean = (sums / jnp.maximum(cnts, 1.0)[:, None]).astype(feats.dtype)
    return mean[flat_idx]


def _preprocess(p, sparse_coords, res, bbox_size):
    B, Np, D = p.shape
    sc_np = np.asarray(sparse_coords)
    counts = [int((sc_np[:, 0] == i).sum()) for i in range(B)]
    max_coord_num = max(counts) + 5
    if D == 6:
        pxyz, normals = p[..., :3], p[..., 3:]
    else:
        pxyz, normals = p, None
    coord = scale_tensor(pxyz, inp_scale=bbox_size) * res
    p_off = 2.0 * (coord - (jnp.floor(coord) + 0.5))
    index = jnp.asarray(
        coordinate2sparseindex(np.asarray(coord).astype(np.int64), sc_np, res))
    p_feat = p_off if normals is None else jnp.concatenate([p_off, normals], axis=-1)
    return p_feat, index, counts, max_coord_num


# ---------------------------------------------------------------------------
# Pallas kernels.
# ---------------------------------------------------------------------------

def _resblock_compute(x, w0, b0, ws, w1, b1):
    """ResnetBlockFC on x (tm, 2*hp) with zero-padded lanes.  Returns f32.

    Single K=2*hp contractions (full MXU depth on v6e/v7x); dot operands stay
    in the parameter dtype (bf16), accumulation is f32.
    """
    dt = w0.dtype
    net = jnp.dot(_gelu_tanh(x), w0, preferred_element_type=jnp.float32) + b0
    dx = (jnp.dot(_gelu_tanh(net).astype(dt), w1,
                  preferred_element_type=jnp.float32) + b1)
    xs = jnp.dot(x, ws, preferred_element_type=jnp.float32)
    return xs + dx


def _head_kernel(p_ref, wpos_ref, bpos_ref, w0_ref, b0_ref, ws_ref, w1_ref,
                 b1_ref, o_ref):
    """fc_pos (narrow K=in_ch dot, f32) followed by blocks[0], one M-tile."""
    dt = w0_ref.dtype
    t = (jnp.dot(p_ref[...], wpos_ref[...], preferred_element_type=jnp.float32)
         + bpos_ref[...])                                     # (tm, 2*hp) f32
    y = _resblock_compute(t.astype(dt), w0_ref[...], b0_ref[...],
                          ws_ref[...], w1_ref[...], b1_ref[...])
    o_ref[...] = y.astype(o_ref.dtype)


def _mid_kernel(net_ref, pooled_ref, w0_ref, b0_ref, ws_ref, w1_ref, b1_ref,
                o_ref):
    """ResnetBlockFC on concat([net, pooled]) (lane-adjacent concat in-kernel)."""
    x = jnp.concatenate([net_ref[...], pooled_ref[...]], axis=-1)
    y = _resblock_compute(x, w0_ref[...], b0_ref[...],
                          ws_ref[...], w1_ref[...], b1_ref[...])
    o_ref[...] = y.astype(o_ref.dtype)


def _tail_kernel(net_ref, pooled_ref, w0_ref, b0_ref, ws_ref, w1_ref, b1_ref,
                 wc_ref, bc_ref, o_ref):
    """Last ResnetBlockFC fused with the final fc_c projection."""
    x = jnp.concatenate([net_ref[...], pooled_ref[...]], axis=-1)
    y = _resblock_compute(x, w0_ref[...], b0_ref[...],
                          ws_ref[...], w1_ref[...], b1_ref[...])
    c = (jnp.dot(y.astype(wc_ref.dtype), wc_ref[...],
                 preferred_element_type=jnp.float32) + bc_ref[...])
    o_ref[...] = c.astype(o_ref.dtype)


def _row_spec(tm, width):
    return pl.BlockSpec((tm, width), lambda i: (i, 0))


def _full_spec(arr):
    # Constant block index -> Pallas fetches each weight once and keeps it
    # VMEM-resident across the grid.
    shape = arr.shape
    return pl.BlockSpec(shape, lambda i: (0,) * len(shape))


def _compiler_params():
    return pltpu.CompilerParams(dimension_semantics=("parallel",),
                                vmem_limit_bytes=_VMEM_LIMIT_BYTES)


@functools.partial(jax.jit, static_argnames=("tm",))
def _head_stage(x, wpos, bpos, w0, b0, ws, w1, b1, *, tm):
    mp, ip = x.shape
    hp = w1.shape[0]
    weights = (wpos, bpos, w0, b0, ws, w1, b1)
    return pl.pallas_call(
        _head_kernel,
        out_shape=jax.ShapeDtypeStruct((mp, hp), w0.dtype),
        grid_spec=pl.GridSpec(
            grid=(mp // tm,),
            in_specs=[_row_spec(tm, ip)] + [_full_spec(w) for w in weights],
            out_specs=_row_spec(tm, hp)),
        compiler_params=_compiler_params(),
    )(x, *weights)


@functools.partial(jax.jit, static_argnames=("tm",))
def _mid_stage(net, pooled, w0, b0, ws, w1, b1, *, tm):
    mp, hp = net.shape
    weights = (w0, b0, ws, w1, b1)
    return pl.pallas_call(
        _mid_kernel,
        out_shape=jax.ShapeDtypeStruct((mp, hp), net.dtype),
        grid_spec=pl.GridSpec(
            grid=(mp // tm,),
            in_specs=[_row_spec(tm, hp), _row_spec(tm, hp)]
                     + [_full_spec(w) for w in weights],
            out_specs=_row_spec(tm, hp)),
        compiler_params=_compiler_params(),
    )(net, pooled, *weights)


@functools.partial(jax.jit, static_argnames=("tm",))
def _tail_stage(net, pooled, w0, b0, ws, w1, b1, wc, bc, *, tm):
    mp, hp = net.shape
    op = wc.shape[1]
    weights = (w0, b0, ws, w1, b1, wc, bc)
    return pl.pallas_call(
        _tail_kernel,
        out_shape=jax.ShapeDtypeStruct((mp, op), net.dtype),
        grid_spec=pl.GridSpec(
            grid=(mp // tm,),
            in_specs=[_row_spec(tm, hp), _row_spec(tm, hp)]
                     + [_full_spec(w) for w in weights],
            out_specs=_row_spec(tm, op)),
        compiler_params=_compiler_params(),
    )(net, pooled, *weights)


# ---------------------------------------------------------------------------
# Tiling, parameters (PyTorch-equivalent init) and lane-padding.
# ---------------------------------------------------------------------------

def _choose_tiling(m, tm_req):
    """Pick the M-tile: a multiple of 16 (bf16 sublane tile), no bigger than
    needed for >= 2 tiles, and pad M so the tile count is even (keeps v7x's
    two TensorCores balanced via the 'parallel' grid axis)."""
    half = _round_up(max((m + 1) // 2, _SUBLANE), _SUBLANE)
    tm = max(_SUBLANE, min(_round_up(tm_req, _SUBLANE), half))
    mp = _round_up(m, 2 * tm)
    return tm, mp


def _xavier_uniform(key, fan_out, fan_in, dtype=jnp.float32):
    bound = math.sqrt(6.0 / (fan_in + fan_out))
    return jax.random.uniform(key, (fan_out, fan_in), dtype=dtype,
                              minval=-bound, maxval=bound)


def init_local_pool_pointnet(key, in_channels=3, hidden_dim=128,
                             out_channels=128, n_blocks=5, dtype=jnp.float32):
    """Master weights (f32) stored transposed ([in, out]) so kernels do x@W+b."""
    keys = jax.random.split(key, 2 + 3 * n_blocks)
    params = {
        "in_channels": in_channels, "hidden_dim": hidden_dim,
        "out_channels": out_channels, "n_blocks": n_blocks,
        "wpos": _xavier_uniform(keys[0], 2 * hidden_dim, in_channels, dtype).T,
        "bpos": jnp.zeros((2 * hidden_dim,), dtype),
        "wc": _xavier_uniform(keys[1], out_channels, hidden_dim, dtype).T,
        "bc": jnp.zeros((out_channels,), dtype),
        "blocks": [],
    }
    k = 2
    for _ in range(n_blocks):
        size_in, size_out = 2 * hidden_dim, hidden_dim
        size_h = min(size_in, size_out)
        params["blocks"].append({
            "w0": _xavier_uniform(keys[k], size_h, size_in, dtype).T,       # [2h, h]
            "b0": jnp.zeros((size_h,), dtype),
            "w1": _xavier_uniform(keys[k + 1], size_out, size_h, dtype).T,  # [h, h]
            "b1": jnp.zeros((size_out,), dtype),
            "ws": _xavier_uniform(keys[k + 2], size_out, size_in, dtype).T,  # [2h, h]
        })
        k += 3
    return params


def _pack_padded_params(params, compute_dtype=jnp.bfloat16):
    """Zero-pad all hidden/output feature dims to multiples of 128 (lane-dense
    stores, full MXU tiles) and cast block/head weights to the compute dtype.
    The block-input axis (2*hidden) is laid out as [pad(first half) |
    pad(second half)] so the kernels' concat([net, pooled]) matches the weight
    row layout.  The fc_pos weight stays f32 (tiny, narrow K=in_ch dot)."""
    hidden = params["hidden_dim"]
    in_ch = params["in_channels"]
    out_ch = params["out_channels"]
    hp = _round_up(hidden, _LANE)
    op = _round_up(out_ch, _LANE)
    ip8 = _round_up(in_ch, 8)       # keep the head input narrow (no 128 pad)

    wpos, bpos = params["wpos"], params["bpos"]
    wpos_p = jnp.concatenate([_pad2(wpos[:, :hidden], ip8, hp),
                              _pad2(wpos[:, hidden:], ip8, hp)],
                             axis=1).astype(jnp.float32)
    bpos_p = jnp.concatenate([_pad2(bpos[None, :hidden], 1, hp),
                              _pad2(bpos[None, hidden:], 1, hp)],
                             axis=1).astype(jnp.float32)

    blocks_p = []
    for blk in params["blocks"]:
        w0 = jnp.concatenate([_pad2(blk["w0"][:hidden], hp, hp),
                              _pad2(blk["w0"][hidden:], hp, hp)], axis=0)
        ws = jnp.concatenate([_pad2(blk["ws"][:hidden], hp, hp),
                              _pad2(blk["ws"][hidden:], hp, hp)], axis=0)
        blocks_p.append(dict(
            w0=w0.astype(compute_dtype),
            b0=_pad2(blk["b0"][None, :], 1, hp).astype(compute_dtype),
            ws=ws.astype(compute_dtype),
            w1=_pad2(blk["w1"], hp, hp).astype(compute_dtype),
            b1=_pad2(blk["b1"][None, :], 1, hp).astype(compute_dtype)))

    return dict(wpos=wpos_p, bpos=bpos_p, blocks=blocks_p,
                wc=_pad2(params["wc"], hp, op).astype(compute_dtype),
                bc=_pad2(params["bc"][None, :], 1, op).astype(compute_dtype),
                hp=hp, op=op, ip=ip8)


# ---------------------------------------------------------------------------
# Full forward (Pallas path) and pure-JAX reference.
# ---------------------------------------------------------------------------

def local_pool_pointnet_forward(params, p, sparse_coords, res=64,
                                bbox_size=(-0.5, 0.5), *, tm=2048,
                                compute_dtype=jnp.bfloat16):
    B, Np, _ = p.shape
    n_blocks = params["n_blocks"]
    out_ch = params["out_channels"]
    assert n_blocks >= 2, "kernel path expects >= 2 ResNet blocks (torch default is 5)"

    p_feat, index, counts, max_coord_num = _preprocess(p, sparse_coords, res, bbox_size)
    in_ch = p_feat.shape[-1]
    assert in_ch == params["in_channels"]

    pk = _pack_padded_params(params, compute_dtype)
    hp, op, ip8 = pk["hp"], pk["op"], pk["ip"]

    # M tiling: even tile count, tm a multiple of 16, zero padding of M.
    M = B * Np
    tm, Mp = _choose_tiling(M, tm)

    # Narrow head input: only round in_ch up to the 8-sublane multiple.
    x = jnp.pad(p_feat.reshape(M, in_ch).astype(jnp.float32),
                ((0, Mp - M), (0, ip8 - in_ch)))

    # Flat voxel segments (per-batch offset); padded rows -> dummy trailing
    # segment, so the scatter-mean / gather work on (Mp, hp) directly with no
    # per-block pad/slice copies.
    seg = (index.astype(jnp.int32)
           + jnp.arange(B, dtype=jnp.int32)[:, None] * max_coord_num).reshape(M)
    dummy = B * max_coord_num
    flat_idx = jnp.pad(seg, (0, Mp - M), constant_values=dummy)
    num_segments = dummy + 1

    b0p = pk["blocks"][0]
    net = _head_stage(x, pk["wpos"], pk["bpos"],
                      b0p["w0"], b0p["b0"], b0p["ws"], b0p["w1"], b0p["b1"],
                      tm=tm)

    for bi in range(1, n_blocks):
        pooled = _flat_pool_gather(flat_idx, net, num_segments)    # (Mp, hp)
        bp = pk["blocks"][bi]
        if bi < n_blocks - 1:
            net = _mid_stage(net, pooled, bp["w0"], bp["b0"], bp["ws"],
                             bp["w1"], bp["b1"], tm=tm)
        else:
            net = _tail_stage(net, pooled, bp["w0"], bp["b0"], bp["ws"],
                              bp["w1"], bp["b1"], pk["wc"], pk["bc"], tm=tm)

    # Final per-voxel scatter mean (f32 accumulation), then ragged extraction.
    sums = jax.ops.segment_sum(net.astype(jnp.float32), flat_idx,
                               num_segments=num_segments)
    cnts = jax.ops.segment_sum(jnp.ones((Mp,), jnp.float32), flat_idx,
                               num_segments=num_segments)
    table = sums / jnp.maximum(cnts, 1.0)[:, None]
    grid_feats = table[:dummy].reshape(B, max_coord_num, op)
    feats = jnp.concatenate([grid_feats[i, :counts[i], :out_ch] for i in range(B)],
                            axis=0)
    return feats


def local_pool_pointnet_reference(params, p, sparse_coords, res=64,
                                  bbox_size=(-0.5, 0.5)):
    """Pure-JAX (unpadded, full-precision) reference of the PyTorch forward."""
    B, Np, _ = p.shape
    p_feat, index, counts, max_coord_num = _preprocess(p, sparse_coords, res, bbox_size)
    hi = jax.lax.Precision.HIGHEST

    def lin(x, w, b=None):
        y = jnp.dot(x, w, precision=hi)
        return y if b is None else y + b

    def block(x, blk):
        net = lin(_gelu_tanh(x), blk["w0"], blk["b0"])
        dx = lin(_gelu_tanh(net), blk["w1"], blk["b1"])
        return lin(x, blk["ws"]) + dx

    net = lin(p_feat, params["wpos"], params["bpos"])
    net = block(net, params["blocks"][0])
    for blk in params["blocks"][1:]:
        pooled = pool_sparse_local(index, net, max_coord_num)
        net = block(jnp.concatenate([net, pooled], axis=-1), blk)
    c = lin(net, params["wc"], params["bc"])
    grid_feats = generate_sparse_grid_features(index, c, max_coord_num)
    return jnp.concatenate([grid_feats[i, :counts[i]] for i in range(B)], axis=0)


# ---------------------------------------------------------------------------
# Demo / self-check.
# ---------------------------------------------------------------------------

if __name__ == "__main__":
    B, Np = 2, 512
    in_channels, hidden_dim, out_channels, n_blocks = 3, 32, 32, 3
    res = 16

    key = jax.random.PRNGKey(0)
    kp, kw = jax.random.split(key)
    p = jax.random.uniform(kp, (B, Np, in_channels), jnp.float32,
                           minval=-0.5, maxval=0.5)

    # Sparse voxel coords built from the points themselves (sorted per batch,
    # as the module's searchsorted requires).
    coord_np = np.asarray(scale_tensor(p) * res).astype(np.int64)
    rows = []
    for i in range(B):
        flat = np.unique((coord_np[i, :, 0] * res + coord_np[i, :, 1]) * res
                         + coord_np[i, :, 2])
        rows.append(np.stack([np.full_like(flat, i), flat // (res * res),
                              (flat // res) % res, flat % res], axis=1))
    sparse_coords = np.concatenate(rows, axis=0).astype(np.int32)

    params = init_local_pool_pointnet(kw, in_channels, hidden_dim,
                                      out_channels, n_blocks)

    # Default production path: bf16 weights + bf16 inter-stage activations.
    out = jax.block_until_ready(
        local_pool_pointnet_forward(params, p, sparse_coords, res=res))
    ref = jax.block_until_ready(
        local_pool_pointnet_reference(params, p, sparse_coords, res=res))

    assert out.shape == (sparse_coords.shape[0], out_channels), out.shape
    out32 = out.astype(jnp.float32)
    max_err = float(jnp.max(jnp.abs(out32 - ref)))
    # Tolerance sized for end-to-end bf16 rounding vs. the f32 HIGHEST-precision
    # reference (signal magnitude is O(0.1-0.5); a wrong kernel errs by ~1).
    assert jnp.allclose(out32, ref, atol=8e-2, rtol=8e-2), max_err

    print("KERNEL_OK")
</pallas_src>

<mosaic_0001>
module attributes {stable_mosaic.version = 11 : i64} {
  func.func @_head_kernel(%arg0: i32, %arg1: memref<512x8xf32, #tpu.memory_space<vmem>>, %arg2: memref<8x256xf32, #tpu.memory_space<vmem>>, %arg3: memref<1x256xf32, #tpu.memory_space<vmem>>, %arg4: memref<256x128xbf16, #tpu.memory_space<vmem>>, %arg5: memref<1x128xbf16, #tpu.memory_space<vmem>>, %arg6: memref<256x128xbf16, #tpu.memory_space<vmem>>, %arg7: memref<128x128xbf16, #tpu.memory_space<vmem>>, %arg8: memref<1x128xbf16, #tpu.memory_space<vmem>>, %arg9: memref<512x128xbf16, #tpu.memory_space<vmem>>) attributes {dimension_semantics = [#tpu.dimension_semantics<parallel>], iteration_bounds = array<i64: 2>, scalar_prefetch = 0 : i64, scratch_operands = 0 : i64, tpu.core_type = #tpu.core_type<tc>, window_params = [{transform_indices = @transform_0, window_bounds = array<i64: 512, 8>}, {pipeline_mode = #tpu.pipeline_mode<synchronous>, transform_indices = @transform_1, window_bounds = array<i64: 8, 256>}, {pipeline_mode = #tpu.pipeline_mode<synchronous>, transform_indices = @transform_2, window_bounds = array<i64: 1, 256>}, {pipeline_mode = #tpu.pipeline_mode<synchronous>, transform_indices = @transform_3, window_bounds = array<i64: 256, 128>}, {pipeline_mode = #tpu.pipeline_mode<synchronous>, transform_indices = @transform_4, window_bounds = array<i64: 1, 128>}, {pipeline_mode = #tpu.pipeline_mode<synchronous>, transform_indices = @transform_5, window_bounds = array<i64: 256, 128>}, {pipeline_mode = #tpu.pipeline_mode<synchronous>, transform_indices = @transform_6, window_bounds = array<i64: 128, 128>}, {pipeline_mode = #tpu.pipeline_mode<synchronous>, transform_indices = @transform_7, window_bounds = array<i64: 1, 128>}, {transform_indices = @transform_8, window_bounds = array<i64: 512, 128>}]} {
    %c0 = arith.constant 0 : index
    %c0_0 = arith.constant 0 : index
    %0 = vector.load %arg1[%c0, %c0_0] : memref<512x8xf32, #tpu.memory_space<vmem>>, vector<512x8xf32>
    %c0_1 = arith.constant 0 : index
    %c0_2 = arith.constant 0 : index
    %1 = vector.load %arg2[%c0_1, %c0_2] : memref<8x256xf32, #tpu.memory_space<vmem>>, vector<8x256xf32>
    %cst = arith.constant dense<0.000000e+00> : vector<512x256xf32>
    %2 = tpu.matmul %0, %1, %cst {dimension_numbers = #tpu.dot_dimension_numbers<[1], [0], [0], [1], [0, 0, 1, 1], [], []>} : vector<512x8xf32>, vector<8x256xf32>, vector<512x256xf32> -> vector<512x256xf32>
    %c0_3 = arith.constant 0 : index
    %c0_4 = arith.constant 0 : index
    %3 = vector.load %arg3[%c0_3, %c0_4] : memref<1x256xf32, #tpu.memory_space<vmem>>, vector<1x256xf32>
    %4 = vector.broadcast %3 : vector<1x256xf32> to vector<512x256xf32>
    %5 = arith.addf %2, %4 : vector<512x256xf32>
    %6 = arith.truncf %5 : vector<512x256xf32> to vector<512x256xbf16>
    %c0_5 = arith.constant 0 : index
    %c0_6 = arith.constant 0 : index
    %7 = vector.load %arg4[%c0_5, %c0_6] : memref<256x128xbf16, #tpu.memory_space<vmem>>, vector<256x128xbf16>
    %c0_7 = arith.constant 0 : index
    %c0_8 = arith.constant 0 : index
    %8 = vector.load %arg5[%c0_7, %c0_8] : memref<1x128xbf16, #tpu.memory_space<vmem>>, vector<1x128xbf16>
    %c0_9 = arith.constant 0 : index
    %c0_10 = arith.constant 0 : index
    %9 = vector.load %arg6[%c0_9, %c0_10] : memref<256x128xbf16, #tpu.memory_space<vmem>>, vector<256x128xbf16>
    %c0_11 = arith.constant 0 : index
    %c0_12 = arith.constant 0 : index
    %10 = vector.load %arg7[%c0_11, %c0_12] : memref<128x128xbf16, #tpu.memory_space<vmem>>, vector<128x128xbf16>
    %c0_13 = arith.constant 0 : index
    %c0_14 = arith.constant 0 : index
    %11 = vector.load %arg8[%c0_13, %c0_14] : memref<1x128xbf16, #tpu.memory_space<vmem>>, vector<1x128xbf16>
    %cst_15 = arith.constant 5.000000e-01 : bf16
    %12 = vector.broadcast %cst_15 : bf16 to vector<512x256xbf16>
    %13 = arith.mulf %12, %6 : vector<512x256xbf16>
    %cst_16 = arith.constant 4.467770e-02 : bf16
    %14 = vector.broadcast %cst_16 : bf16 to vector<512x256xbf16>
    %15 = arith.mulf %14, %6 : vector<512x256xbf16>
    %16 = arith.mulf %15, %6 : vector<512x256xbf16>
    %17 = arith.mulf %16, %6 : vector<512x256xbf16>
    %18 = arith.addf %6, %17 : vector<512x256xbf16>
    %cst_17 = arith.constant 7.968750e-01 : bf16
    %19 = vector.broadcast %cst_17 : bf16 to vector<512x256xbf16>
    %20 = arith.mulf %19, %18 : vector<512x256xbf16>
    %21 = math.tanh %20 : vector<512x256xbf16>
    %cst_18 = arith.constant 1.000000e+00 : bf16
    %22 = vector.broadcast %cst_18 : bf16 to vector<512x256xbf16>
    %23 = arith.addf %22, %21 : vector<512x256xbf16>
    %24 = arith.mulf %13, %23 : vector<512x256xbf16>
    %cst_19 = arith.constant dense<0.000000e+00> : vector<512x128xf32>
    %25 = tpu.matmul %24, %7, %cst_19 {dimension_numbers = #tpu.dot_dimension_numbers<[1], [0], [0], [1], [0, 0, 1, 1], [], []>} : vector<512x256xbf16>, vector<256x128xbf16>, vector<512x128xf32> -> vector<512x128xf32>
    %26 = arith.extf %8 : vector<1x128xbf16> to vector<1x128xf32>
    %27 = vector.broadcast %26 : vector<1x128xf32> to vector<512x128xf32>
    %28 = arith.addf %25, %27 : vector<512x128xf32>
    %cst_20 = arith.constant 5.000000e-01 : f32
    %29 = vector.broadcast %cst_20 : f32 to vector<512x128xf32>
    %30 = arith.mulf %29, %28 : vector<512x128xf32>
    %cst_21 = arith.constant 4.471500e-02 : f32
    %31 = vector.broadcast %cst_21 : f32 to vector<512x128xf32>
    %32 = arith.mulf %31, %28 : vector<512x128xf32>
    %33 = arith.mulf %32, %28 : vector<512x128xf32>
    %34 = arith.mulf %33, %28 : vector<512x128xf32>
    %35 = arith.addf %28, %34 : vector<512x128xf32>
    %cst_22 = arith.constant 0.797884583 : f32
    %36 = vector.broadcast %cst_22 : f32 to vector<512x128xf32>
    %37 = arith.mulf %36, %35 : vector<512x128xf32>
    %38 = math.tanh %37 : vector<512x128xf32>
    %cst_23 = arith.constant 1.000000e+00 : f32
    %39 = vector.broadcast %cst_23 : f32 to vector<512x128xf32>
    %40 = arith.addf %39, %38 : vector<512x128xf32>
    %41 = arith.mulf %30, %40 : vector<512x128xf32>
    %42 = arith.truncf %41 : vector<512x128xf32> to vector<512x128xbf16>
    %cst_24 = arith.constant dense<0.000000e+00> : vector<512x128xf32>
    %43 = tpu.matmul %42, %10, %cst_24 {dimension_numbers = #tpu.dot_dimension_numbers<[1], [0], [0], [1], [0, 0, 1, 1], [], []>} : vector<512x128xbf16>, vector<128x128xbf16>, vector<512x128xf32> -> vector<512x128xf32>
    %44 = arith.extf %11 : vector<1x128xbf16> to vector<1x128xf32>
    %45 = vector.broadcast %44 : vector<1x128xf32> to vector<512x128xf32>
    %46 = arith.addf %43, %45 : vector<512x128xf32>
    %cst_25 = arith.constant dense<0.000000e+00> : vector<512x128xf32>
    %47 = tpu.matmul %6, %9, %cst_25 {dimension_numbers = #tpu.dot_dimension_numbers<[1], [0], [0], [1], [0, 0, 1, 1], [], []>} : vector<512x256xbf16>, vector<256x128xbf16>, vector<512x128xf32> -> vector<512x128xf32>
    %48 = arith.addf %47, %46 : vector<512x128xf32>
    %49 = arith.truncf %48 : vector<512x128xf32> to vector<512x128xbf16>
    %c0_26 = arith.constant 0 : index
    %c0_27 = arith.constant 0 : index
    %50 = vector.load %arg9[%c0_26, %c0_27] : memref<512x128xbf16, #tpu.memory_space<vmem>>, vector<512x128xbf16>
    tpu.vector_store %arg9[%c0_26, %c0_27], %49 {strides = array<i32>} : memref<512x128xbf16, #tpu.memory_space<vmem>>, vector<512x128xbf16>,
    return
  }
  func.func @transform_0(%arg0: i32) -> (i32, i32) {
    %c0_i32 = arith.constant 0 : i32
    %c0_i32_0 = arith.constant 0 : i32
    return %arg0, %c0_i32 : i32, i32
  }
  func.func @transform_1(%arg0: i32) -> (i32, i32) {
    %c0_i32 = arith.constant 0 : i32
    %c0_i32_0 = arith.constant 0 : i32
    %c0_i32_1 = arith.constant 0 : i32
    return %c0_i32, %c0_i32_0 : i32, i32
  }
  func.func @transform_2(%arg0: i32) -> (i32, i32) {
    %c0_i32 = arith.constant 0 : i32
    %c0_i32_0 = arith.constant 0 : i32
    %c0_i32_1 = arith.constant 0 : i32
    return %c0_i32, %c0_i32_0 : i32, i32
  }
  func.func @transform_3(%arg0: i32) -> (i32, i32) {
    %c0_i32 = arith.constant 0 : i32
    %c0_i32_0 = arith.constant 0 : i32
    %c0_i32_1 = arith.constant 0 : i32
    return %c0_i32, %c0_i32_0 : i32, i32
  }
  func.func @transform_4(%arg0: i32) -> (i32, i32) {
    %c0_i32 = arith.constant 0 : i32
    %c0_i32_0 = arith.constant 0 : i32
    %c0_i32_1 = arith.constant 0 : i32
    return %c0_i32, %c0_i32_0 : i32, i32
  }
  func.func @transform_5(%arg0: i32) -> (i32, i32) {
    %c0_i32 = arith.constant 0 : i32
    %c0_i32_0 = arith.constant 0 : i32
    %c0_i32_1 = arith.constant 0 : i32
    return %c0_i32, %c0_i32_0 : i32, i32
  }
  func.func @transform_6(%arg0: i32) -> (i32, i32) {
    %c0_i32 = arith.constant 0 : i32
    %c0_i32_0 = arith.constant 0 : i32
    %c0_i32_1 = arith.constant 0 : i32
    return %c0_i32, %c0_i32_0 : i32, i32
  }
  func.func @transform_7(%arg0: i32) -> (i32, i32) {
    %c0_i32 = arith.constant 0 : i32
    %c0_i32_0 = arith.constant 0 : i32
    %c0_i32_1 = arith.constant 0 : i32
    return %c0_i32, %c0_i32_0 : i32, i32
  }
  func.func @transform_8(%arg0: i32) -> (i32, i32) {
    %c0_i32 = arith.constant 0 : i32
    %c0_i32_0 = arith.constant 0 : i32
    return %arg0, %c0_i32 : i32, i32
  }
}

</mosaic_0001>

<bundles_post_ra>
// kernel: _head_stage.1
= control target key start
LH: loop header
LB: loop body
LE: loop exit
PB: predicated region body
PF: predicated region fallthrough
CT: control target
= control target key end

     0   :  { %13 = vsyncpa [#allocation3], 0  ;;  %s6663_s0 = inlined_call_operand.vmem [shape: f32[1024,8], index: 0, kind: input, shape index: {}]   ;;  %s6664_s1 = inlined_call_operand.vmem [shape: f32[8,256], index: 1, kind: input, shape index: {}]   ;;  %s6665_s2 = inlined_call_operand.vmem [shape: f32[1,256], index: 2, kind: input, shape index: {}]   ;;  %s6666_s3 = inlined_call_operand.vmem [shape: bf16[256,128], index: 3, kind: input, shape index: {}]   ;;  %s6667_s4 = inlined_call_operand.vmem [shape: bf16[1,128], index: 4, kind: input, shape index: {}]   ;;  %s6668_s5 = inlined_call_operand.vmem [shape: bf16[256,128], index: 5, kind: input, shape index: {}]   ;;  %s6669_s6 = inlined_call_operand.vmem [shape: bf16[128,128], index: 6, kind: input, shape index: {}]   ;;  %s6670_s7 = inlined_call_operand.vmem [shape: bf16[1,128], index: 7, kind: input, shape index: {}]   ;;  %s6671_s8 = inlined_call_operand.hbm [shape: bf16[1024,128], index: 8, kind: output, shape index: {}]  }
   0x1   :  { %15 = vsyncpa [#allocation3 + $0x1], 0  ;;  %s4916_s27 = smov 0   ;;  %s4918_s28 = smov 0  }
   0x2   :  { %s4920_s29 = smov 0   ;;  %s4922_s30 = smov 0  }
   0x3 LB: > { %s4937_s9 = sadd.s32 4294967295, %s4864_s30   ;;  %s3875_s10 = sadd.s32 4294967294, %s4864_s30   ;;  %s4864_s30 = sphi %s4922_s30, %s6776_s30   ;;  %s4860_s29 = sphi %s4920_s29, %s6775_s29   ;;  %s4856_s28 = sphi %s4918_s28, %s6774_s28   ;;  %s4852_s27 = sphi %s4916_s27, %s6773_s27  }
   0x4   : > { %s4941_s11 = sadd.s32 1, %s4864_s30   ;;  %s201_s12 = sadd.s32 1, %s4860_s29 }
   0x5   : > { %s198_s13 = ssub.s32 %s4864_s30, %s4941_s11  ;;  %p211_p0 = scmp.ne.s32.totalorder %s4860_s29, %s4856_s28 }
   0x6   : > { %p199_p1 = scmp.eq.s32.totalorder %s198_s13, 0  ;;  %p212_p2 = scmp.eq.s32.totalorder %s4937_s9, 1 }
   0x7   : > { %p217_p3 = scmp.ne.s32.totalorder %s4856_s28, %s4852_s27  ;;  %p218_p4 = scmp.eq.s32.totalorder %s3875_s10, 1 }
   0x8   : > { %s4952_s14 = scalar_select %p199_p1, %s4860_s29, %s201_s12  }
   0x9   : > { %p4954_p5 = por %p212_p2, %p211_p0  ;;  %p4958_p6 = por %p218_p4, %p217_p3 }
   0xa   : > { %p3878_p7 = scmp.ge.s32.totalorder %s4864_s30, 1  ;;  %p266_p8 = scmp.lt.s32.totalorder %s4864_s30, 3 }
   0xc   : > { %p267_p9 = pnand %p3878_p7, %p266_p8 }
   0xe   : > { %270 = sbr.rel (%p267_p9) target bundleno = 1015 (0x3f7), region = 52 }
  0x15   : > { %v377_v0 = vld [vmem:[%s6664_s1 + $0x8] sm:$0xff]  ;;  %v376_v1 = vld [vmem:[%s6664_s1] sm:$0xff]  ;;  %s3880_s21 = sshll.u32 %s4937_s9, 6  ;;  %v4866_v2 = vmov 0.0   ;;  %v6673_v4 = vmov 0   ;;  %vm390_vm0 = vcmask 64512  }
  0x16   : > { %583 = vmatprep.subr.mxu0 %v377_v0  ;;  %647 = vmatprep.mubr.f32.mxu0 %v4866_v2  ;;  %p301_p10 = scmp.lt.s32.totalorder %s3880_s21, 127  ;;  %v4506_v3 = vld [vmem:[%s6666_s3] sm:$0xff]   ;;  %v4507_v5 = vld [vmem:[%s6666_s3 + $0x8] sm:$0xff]   ;;  %v4508_v8 = vld [vmem:[%s6666_s3 + $0x10] sm:$0xff]   ;;  %s4119_s25 = sshll.u32 %s4937_s9, 12 }
  0x17   : > { %584 = vmatpush1.msra.mxu0 %v376_v1  ;;  %4431 = vmatprep.subr.bf16.mxu1 %v6673_v4  ;;  %v4509_v11 = vld [vmem:[%s6666_s3 + $0x18] sm:$0xff]   ;;  %v4510_v15 = vld [vmem:[%s6666_s3 + $0x20] sm:$0xff]   ;;  %v4511_v20 = vld [vmem:[%s6666_s3 + $0x28] sm:$0xff]   ;;  %s6615_s17 = scalar_lea.hbm %s6671_s8, %s4119_s25  ;;  %s4868_s19 = smov [#allocation2]  }
  0x18   : > { %s6778_s21 = smov (!%p301_p10, %s3880_s21), 127  ;;  %1855 = vmatprep.subr.bf16.mxu0 %v6673_v4  ;;  %4447 = vmatpush1.bf16.msra.mxu1 %v4506_v3  ;;  %v4512_v25 = vld [vmem:[%s6666_s3 + $0x30] sm:$0xff]   ;;  %v4513_v30 = vld [vmem:[%s6666_s3 + $0x38] sm:$0xff]   ;;  %v4514_v37 = vld [vmem:[%s6666_s3 + $0x40] sm:$0xff]   ;;  %s4806_s20 = sshll.u32 %s4868_s19, 4  ;;  %s4807_s20 = int_to_ptr.vmem [resolvable:$false] %s4806_s20 }
  0x19   : > { %4432 = vmatprep.subr.bf16.mxu1 %v6673_v4  ;;  %s3881_s24 = sshll.u32 %s6778_s21, 3  ;;  %v4515_v39 = vld [vmem:[%s6666_s3 + $0x48] sm:$0xff]   ;;  %v4516_v41 = vld [vmem:[%s6666_s3 + $0x50] sm:$0xff]   ;;  %v4517_v43 = vld [vmem:[%s6666_s3 + $0x58] sm:$0xff]   ;;  %s4808_s21 = scalar_lea.vmem %s4807_s20, 8192 }
  0x1a   : > { %s4984_s13 = scalar_lea.vmem %s6663_s0, %s3881_s24  ;;  %v4518_v45 = vld [vmem:[%s6666_s3 + $0x60] sm:$0xff]   ;;  %v4519_v47 = vld [vmem:[%s6666_s3 + $0x68] sm:$0xff]   ;;  %v4520_v49 = vld [vmem:[%s6666_s3 + $0x70] sm:$0xff]  }
  0x1b   : > { %v312_v6 = vld [vmem:[%s4984_s13] sm:$0xff]  ;;  %v313_v7 = vld [vmem:[%s4984_s13 + $0x8] sm:$0xff]  ;;  %v314_v9 = vld [vmem:[%s4984_s13 + $0x10] sm:$0xff] }
  0x1c   : > { %4448 = vmatpush1.bf16.msra.mxu1 %v4507_v5  ;;  %3882 = vmatmul.mubr.msk.f32.vlgmr.msra.gmra.mrb[0].mxu0 %vm390_vm0, %v312_v6  ;;  %v315_v10 = vld [vmem:[%s4984_s13 + $0x18] sm:$0xff]  ;;  %v316_v12 = vld [vmem:[%s4984_s13 + $0x20] sm:$0xff]  ;;  %v317_v13 = vld [vmem:[%s4984_s13 + $0x28] sm:$0xff] }
  0x1d   : > { %4433 = vmatprep.subr.bf16.mxu1 %v6673_v4  ;;  %653 = vmatprep.mubr.f32.mxu0 %v4866_v2  ;;  %v318_v14 = vld [vmem:[%s4984_s13 + $0x30] sm:$0xff]  ;;  %v319_v16 = vld [vmem:[%s4984_s13 + $0x38] sm:$0xff]  ;;  %v320_v17 = vld [vmem:[%s4984_s13 + $0x40] sm:$0xff] }
  0x1e   : > { %1856 = vmatpush1.bf16.msra.mxu0 %v4506_v3  ;;  %v321_v18 = vld [vmem:[%s4984_s13 + $0x48] sm:$0xff]  ;;  %v322_v19 = vld [vmem:[%s4984_s13 + $0x50] sm:$0xff]  ;;  %v323_v21 = vld [vmem:[%s4984_s13 + $0x58] sm:$0xff] }
  0x1f   : > { %1857 = vmatprep.subr.bf16.mxu0 %v6673_v4  ;;  %v324_v22 = vld [vmem:[%s4984_s13 + $0x60] sm:$0xff]  ;;  %v325_v23 = vld [vmem:[%s4984_s13 + $0x68] sm:$0xff]  ;;  %v326_v24 = vld [vmem:[%s4984_s13 + $0x70] sm:$0xff] }
  0x20   : > { %4449 = vmatpush1.bf16.msra.mxu1 %v4508_v8  ;;  %3883 = vmatmul.mubr.msk.f32.gmra.mrb[2].mxu0 %vm390_vm0, %v313_v7  ;;  %v327_v26 = vld [vmem:[%s4984_s13 + $0x78] sm:$0xff]  ;;  %v328_v27 = vld [vmem:[%s4984_s13 + $0x80] sm:$0xff]  ;;  %v329_v28 = vld [vmem:[%s4984_s13 + $0x88] sm:$0xff] }
  0x21   : > { %4434 = vmatprep.subr.bf16.mxu1 %v6673_v4  ;;  %659 = vmatprep.mubr.f32.mxu0 %v4866_v2  ;;  %v330_v29 = vld [vmem:[%s4984_s13 + $0x90] sm:$0xff]  ;;  %v331_v31 = vld [vmem:[%s4984_s13 + $0x98] sm:$0xff]  ;;  %v332_v32 = vld [vmem:[%s4984_s13 + $0xa0] sm:$0xff] }
  0x22   : > { %1858 = vmatpush1.bf16.msra.mxu0 %v4507_v5  ;;  %v333_v33 = vld [vmem:[%s4984_s13 + $0xa8] sm:$0xff]  ;;  %v334_v34 = vld [vmem:[%s4984_s13 + $0xb0] sm:$0xff]  ;;  %v335_v35 = vld [vmem:[%s4984_s13 + $0xb8] sm:$0xff] }
  0x23   : > { %1859 = vmatprep.subr.bf16.mxu0 %v6673_v4  ;;  %v336_v36 = vld [vmem:[%s4984_s13 + $0xc0] sm:$0xff]  ;;  %v337_v38 = vld [vmem:[%s4984_s13 + $0xc8] sm:$0xff]  ;;  %v338_v40 = vld [vmem:[%s4984_s13 + $0xd0] sm:$0xff] }
  0x24   : > { %3884 = vmatmul.mubr.msk.f32.gmra.mrb[4].mxu0 %vm390_vm0, %v314_v9  ;;  %4450 = vmatpush1.bf16.msra.mxu1 %v4509_v11  ;;  %v339_v42 = vld [vmem:[%s4984_s13 + $0xd8] sm:$0xff]  ;;  %v340_v44 = vld [vmem:[%s4984_s13 + $0xe0] sm:$0xff]  ;;  %v341_v46 = vld [vmem:[%s4984_s13 + $0xe8] sm:$0xff]  ;;  %v380_v9 = vlaneseq }
  0x25   : > { %665 = vmatprep.mubr.f32.mxu0 %v4866_v2  ;;  %4435 = vmatprep.subr.bf16.mxu1 %v6673_v4  ;;  %v342_v48 = vld [vmem:[%s4984_s13 + $0xf0] sm:$0xff]  ;;  %v343_v50 = vld [vmem:[%s4984_s13 + $0xf8] sm:$0xff]  ;;  %v344_v52 = vld [vmem:[%s4984_s13 + $0x100] sm:$0xff] }
  0x26   : > { %1860 = vmatpush1.bf16.msra.mxu0 %v4508_v8  ;;  %v4521_v51 = vld [vmem:[%s6666_s3 + $0x78] sm:$0xff]   ;;  %v345_v53 = vld [vmem:[%s4984_s13 + $0x108] sm:$0xff]  ;;  %v346_v54 = vld [vmem:[%s4984_s13 + $0x110] sm:$0xff] }
  0x27   : > { %1861 = vmatprep.subr.bf16.mxu0 %v6673_v4  ;;  %v347_v55 = vld [vmem:[%s4984_s13 + $0x118] sm:$0xff]  ;;  %v348_v56 = vld [vmem:[%s4984_s13 + $0x120] sm:$0xff]  ;;  %v349_v57 = vld [vmem:[%s4984_s13 + $0x128] sm:$0xff] }
  0x28   : > { %3885 = vmatmul.mubr.msk.f32.gmra.mrb[6].mxu0 %vm390_vm0, %v315_v10  ;;  %4451 = vmatpush1.bf16.msra.mxu1 %v4510_v15  ;;  %v350_v58 = vld [vmem:[%s4984_s13 + $0x130] sm:$0xff]  ;;  %v351_v59 = vld [vmem:[%s4984_s13 + $0x138] sm:$0xff]  ;;  %v352_v60 = vld [vmem:[%s4984_s13 + $0x140] sm:$0xff] }
  0x29   : > { %671 = vmatprep.mubr.f32.mxu0 %v4866_v2  ;;  %4436 = vmatprep.subr.bf16.mxu1 %v6673_v4  ;;  %v353_v61 = vld [vmem:[%s4984_s13 + $0x148] sm:$0xff]  ;;  %v354_v62 = vld [vmem:[%s4984_s13 + $0x150] sm:$0xff]  ;;  %v355_v63 = vld [vmem:[%s4984_s13 + $0x158] sm:$0xff] }
  0x2a   : > { %1862 = vmatpush1.bf16.msra.mxu0 %v4509_v11  ;;  %v356_v0 = vld [vmem:[%s4984_s13 + $0x160] sm:$0xff]  ;;  %v357_v1 = vld [vmem:[%s4984_s13 + $0x168] sm:$0xff]  ;;  %v358_v3 = vld [vmem:[%s4984_s13 + $0x170] sm:$0xff]  ;;  %v381_v11 = vshrl.u32 %v380_v9, 7 }
  0x2b   : > { %1863 = vmatprep.subr.bf16.mxu0 %v6673_v4  ;;  %v359_v5 = vld [vmem:[%s4984_s13 + $0x178] sm:$0xff]  ;;  %v360_v6 = vld [vmem:[%s4984_s13 + $0x180] sm:$0xff]  ;;  %v361_v7 = vld [vmem:[%s4984_s13 + $0x188] sm:$0xff] }
  0x2c   : > { %3886 = vmatmul.mubr.msk.f32.gmra.mrb[8].mxu0 %vm390_vm0, %v316_v12  ;;  %4452 = vmatpush1.bf16.msra.mxu1 %v4511_v20  ;;  %v362_v8 = vld [vmem:[%s4984_s13 + $0x190] sm:$0xff]  ;;  %v363_v10 = vld [vmem:[%s4984_s13 + $0x198] sm:$0xff]  ;;  %v364_v12 = vld [vmem:[%s4984_s13 + $0x1a0] sm:$0xff] }
  0x2d   : > { %677 = vmatprep.mubr.f32.mxu0 %v4866_v2  ;;  %4437 = vmatprep.subr.bf16.mxu1 %v6673_v4 }
  0x2e   : > { %1864 = vmatpush1.bf16.msra.mxu0 %v4510_v15  ;;  %v386_v15 = vsub.s32 1, %v381_v11 }
  0x2f   : > { %1865 = vmatprep.subr.bf16.mxu0 %v6673_v4 }
  0x30   : > { %3887 = vmatmul.mubr.msk.f32.gmra.mrb[10].mxu0 %vm390_vm0, %v317_v13  ;;  %4453 = vmatpush1.bf16.msra.mxu1 %v4512_v25  ;;  %v5216_v13 = vsub.s32 0, %v381_v11 }
  0x31   : > { %683 = vmatprep.mubr.f32.mxu0 %v4866_v2  ;;  %4438 = vmatprep.subr.bf16.mxu1 %v6673_v4 }
  0x32   : > { %1866 = vmatpush1.bf16.msra.mxu0 %v4511_v20  ;;  %6708 = vst [vmem:[#allocation5_spill] sm:$0xff] %v5216_v13 }
  0x33   : > { %1867 = vmatprep.subr.bf16.mxu0 %v6673_v4 }
  0x34   : > { %3888 = vmatmul.mubr.msk.f32.gmra.mrb[12].mxu0 %vm390_vm0, %v318_v14  ;;  %4454 = vmatpush1.bf16.msra.mxu1 %v4513_v30  ;;  %v378_v14 = vld [vmem:[%s6665_s2] sm:$0x3] }
  0x35   : > { %689 = vmatprep.mubr.f32.mxu0 %v4866_v2  ;;  %4439 = vmatprep.subr.bf16.mxu1 %v6673_v4  ;;  %v5227_v20 = vrot.slane %v378_v14, %v386_v15  ;;  %v372_v15 = vld [vmem:[%s4984_s13 + $0x1e0] sm:$0xff] }
  0x36   : > { %1868 = vmatpush1.bf16.msra.mxu0 %v4512_v25 }
  0x37   : > { %1869 = vmatprep.subr.bf16.mxu0 %v6673_v4 }
  0x38   : > { %3889 = vmatmul.mubr.msk.f32.gmra.mrb[14].mxu0 %vm390_vm0, %v319_v16  ;;  %4455 = vmatpush1.bf16.msra.mxu1 %v4514_v37  ;;  %v365_v16 = vld [vmem:[%s4984_s13 + $0x1a8] sm:$0xff] }
  0x39   : > { %695 = vmatprep.mubr.f32.mxu0 %v4866_v2  ;;  %4440 = vmatprep.subr.bf16.mxu1 %v6673_v4 }
  0x3a   : > { %1870 = vmatpush1.bf16.msra.mxu0 %v4513_v30 }
  0x3b   : > { %1871 = vmatprep.subr.bf16.mxu0 %v6673_v4 }
  0x3c   : > { %3890 = vmatmul.mubr.msk.f32.gmra.mrb[16].mxu0 %vm390_vm0, %v320_v17  ;;  %4456 = vmatpush1.bf16.msra.mxu1 %v4515_v39 }
  0x3d   : > { %701 = vmatprep.mubr.f32.mxu0 %v4866_v2  ;;  %4441 = vmatprep.subr.bf16.mxu1 %v6673_v4 }
  0x3e   : > { %1872 = vmatpush1.bf16.msra.mxu0 %v4514_v37 }
  0x3f   : > { %1873 = vmatprep.subr.bf16.mxu0 %v6673_v4 }
  0x40   : > { %3891 = vmatmul.mubr.msk.f32.gmra.mrb[18].mxu0 %vm390_vm0, %v321_v18  ;;  %4457 = vmatpush1.bf16.msra.mxu1 %v4516_v41  ;;  %v5224_v18 = vrot.slane %v378_v14, %v5216_v13 }
  0x41   : > { %707 = vmatprep.mubr.f32.mxu0 %v4866_v2  ;;  %4442 = vmatprep.subr.bf16.mxu1 %v6673_v4 }
  0x42   : > { %1874 = vmatpush1.bf16.msra.mxu0 %v4515_v39 }
  0x43   : > { %1875 = vmatprep.subr.bf16.mxu0 %v6673_v4 }
  0x44   : > { %3892 = vmatmul.mubr.msk.f32.gmra.mrb[20].mxu0 %vm390_vm0, %v322_v19  ;;  %4458 = vmatpush1.bf16.msra.mxu1 %v4517_v43 }
  0x45   : > { %713 = vmatprep.mubr.f32.mxu0 %v4866_v2  ;;  %4443 = vmatprep.subr.bf16.mxu1 %v6673_v4 }
  0x46   : > { %1876 = vmatpush1.bf16.msra.mxu0 %v4516_v41 }
  0x47   : > { %1877 = vmatprep.subr.bf16.mxu0 %v6673_v4 }
  0x48   : > { %3893 = vmatmul.mubr.msk.f32.gmra.mrb[22].mxu0 %vm390_vm0, %v323_v21  ;;  %4459 = vmatpush1.bf16.msra.mxu1 %v4518_v45  ;;  %v366_v21 = vld [vmem:[%s4984_s13 + $0x1b0] sm:$0xff] }
  0x49   : > { %719 = vmatprep.mubr.f32.mxu0 %v4866_v2  ;;  %4444 = vmatprep.subr.bf16.mxu1 %v6673_v4 }
  0x4a   : > { %1878 = vmatpush1.bf16.msra.mxu0 %v4517_v43 }
  0x4b   : > { %1879 = vmatprep.subr.bf16.mxu0 %v6673_v4 }
  0x4c   : > { %3894 = vmatmul.mubr.msk.f32.gmra.mrb[24].mxu0 %vm390_vm0, %v324_v22  ;;  %4460 = vmatpush1.bf16.msra.mxu1 %v4519_v47 }
  0x4d   : > { %725 = vmatprep.mubr.f32.mxu0 %v4866_v2  ;;  %4445 = vmatprep.subr.bf16.mxu1 %v6673_v4 }
  0x4e   : > { %1880 = vmatpush1.bf16.msra.mxu0 %v4518_v45  ;;  %v369_v45 = vld [vmem:[%s4984_s13 + $0x1c8] sm:$0xff] }
  0x4f   : > { %1881 = vmatprep.subr.bf16.mxu0 %v6673_v4 }
  0x50   : > { %3895 = vmatmul.mubr.msk.f32.gmra.mrb[26].mxu0 %vm390_vm0, %v325_v23  ;;  %4461 = vmatpush1.bf16.msra.mxu1 %v4520_v49 }
  0x51   : > { %731 = vmatprep.mubr.f32.mxu0 %v4866_v2  ;;  %4446 = vmatprep.subr.bf16.mxu1 %v6673_v4 }
  0x52   : > { %1882 = vmatpush1.bf16.msra.mxu0 %v4519_v47 }
  0x53   : > { %1883 = vmatprep.subr.bf16.mxu0 %v6673_v4 }
  0x54   : > { %3896 = vmatmul.mubr.msk.f32.gmra.mrb[28].mxu0 %vm390_vm0, %v326_v24  ;;  %4462 = vmatpush1.bf16.msra.mxu1 %v4521_v51 }
  0x55   : > { %737 = vmatprep.mubr.f32.mxu0 %v4866_v2  ;;  %3190 = vmatprep.subr.bf16.mxu1 %v6673_v4 }
  0x56   : > { %1884 = vmatpush1.bf16.msra.mxu0 %v4520_v49 }
  0x57   : > { %1885 = vmatprep.subr.bf16.mxu0 %v6673_v4 }
  0x58   : > { %3897 = vmatmul.mubr.msk.f32.gmra.mrb[30].mxu0 %vm390_vm0, %v327_v26 }
  0x59   : > { %743 = vmatprep.mubr.f32.mxu0 %v4866_v2 }
  0x5a   : > { %1886 = vmatpush1.bf16.msra.mxu0 %v4521_v51 }
  0x5c   : > { %3898 = vmatmul.mubr.msk.f32.gmra.mrb[32].mxu0 %vm390_vm0, %v328_v27 }
  0x5d   : > { %749 = vmatprep.mubr.f32.mxu0 %v4866_v2 }
  0x60   : > { %3899 = vmatmul.mubr.msk.f32.gmra.mrb[34].mxu0 %vm390_vm0, %v329_v28  ;;  %v367_v28 = vld [vmem:[%s4984_s13 + $0x1b8] sm:$0xff] }
  0x61   : > { %755 = vmatprep.mubr.f32.mxu0 %v4866_v2 }
  0x64   : > { %3900 = vmatmul.mubr.msk.f32.gmra.mrb[36].mxu0 %vm390_vm0, %v330_v29 }
  0x65   : > { %761 = vmatprep.mubr.f32.mxu0 %v4866_v2 }
  0x68   : > { %3901 = vmatmul.mubr.msk.f32.gmra.mrb[38].mxu0 %vm390_vm0, %v331_v31 }
  0x69   : > { %767 = vmatprep.mubr.f32.mxu0 %v4866_v2 }
  0x6c   : > { %3902 = vmatmul.mubr.msk.f32.gmra.mrb[40].mxu0 %vm390_vm0, %v332_v32 }
  0x6d   : > { %773 = vmatprep.mubr.f32.mxu0 %v4866_v2 }
  0x70   : > { %3903 = vmatmul.mubr.msk.f32.gmra.mrb[42].mxu0 %vm390_vm0, %v333_v33 }
  0x71   : > { %779 = vmatprep.mubr.f32.mxu0 %v4866_v2 }
  0x74   : > { %3904 = vmatmul.mubr.msk.f32.gmra.mrb[44].mxu0 %vm390_vm0, %v334_v34  ;;  %v368_v34 = vld [vmem:[%s4984_s13 + $0x1c0] sm:$0xff] }
  0x75   : > { %785 = vmatprep.mubr.f32.mxu0 %v4866_v2 }
  0x78   : > { %3905 = vmatmul.mubr.msk.f32.gmra.mrb[46].mxu0 %vm390_vm0, %v335_v35 }
  0x79   : > { %791 = vmatprep.mubr.f32.mxu0 %v4866_v2 }
  0x7c   : > { %3906 = vmatmul.mubr.msk.f32.gmra.mrb[48].mxu0 %vm390_vm0, %v336_v36 }
  0x7d   : > { %797 = vmatprep.mubr.f32.mxu0 %v4866_v2 }
  0x80   : > { %3907 = vmatmul.mubr.msk.f32.gmra.mrb[50].mxu0 %vm390_vm0, %v337_v38 }
  0x81   : > { %803 = vmatprep.mubr.f32.mxu0 %v4866_v2 }
  0x84   : > { %3908 = vmatmul.mubr.msk.f32.gmra.mrb[52].mxu0 %vm390_vm0, %v338_v40 }
  0x85   : > { %809 = vmatprep.mubr.f32.mxu0 %v4866_v2 }
  0x88   : > { %3909 = vmatmul.mubr.msk.f32.gmra.mrb[54].mxu0 %vm390_vm0, %v339_v42 }
  0x89   : > { %815 = vmatprep.mubr.f32.mxu0 %v4866_v2 }
  0x8c   : > { %3910 = vmatmul.mubr.msk.f32.gmra.mrb[56].mxu0 %vm390_vm0, %v340_v44 }
  0x8d   : > { %821 = vmatprep.mubr.f32.mxu0 %v4866_v2 }
  0x90   : > { %3911 = vmatmul.mubr.msk.f32.gmra.mrb[58].mxu0 %vm390_vm0, %v341_v46 }
  0x91   : > { %827 = vmatprep.mubr.f32.mxu0 %v4866_v2 }
  0x94   : > { %3912 = vmatmul.mubr.msk.f32.gmra.mrb[60].mxu0 %vm390_vm0, %v342_v48 }
  0x95   : > { %833 = vmatprep.mubr.f32.mxu0 %v4866_v2 }
  0x98   : > { %3913 = vmatmul.mubr.msk.f32.gmra.mrb[62].mxu0 %vm390_vm0, %v343_v50 }
  0x99   : > { %839 = vmatprep.mubr.f32.mxu0 %v4866_v2 }
  0x9c   : > { %3914 = vmatmul.mubr.msk.f32.gmra.mrb[64].mxu0 %vm390_vm0, %v344_v52 }
  0x9d   : > { %845 = vmatprep.mubr.f32.mxu0 %v4866_v2 }
  0xa0   : > { %3915 = vmatmul.mubr.msk.f32.gmra.mrb[66].mxu0 %vm390_vm0, %v345_v53  ;;  %v370_v53 = vld [vmem:[%s4984_s13 + $0x1d0] sm:$0xff] }
  0xa1   : > { %851 = vmatprep.mubr.f32.mxu0 %v4866_v2 }
  0xa4   : > { %3916 = vmatmul.mubr.msk.f32.gmra.mrb[68].mxu0 %vm390_vm0, %v346_v54 }
  0xa5   : > { %857 = vmatprep.mubr.f32.mxu0 %v4866_v2 }
  0xa8   : > { %3917 = vmatmul.mubr.msk.f32.gmra.mrb[70].mxu0 %vm390_vm0, %v347_v55 }
  0xa9   : > { %863 = vmatprep.mubr.f32.mxu0 %v4866_v2 }
  0xac   : > { %3918 = vmatmul.mubr.msk.f32.gmra.mrb[72].mxu0 %vm390_vm0, %v348_v56 }
  0xad   : > { %869 = vmatprep.mubr.f32.mxu0 %v4866_v2 }
  0xb0   : > { %3919 = vmatmul.mubr.msk.f32.gmra.mrb[74].mxu0 %vm390_vm0, %v349_v57 }
  0xb1   : > { %875 = vmatprep.mubr.f32.mxu0 %v4866_v2 }
  0xb4   : > { %3920 = vmatmul.mubr.msk.f32.gmra.mrb[76].mxu0 %vm390_vm0, %v350_v58 }
  0xb5   : > { %881 = vmatprep.mubr.f32.mxu0 %v4866_v2 }
  0xb8   : > { %3921 = vmatmul.mubr.msk.f32.gmra.mrb[78].mxu0 %vm390_vm0, %v351_v59 }
  0xb9   : > { %887 = vmatprep.mubr.f32.mxu0 %v4866_v2 }
  0xbc   : > { %3922 = vmatmul.mubr.msk.f32.gmra.mrb[80].mxu0 %vm390_vm0, %v352_v60 }
  0xbd   : > { %893 = vmatprep.mubr.f32.mxu0 %v4866_v2 }
  0xc0   : > { %3923 = vmatmul.mubr.msk.f32.gmra.mrb[82].mxu0 %vm390_vm0, %v353_v61 }
  0xc1   : > { %899 = vmatprep.mubr.f32.mxu0 %v4866_v2 }
  0xc4   : > { %3924 = vmatmul.mubr.msk.f32.gmra.mrb[84].mxu0 %vm390_vm0, %v354_v62 }
  0xc5   : > { %905 = vmatprep.mubr.f32.mxu0 %v4866_v2 }
  0xc8   : > { %3925 = vmatmul.mubr.msk.f32.gmra.mrb[86].mxu0 %vm390_vm0, %v355_v63 }
  0xc9   : > { %911 = vmatprep.mubr.f32.mxu0 %v4866_v2 }
  0xcc   : > { %3926 = vmatmul.mubr.msk.f32.gmra.mrb[88].mxu0 %vm390_vm0, %v356_v0 }
  0xcd   : > { %917 = vmatprep.mubr.f32.mxu0 %v4866_v2 }
  0xd0   : > { %3927 = vmatmul.mubr.msk.f32.gmra.mrb[90].mxu0 %vm390_vm0, %v357_v1 }
  0xd1   : > { %923 = vmatprep.mubr.f32.mxu0 %v4866_v2 }
  0xd4   : > { %3928 = vmatmul.mubr.msk.f32.gmra.mrb[92].mxu0 %vm390_vm0, %v358_v3  ;;  %v371_v3 = vld [vmem:[%s4984_s13 + $0x1d8] sm:$0xff] }
  0xd5   : > { %929 = vmatprep.mubr.f32.mxu0 %v4866_v2 }
  0xd8   : > { %3929 = vmatmul.mubr.msk.f32.gmra.mrb[94].mxu0 %vm390_vm0, %v359_v5 }
  0xd9   : > { %935 = vmatprep.mubr.f32.mxu0 %v4866_v2 }
  0xdc   : > { %3930 = vmatmul.mubr.msk.f32.gmra.mrb[96].mxu0 %vm390_vm0, %v360_v6 }
  0xdd   : > { %941 = vmatprep.mubr.f32.mxu0 %v4866_v2 }
  0xe0   : > { %3931 = vmatmul.mubr.msk.f32.gmra.mrb[98].mxu0 %vm390_vm0, %v361_v7 }
  0xe1   : > { %947 = vmatprep.mubr.f32.mxu0 %v4866_v2 }
  0xe4   : > { %3932 = vmatmul.mubr.msk.f32.gmra.mrb[100].mxu0 %vm390_vm0, %v362_v8 }
  0xe5   : > { %953 = vmatprep.mubr.f32.mxu0 %v4866_v2 }
  0xe8   : > { %3933 = vmatmul.mubr.msk.f32.gmra.mrb[102].mxu0 %vm390_vm0, %v363_v10 }
  0xe9   : > { %959 = vmatprep.mubr.f32.mxu0 %v4866_v2 }
  0xec   : > { %3934 = vmatmul.mubr.msk.f32.gmra.mrb[104].mxu0 %vm390_vm0, %v364_v12 }
  0xed   : > { %965 = vmatprep.mubr.f32.mxu0 %v4866_v2 }
  0xef   : > { %v649_v17 = vpop.f32.mrb[0].mxu0 }
  0xf0   : > { %v651_v19 = vpop.f32.mrb[1].mxu0  ;;  %3935 = vmatmul.mubr.msk.f32.gmra.mrb[106].mxu0 %vm390_vm0, %v365_v16  ;;  %v650_v23 = vadd.f32 %v649_v17, %v5224_v18 }
  0xf1   : > { %971 = vmatprep.mubr.f32.mxu0 %v4866_v2  ;;  %v652_v26 = vadd.f32 %v651_v19, %v5227_v20 }
  0xf3   : > { %v655_v22 = vpop.f32.mrb[2].mxu0 }
  0xf4   : > { %v656_v24 = vadd.f32 %v655_v22, %v5224_v18  ;;  %v657_v25 = vpop.f32.mrb[3].mxu0  ;;  %3936 = vmatmul.mubr.msk.f32.gmra.mrb[108].mxu0 %vm390_vm0, %v366_v21 }
  0xf5   : > { %v658_v27 = vadd.f32 %v657_v25, %v5227_v20  ;;  %977 = vmatprep.mubr.f32.mxu0 %v4866_v2 }
  0xf6   : > { %v5238_v29 = vpack.c.bf16 %v656_v24, %v650_v23 }
  0xf7   : > { %v5240_v30 = vpack.c.bf16 %v658_v27, %v652_v26  ;;  %v661_v31 = vpop.f32.mrb[4].mxu0 }
  0xf8   : > { %v1242_v32 = vmul.bf16 1027030327, %v5238_v29  ;;  %v663_v33 = vpop.f32.mrb[5].mxu0  ;;  %3937 = vmatmul.mubr.msk.f32.gmra.mrb[110].mxu0 %vm390_vm0, %v367_v28  ;;  %v662_v39 = vadd.f32 %v661_v31, %v5224_v18 }
  0xf9   : > { %983 = vmatprep.mubr.f32.mxu0 %v4866_v2  ;;  %v1243_v35 = vmul.bf16 1027030327, %v5240_v30  ;;  %v664_v43 = vadd.f32 %v663_v33, %v5227_v20 }
  0xfa   : > { %v1306_v36 = vmul.bf16 %v1242_v32, %v5238_v29  ;;  %v373_v32 = vld [vmem:[%s4984_s13 + $0x1e8] sm:$0xff] }
  0xfb   : > { %v667_v37 = vpop.f32.mrb[6].mxu0  ;;  %v1307_v38 = vmul.bf16 %v1243_v35, %v5240_v30 }
  0xfc   : > { %v668_v40 = vadd.f32 %v667_v37, %v5224_v18  ;;  %v669_v41 = vpop.f32.mrb[7].mxu0  ;;  %3938 = vmatmul.mubr.msk.f32.gmra.mrb[112].mxu0 %vm390_vm0, %v368_v34  ;;  %v1370_v42 = vmul.bf16 %v1306_v36, %v5238_v29 }
  0xfd   : > { %v670_v44 = vadd.f32 %v669_v41, %v5227_v20  ;;  %989 = vmatprep.mubr.f32.mxu0 %v4866_v2  ;;  %v1371_v46 = vmul.bf16 %v1307_v38, %v5240_v30  ;;  %v374_v41 = vld [vmem:[%s4984_s13 + $0x1f0] sm:$0xff] }
  0xfe   : > { %v5258_v47 = vpack.c.bf16 %v668_v40, %v662_v39  ;;  %v1434_v52 = vadd.bf16 %v1370_v42, %v5238_v29 }
  0xff   : > { %v5260_v48 = vpack.c.bf16 %v670_v44, %v664_v43  ;;  %v673_v49 = vpop.f32.mrb[8].mxu0  ;;  %v1435_v50 = vadd.bf16 %v1371_v46, %v5240_v30 }
 0x100   : > { %v675_v51 = vpop.f32.mrb[9].mxu0  ;;  %3939 = vmatmul.mubr.msk.f32.gmra.mrb[114].mxu0 %vm390_vm0, %v369_v45  ;;  %v1244_v56 = vmul.bf16 1027030327, %v5258_v47  ;;  %v674_v59 = vadd.f32 %v673_v49, %v5224_v18  ;;  %v1498_v62 = vmul.bf16 1061961548, %v1434_v52 }
 0x101   : > { %995 = vmatprep.mubr.f32.mxu0 %v4866_v2  ;;  %v1499_v54 = vmul.bf16 1061961548, %v1435_v50  ;;  %v1245_v55 = vmul.bf16 1027030327, %v5260_v48  ;;  %v676_v0 = vadd.f32 %v675_v51, %v5227_v20 }
 0x102   : > { %v1308_v63 = vmul.bf16 %v1244_v56, %v5258_v47 }
 0x103   : > { %v679_v57 = vpop.f32.mrb[10].mxu0  ;;  %v1309_v58 = vmul.bf16 %v1245_v55, %v5260_v48  ;;  %4546 = vtanh.bf16 %v1499_v54 }
 0x104   : > { %v680_v60 = vadd.f32 %v679_v57, %v5224_v18  ;;  %v681_v61 = vpop.f32.mrb[11].mxu0  ;;  %3940 = vmatmul.mubr.msk.f32.gmra.mrb[116].mxu0 %vm390_vm0, %v370_v53  ;;  %v1372_v7 = vmul.bf16 %v1308_v63, %v5258_v47  ;;  %4548 = vtanh.bf16 %v1498_v62 }
 0x105   : > { %v682_v1 = vadd.f32 %v681_v61, %v5227_v20  ;;  %1001 = vmatprep.mubr.f32.mxu0 %v4866_v2  ;;  %v1373_v5 = vmul.bf16 %v1309_v58, %v5260_v48  ;;  %v375_v58 = vld [vmem:[%s4984_s13 + $0x1f8] sm:$0xff]  ;;  %s297_s13 = sand.u32 1, %s4856_s28  }
 0x106   : > { %v5279_v6 = vpack.c.bf16 %v680_v60, %v674_v59  ;;  %v1436_v12 = vadd.bf16 %v1372_v7, %v5258_v47  ;;  %v1179_v59 = vmul.bf16 1056980736, %v5240_v30  ;;  %s3879_s23 = sshll.u32 %s297_s13, 8  ;;  %s6622_s18 = scalar_lea.sflag [#allocation3], %s297_s13 }
 0x107   : > { %v5282_v8 = vpack.c.bf16 %v682_v1, %v676_v0  ;;  %v685_v9 = vpop.f32.mrb[12].mxu0  ;;  %v1437_v10 = vadd.bf16 %v1373_v5, %v5260_v48  ;;  %s6508_s24 = scalar_lea.vmem [#allocation2], %s3879_s23 }
 0x108   : > { %v687_v11 = vpop.f32.mrb[13].mxu0  ;;  %3941 = vmatmul.mubr.msk.f32.gmra.mrb[118].mxu0 %vm390_vm0, %v371_v3  ;;  %v1246_v14 = vmul.bf16 1027030327, %v5279_v6  ;;  %v686_v23 = vadd.f32 %v685_v9, %v5224_v18  ;;  %v1500_v26 = vmul.bf16 1061961548, %v1436_v12  ;;  %s3813_s26 = sshll.u32 %s6508_s24, 4  ;;  %s6617_s26 = int_to_ptr.vmem [resolvable:$true] %s3813_s26 }
 0x109   : > { %1007 = vmatprep.mubr.f32.mxu0 %v4866_v2  ;;  %v1501_v16 = vmul.bf16 1061961548, %v1437_v10  ;;  %v1247_v17 = vmul.bf16 1027030327, %v5282_v8  ;;  %v688_v28 = vadd.f32 %v687_v11, %v5227_v20  ;;  %v1181_v12 = vmul.bf16 1056980736, %v5260_v48  ;;  %p4809_p0 = scmp.lt.s32.totalorder %s6617_s26, %s4807_s20 }
 0x10a   : > { %v1310_v19 = vmul.bf16 %v1246_v14, %v5279_v6  ;;  %s4802_s9 = scalar_lea.vmem %s6617_s26, 4096 }
 0x10b   : > { %v691_v21 = vpop.f32.mrb[14].mxu0  ;;  %4550 = vtanh.bf16 %v1501_v16  ;;  %v1311_v22 = vmul.bf16 %v1247_v17, %v5282_v8  ;;  %p4803_p11 = scmp.ne.s32.totalorder %s6617_s26, %s4802_s9  ;;  %p4810_p1 = scmp.lt.s32.totalorder %s4808_s21, %s4802_s9 }
 0x10c   : > { %v692_v24 = vadd.f32 %v691_v21, %v5224_v18  ;;  %v693_v25 = vpop.f32.mrb[15].mxu0  ;;  %3942 = vmatmul.mubr.msk.f32.gmra.mrb[120].mxu0 %vm390_vm0, %v372_v15  ;;  %v1374_v27 = vmul.bf16 %v1310_v19, %v5279_v6  ;;  %4552 = vtanh.bf16 %v1500_v26 }
 0x10d   : > { %v694_v31 = vadd.f32 %v693_v25, %v5227_v20  ;;  %1013 = vmatprep.mubr.f32.mxu0 %v4866_v2  ;;  %v1375_v33 = vmul.bf16 %v1311_v22, %v5282_v8  ;;  %p4804_p12 = pnand %p4803_p11, %p4954_p5  ;;  %p4811_p2 = por %p4810_p1, %p4809_p0 }
 0x10e   : > { %v5302_v34 = vpack.c.bf16 %v692_v24, %v686_v23  ;;  %v4547_v38 = vpop.eup %4546  ;;  %v1438_v40 = vadd.bf16 %v1374_v27, %v5279_v6 }
 0x10f   : > { %v5304_v35 = vpack.c.bf16 %v694_v31, %v688_v28  ;;  %v697_v36 = vpop.f32.mrb[16].mxu0  ;;  %v1439_v37 = vadd.bf16 %v1375_v33, %v5282_v8  ;;  %v4549_v45 = vpop.eup %4548  ;;  %v1627_v50 = vadd.bf16 1065369472, %v4547_v38  ;;  %p4805_p13 = pneg %p4804_p12 }
 0x110   : > { %v699_v39 = vpop.f32.mrb[17].mxu0  ;;  %3943 = vmatmul.mubr.msk.f32.gmra.mrb[122].mxu0 %vm390_vm0, %v373_v32  ;;  %v1248_v44 = vmul.bf16 1027030327, %v5302_v34  ;;  %v698_v46 = vadd.f32 %v697_v36, %v5224_v18  ;;  %v1502_v53 = vmul.bf16 1061961548, %v1438_v40 }
 0x111   : > { %1019 = vmatprep.mubr.f32.mxu0 %v4866_v2  ;;  %v1503_v42 = vmul.bf16 1061961548, %v1439_v37  ;;  %v1249_v43 = vmul.bf16 1027030327, %v5304_v35  ;;  %v700_v56 = vadd.f32 %v699_v39, %v5227_v20  ;;  %v1626_v62 = vadd.bf16 1065369472, %v4549_v45  ;;  %p4812_p3 = pnand %p4811_p2, %p4805_p13 }
 0x112   : > { %v1312_v55 = vmul.bf16 %v1248_v44, %v5302_v34  ;;  %v1691_v5 = vmul.bf16 %v1627_v50, %v1179_v59  ;;  %v1180_v45 = vmul.bf16 1056980736, %v5258_v47 }
 0x113   : > { %v703_v49 = vpop.f32.mrb[18].mxu0  ;;  %4554 = vtanh.bf16 %v1503_v42  ;;  %v1313_v54 = vmul.bf16 %v1249_v43, %v5304_v35 }
 0x114   : > { %v704_v51 = vadd.f32 %v703_v49, %v5224_v18  ;;  %v705_v52 = vpop.f32.mrb[19].mxu0  ;;  %3944 = vmatmul.mubr.msk.f32.gmra.mrb[124].mxu0 %vm390_vm0, %v374_v41  ;;  %v1376_v0 = vmul.bf16 %v1312_v55, %v5302_v34  ;;  %4556 = vtanh.bf16 %v1502_v53  ;;  %v1183_v49 = vmul.bf16 1056980736, %v5282_v8 }
 0x115   : > { %v706_v57 = vadd.f32 %v705_v52, %v5227_v20  ;;  %1025 = vmatprep.mubr.f32.mxu0 %v4866_v2  ;;  %v1377_v63 = vmul.bf16 %v1313_v54, %v5304_v35  ;;  %v1178_v2 = vmul.bf16 1056980736, %v5238_v29 }
 0x116   : > { %v4551_v60 = vpop.eup %4550  ;;  %v5323_v61 = vpack.c.bf16 %v704_v51, %v698_v46  ;;  %v1440_v11 = vadd.bf16 %v1376_v0, %v5302_v34 }
 0x117   : > { %v5327_v1 = vpack.c.bf16 %v706_v57, %v700_v56  ;;  %v709_v3 = vpop.f32.mrb[20].mxu0  ;;  %v1629_v7 = vadd.bf16 1065369472, %v4551_v60  ;;  %v1441_v10 = vadd.bf16 %v1377_v63, %v5304_v35  ;;  %v1690_v15 = vmul.bf16 %v1626_v62, %v1178_v2  ;;  %v4553_v17 = vpop.eup %4552 }
 0x118   : > { %v711_v9 = vpop.f32.mrb[21].mxu0  ;;  %3945 = vmatmul.mubr.msk.f32.gmra.mrb[126].mxu0 %vm390_vm0, %v375_v58  ;;  %v1250_v23 = vmul.bf16 1027030327, %v5323_v61  ;;  %v710_v24 = vadd.f32 %v709_v3, %v5224_v18  ;;  %v1504_v27 = vmul.bf16 1061961548, %v1440_v11 }
 0x119   : > { %1887 = vmatprep.mubr.bf16.mxu0 %v1691_v5  ;;  %v1251_v14 = vmul.bf16 1027030327, %v5327_v1  ;;  %v1505_v16 = vmul.bf16 1061961548, %v1441_v10  ;;  %v1693_v21 = vmul.bf16 %v1629_v7, %v1181_v12  ;;  %v712_v28 = vadd.f32 %v711_v9, %v5227_v20 }
 0x11a   : > { %v1314_v33 = vmul.bf16 %v1250_v23, %v5323_v61  ;;  %v1628_v38 = vadd.bf16 1065369472, %v4553_v17 }
 0x11b   : > { %v715_v19 = vpop.f32.mrb[22].mxu0  ;;  %v1315_v22 = vmul.bf16 %v1251_v14, %v5327_v1  ;;  %4558 = vtanh.bf16 %v1505_v16  ;;  %v1182_v14 = vmul.bf16 1056980736, %v5279_v6 }
 0x11c   : > { %v716_v25 = vadd.f32 %v715_v19, %v5224_v18  ;;  %v717_v26 = vpop.f32.mrb[23].mxu0  ;;  %1888 = vmatmul.mubr.bf16.vlgmr.msra.gmra.mrb[128].mxu0 %v1690_v15  ;;  %v1378_v43 = vmul.bf16 %v1314_v33, %v5323_v61  ;;  %4560 = vtanh.bf16 %v1504_v27  ;;  %v1692_v52 = vmul.bf16 %v1628_v38, %v1180_v45 }
 0x11d   : > { %v718_v31 = vadd.f32 %v717_v26, %v5227_v20  ;;  %1895 = vmatprep.mubr.bf16.mxu0 %v1693_v21  ;;  %v1379_v32 = vmul.bf16 %v1315_v22, %v5327_v1  ;;  %v1185_v21 = vmul.bf16 1056980736, %v5304_v35 }
 0x11e   : > { %v4555_v36 = vpop.eup %4554  ;;  %v5343_v37 = vpack.c.bf16 %v716_v25, %v710_v24  ;;  %v1442_v51 = vadd.bf16 %v1378_v43, %v5323_v61 }
 0x11f   : > { %v5345_v39 = vpack.c.bf16 %v718_v31, %v712_v28  ;;  %v721_v40 = vpop.f32.mrb[24].mxu0  ;;  %v1631_v41 = vadd.bf16 1065369472, %v4555_v36  ;;  %v1443_v42 = vadd.bf16 %v1379_v32, %v5327_v1  ;;  %v4557_v55 = vpop.eup %4556 }
 0x120   : > { %v723_v44 = vpop.f32.mrb[25].mxu0  ;;  %v1252_v46 = vmul.bf16 1027030327, %v5343_v37  ;;  %v722_v56 = vadd.f32 %v721_v40, %v5224_v18  ;;  %v1506_v62 = vmul.bf16 1061961548, %v1442_v51 }
 0x121   : > { %v1507_v50 = vmul.bf16 1061961548, %v1443_v42  ;;  %v1253_v53 = vmul.bf16 1027030327, %v5345_v39  ;;  %v1695_v58 = vmul.bf16 %v1631_v41, %v1183_v49  ;;  %v724_v3 = vadd.f32 %v723_v44, %v5227_v20 }
 0x122   : > { %v1316_v54 = vmul.bf16 %v1252_v46, %v5343_v37  ;;  %v1630_v9 = vadd.bf16 1065369472, %v4557_v55  ;;  %v1184_v55 = vmul.bf16 1056980736, %v5302_v34 }
 0x123   : > { %v727_v57 = vpop.f32.mrb[26].mxu0  ;;  %4562 = vtanh.bf16 %v1507_v50  ;;  %v1317_v63 = vmul.bf16 %v1253_v53, %v5345_v39 }
 0x124   : > { %v728_v59 = vadd.f32 %v727_v57, %v5224_v18  ;;  %v729_v60 = vpop.f32.mrb[27].mxu0  ;;  %1896 = vmatmul.mubr.bf16.gmra.mrb[132].mxu0 %v1692_v52  ;;  %v1380_v0 = vmul.bf16 %v1316_v54, %v5343_v37  ;;  %4564 = vtanh.bf16 %v1506_v62  ;;  %v1694_v23 = vmul.bf16 %v1630_v9, %v1182_v14 }
 0x125   : > { %v730_v5 = vadd.f32 %v729_v60, %v5227_v20  ;;  %1903 = vmatprep.mubr.bf16.mxu0 %v1695_v58  ;;  %v1381_v2 = vmul.bf16 %v1317_v63, %v5345_v39  ;;  %v1187_v57 = vmul.bf16 1056980736, %v5327_v1 }
 0x126   : > { %v5361_v7 = vpack.c.bf16 %v728_v59, %v722_v56  ;;  %v4559_v10 = vpop.eup %4558  ;;  %v1444_v19 = vadd.bf16 %v1380_v0, %v5343_v37 }
 0x127   : > { %v5364_v11 = vpack.c.bf16 %v730_v5, %v724_v3  ;;  %v733_v12 = vpop.f32.mrb[28].mxu0  ;;  %v1633_v16 = vadd.bf16 1065369472, %v4559_v10  ;;  %v1445_v17 = vadd.bf16 %v1381_v2, %v5345_v39  ;;  %v4561_v25 = vpop.eup %4560 }
 0x128   : > { %v735_v15 = vpop.f32.mrb[29].mxu0  ;;  %v1254_v31 = vmul.bf16 1027030327, %v5361_v7  ;;  %v734_v32 = vadd.f32 %v733_v12, %v5224_v18  ;;  %v1508_v38 = vmul.bf16 1061961548, %v1444_v19 }
 0x129   : > { %v1255_v22 = vmul.bf16 1027030327, %v5364_v11  ;;  %v1509_v24 = vmul.bf16 1061961548, %v1445_v17  ;;  %v1697_v27 = vmul.bf16 %v1633_v16, %v1185_v21  ;;  %v736_v40 = vadd.f32 %v735_v15, %v5227_v20 }
 0x12a   : > { %v1318_v43 = vmul.bf16 %v1254_v31, %v5361_v7  ;;  %v1632_v46 = vadd.bf16 1065369472, %v4561_v25 }
 0x12b   : > { %v739_v26 = vpop.f32.mrb[30].mxu0  ;;  %v1319_v28 = vmul.bf16 %v1255_v22, %v5364_v11  ;;  %4566 = vtanh.bf16 %v1509_v24 }
 0x12c   : > { %v740_v33 = vadd.f32 %v739_v26, %v5224_v18  ;;  %v741_v36 = vpop.f32.mrb[31].mxu0  ;;  %1904 = vmatmul.mubr.bf16.gmra.mrb[136].mxu0 %v1694_v23  ;;  %v1382_v53 = vmul.bf16 %v1318_v43, %v5361_v7  ;;  %4568 = vtanh.bf16 %v1508_v38  ;;  %v1696_v59 = vmul.bf16 %v1632_v46, %v1184_v55 }
 0x12d   : > { %v742_v41 = vadd.f32 %v741_v36, %v5227_v20  ;;  %1911 = vmatprep.mubr.bf16.mxu0 %v1697_v27  ;;  %v1383_v42 = vmul.bf16 %v1319_v28, %v5364_v11  ;;  %v1186_v26 = vmul.bf16 1056980736, %v5323_v61 }
 0x12e   : > { %v4563_v44 = vpop.eup %4562  ;;  %v5379_v45 = vpack.c.bf16 %v740_v33, %v734_v32  ;;  %v1446_v60 = vadd.bf16 %v1382_v53, %v5361_v7  ;;  %v1189_v33 = vmul.bf16 1056980736, %v5345_v39 }
 0x12f   : > { %v5381_v49 = vpack.c.bf16 %v742_v41, %v736_v40  ;;  %v745_v50 = vpop.f32.mrb[32].mxu0  ;;  %v1635_v51 = vadd.bf16 1065369472, %v4563_v44  ;;  %v1447_v52 = vadd.bf16 %v1383_v42, %v5364_v11  ;;  %v4565_v0 = vpop.eup %4564 }
 0x130   : > { %v747_v54 = vpop.f32.mrb[33].mxu0  ;;  %v1256_v56 = vmul.bf16 1027030327, %v5379_v45  ;;  %v746_v3 = vadd.f32 %v745_v50, %v5224_v18  ;;  %v1510_v12 = vmul.bf16 1061961548, %v1446_v60 }
 0x131   : > { %v1511_v58 = vmul.bf16 1061961548, %v1447_v52  ;;  %v1257_v62 = vmul.bf16 1027030327, %v5381_v49  ;;  %v1699_v9 = vmul.bf16 %v1635_v51, %v1187_v57  ;;  %v748_v16 = vadd.f32 %v747_v54, %v5227_v20 }
 0x132   : > { %v1320_v63 = vmul.bf16 %v1256_v56, %v5379_v45  ;;  %v1634_v21 = vadd.bf16 1065369472, %v4565_v0 }
 0x133   : > { %v751_v5 = vpop.f32.mrb[34].mxu0  ;;  %4570 = vtanh.bf16 %v1511_v58  ;;  %v1321_v14 = vmul.bf16 %v1257_v62, %v5381_v49 }
 0x134   : > { %v752_v2 = vadd.f32 %v751_v5, %v5224_v18  ;;  %v753_v10 = vpop.f32.mrb[35].mxu0  ;;  %1912 = vmatmul.mubr.bf16.gmra.mrb[140].mxu0 %v1696_v59  ;;  %v1384_v15 = vmul.bf16 %v1320_v63, %v5379_v45  ;;  %4572 = vtanh.bf16 %v1510_v12  ;;  %v1698_v38 = vmul.bf16 %v1634_v21, %v1186_v26 }
 0x135   : > { %v754_v17 = vadd.f32 %v753_v10, %v5227_v20  ;;  %1919 = vmatprep.mubr.bf16.mxu0 %v1699_v9  ;;  %v1385_v22 = vmul.bf16 %v1321_v14, %v5381_v49  ;;  %v1191_v14 = vmul.bf16 1056980736, %v5364_v11 }
 0x136   : > { %v5397_v19 = vpack.c.bf16 %v752_v2, %v746_v3  ;;  %v4567_v23 = vpop.eup %4566  ;;  %v1448_v32 = vadd.bf16 %v1384_v15, %v5379_v45  ;;  %v1188_v2 = vmul.bf16 1056980736, %v5343_v37 }
 0x137   : > { %v5400_v24 = vpack.c.bf16 %v754_v17, %v748_v16  ;;  %v757_v25 = vpop.f32.mrb[36].mxu0  ;;  %v1637_v28 = vadd.bf16 1065369472, %v4567_v23  ;;  %v1449_v31 = vadd.bf16 %v1385_v22, %v5381_v49  ;;  %v4569_v42 = vpop.eup %4568 }
 0x138   : > { %v759_v27 = vpop.f32.mrb[37].mxu0  ;;  %v1258_v41 = vmul.bf16 1027030327, %v5397_v19  ;;  %v758_v43 = vadd.f32 %v757_v25, %v5224_v18  ;;  %v1512_v53 = vmul.bf16 1061961548, %v1448_v32 }
 0x139   : > { %v1259_v36 = vmul.bf16 1027030327, %v5400_v24  ;;  %v1513_v40 = vmul.bf16 1061961548, %v1449_v31  ;;  %v1701_v46 = vmul.bf16 %v1637_v28, %v1189_v33  ;;  %v760_v55 = vadd.f32 %v759_v27, %v5227_v20 }
 0x13a   : > { %v1322_v54 = vmul.bf16 %v1258_v41, %v5397_v19  ;;  %v1636_v60 = vadd.bf16 1065369472, %v4569_v42 }
 0x13b   : > { %v763_v44 = vpop.f32.mrb[38].mxu0  ;;  %v1323_v50 = vmul.bf16 %v1259_v36, %v5400_v24  ;;  %4574 = vtanh.bf16 %v1513_v40 }
 0x13c   : > { %v764_v51 = vadd.f32 %v763_v44, %v5224_v18  ;;  %v765_v52 = vpop.f32.mrb[39].mxu0  ;;  %1920 = vmatmul.mubr.bf16.gmra.mrb[144].mxu0 %v1698_v38  ;;  %v1386_v62 = vmul.bf16 %v1322_v54, %v5397_v19  ;;  %4576 = vtanh.bf16 %v1512_v53  ;;  %v1700_v16 = vmul.bf16 %v1636_v60, %v1188_v2 }
 0x13d   : > { %v766_v56 = vadd.f32 %v765_v52, %v5227_v20  ;;  %1927 = vmatprep.mubr.bf16.mxu0 %v1701_v46  ;;  %v1387_v57 = vmul.bf16 %v1323_v50, %v5400_v24  ;;  %v1190_v52 = vmul.bf16 1056980736, %v5361_v7 }
 0x13e   : > { %v4571_v58 = vpop.eup %4570  ;;  %v5415_v59 = vpack.c.bf16 %v764_v51, %v758_v43  ;;  %v1450_v10 = vadd.bf16 %v1386_v62, %v5397_v19 }
 0x13f   : > { %v5418_v63 = vpack.c.bf16 %v766_v56, %v760_v55  ;;  %v769_v0 = vpop.f32.mrb[40].mxu0  ;;  %v1639_v3 = vadd.bf16 1065369472, %v4571_v58  ;;  %v1451_v5 = vadd.bf16 %v1387_v57, %v5400_v24  ;;  %v4573_v22 = vpop.eup %4572  ;;  %v1193_v55 = vmul.bf16 1056980736, %v5381_v49 }
 0x140   : > { %v771_v9 = vpop.f32.mrb[41].mxu0  ;;  %v1260_v12 = vmul.bf16 1027030327, %v5415_v59  ;;  %v770_v26 = vadd.f32 %v769_v0, %v5224_v18  ;;  %v1514_v31 = vmul.bf16 1061961548, %v1450_v10 }
 0x141   : > { %v1515_v15 = vmul.bf16 1061961548, %v1451_v5  ;;  %v1261_v17 = vmul.bf16 1027030327, %v5418_v63  ;;  %v1703_v25 = vmul.bf16 %v1639_v3, %v1191_v14  ;;  %v772_v33 = vadd.f32 %v771_v9, %v5227_v20 }
 0x142   : > { %v1324_v21 = vmul.bf16 %v1260_v12, %v5415_v59  ;;  %v1638_v41 = vadd.bf16 1065369472, %v4573_v22 }
 0x143   : > { %v775_v23 = vpop.f32.mrb[42].mxu0  ;;  %4578 = vtanh.bf16 %v1515_v15  ;;  %v1325_v32 = vmul.bf16 %v1261_v17, %v5418_v63 }
 0x144   : > { %v776_v27 = vadd.f32 %v775_v23, %v5224_v18  ;;  %v777_v28 = vpop.f32.mrb[43].mxu0  ;;  %1928 = vmatmul.mubr.bf16.gmra.mrb[148].mxu0 %v1700_v16  ;;  %v1388_v38 = vmul.bf16 %v1324_v21, %v5415_v59  ;;  %4580 = vtanh.bf16 %v1514_v31  ;;  %v1702_v56 = vmul.bf16 %v1638_v41, %v1190_v52 }
 0x145   : > { %v778_v36 = vadd.f32 %v777_v28, %v5227_v20  ;;  %1935 = vmatprep.mubr.bf16.mxu0 %v1703_v25  ;;  %v1389_v42 = vmul.bf16 %v1325_v32, %v5418_v63  ;;  %v1192_v32 = vmul.bf16 1056980736, %v5379_v45 }
 0x146   : > { %v5433_v40 = vpack.c.bf16 %v776_v27, %v770_v26  ;;  %v4575_v43 = vpop.eup %4574  ;;  %v1452_v50 = vadd.bf16 %v1388_v38, %v5415_v59  ;;  %v1195_v38 = vmul.bf16 1056980736, %v5400_v24 }
 0x147   : > { %v5436_v44 = vpack.c.bf16 %v778_v36, %v772_v33  ;;  %v781_v46 = vpop.f32.mrb[44].mxu0  ;;  %v1641_v53 = vadd.bf16 1065369472, %v4575_v43  ;;  %v1453_v54 = vadd.bf16 %v1389_v42, %v5418_v63  ;;  %v4577_v62 = vpop.eup %4576 }
 0x148   : > { %v783_v51 = vpop.f32.mrb[45].mxu0  ;;  %v1262_v60 = vmul.bf16 1027030327, %v5433_v40  ;;  %v782_v0 = vadd.f32 %v781_v46, %v5224_v18  ;;  %v1516_v9 = vmul.bf16 1061961548, %v1452_v50 }
 0x149   : > { %v1517_v57 = vmul.bf16 1061961548, %v1453_v54  ;;  %v1263_v58 = vmul.bf16 1027030327, %v5436_v44  ;;  %v1705_v5 = vmul.bf16 %v1641_v53, %v1193_v55  ;;  %v784_v15 = vadd.f32 %v783_v51, %v5227_v20 }
 0x14a   : > { %v1326_v14 = vmul.bf16 %v1262_v60, %v5433_v40  ;;  %v1640_v22 = vadd.bf16 1065369472, %v4577_v62 }
 0x14b   : > { %v787_v3 = vpop.f32.mrb[46].mxu0  ;;  %4582 = vtanh.bf16 %v1517_v57  ;;  %v1327_v12 = vmul.bf16 %v1263_v58, %v5436_v44 }
 0x14c   : > { %v788_v2 = vadd.f32 %v787_v3, %v5224_v18  ;;  %v789_v10 = vpop.f32.mrb[47].mxu0  ;;  %1936 = vmatmul.mubr.bf16.gmra.mrb[152].mxu0 %v1702_v56  ;;  %v1390_v25 = vmul.bf16 %v1326_v14, %v5433_v40  ;;  %4584 = vtanh.bf16 %v1516_v9  ;;  %v1704_v42 = vmul.bf16 %v1640_v22, %v1192_v32 }
 0x14d   : > { %v790_v16 = vadd.f32 %v789_v10, %v5227_v20  ;;  %1943 = vmatprep.mubr.bf16.mxu0 %v1705_v5  ;;  %v1391_v23 = vmul.bf16 %v1327_v12, %v5436_v44  ;;  %v1197_v22 = vmul.bf16 1056980736, %v5418_v63 }
 0x14e   : > { %v4579_v17 = vpop.eup %4578  ;;  %v5450_v21 = vpack.c.bf16 %v788_v2, %v782_v0  ;;  %v1454_v36 = vadd.bf16 %v1390_v25, %v5433_v40 }
 0x14f   : > { %v5454_v26 = vpack.c.bf16 %v790_v16, %v784_v15  ;;  %v793_v27 = vpop.f32.mrb[48].mxu0  ;;  %v1643_v28 = vadd.bf16 1065369472, %v4579_v17  ;;  %v1455_v33 = vadd.bf16 %v1391_v23, %v5436_v44  ;;  %v4581_v46 = vpop.eup %4580  ;;  %v1194_v16 = vmul.bf16 1056980736, %v5397_v19 }
 0x150   : > { %v795_v31 = vpop.f32.mrb[49].mxu0  ;;  %v1264_v53 = vmul.bf16 1027030327, %v5450_v21  ;;  %v794_v54 = vadd.f32 %v793_v27, %v5224_v18  ;;  %v1518_v57 = vmul.bf16 1061961548, %v1454_v36 }
 0x151   : > { %v1265_v41 = vmul.bf16 1027030327, %v5454_v26  ;;  %v1519_v43 = vmul.bf16 1061961548, %v1455_v33  ;;  %v1707_v51 = vmul.bf16 %v1643_v28, %v1195_v38  ;;  %v796_v58 = vadd.f32 %v795_v31, %v5227_v20 }
 0x152   : > { %v1328_v0 = vmul.bf16 %v1264_v53, %v5450_v21  ;;  %v1642_v5 = vadd.bf16 1065369472, %v4581_v46 }
 0x153   : > { %v799_v50 = vpop.f32.mrb[50].mxu0  ;;  %v1329_v52 = vmul.bf16 %v1265_v41, %v5454_v26  ;;  %4586 = vtanh.bf16 %v1519_v43 }
 0x154   : > { %v800_v55 = vadd.f32 %v799_v50, %v5224_v18  ;;  %v801_v56 = vpop.f32.mrb[51].mxu0  ;;  %1944 = vmatmul.mubr.bf16.gmra.mrb[156].mxu0 %v1704_v42  ;;  %v1392_v14 = vmul.bf16 %v1328_v0, %v5450_v21  ;;  %4588 = vtanh.bf16 %v1518_v57  ;;  %v1706_v27 = vmul.bf16 %v1642_v5, %v1194_v16 }
 0x155   : > { %v802_v60 = vadd.f32 %v801_v56, %v5227_v20  ;;  %1951 = vmatprep.mubr.bf16.mxu0 %v1707_v51  ;;  %v1393_v62 = vmul.bf16 %v1329_v52, %v5454_v26  ;;  %v1196_v0 = vmul.bf16 1056980736, %v5415_v59 }
 0x156   : > { %v5469_v3 = vpack.c.bf16 %v800_v55, %v794_v54  ;;  %v4583_v9 = vpop.eup %4582  ;;  %v1456_v25 = vadd.bf16 %v1392_v14, %v5450_v21 }
 0x157   : > { %v5471_v2 = vpack.c.bf16 %v802_v60, %v796_v58  ;;  %v805_v10 = vpop.f32.mrb[52].mxu0  ;;  %v1457_v12 = vadd.bf16 %v1393_v62, %v5454_v26  ;;  %v1645_v17 = vadd.bf16 1065369472, %v4583_v9  ;;  %v4585_v32 = vpop.eup %4584 }
 0x158   : > { %v807_v15 = vpop.f32.mrb[53].mxu0  ;;  %v1266_v31 = vmul.bf16 1027030327, %v5469_v3  ;;  %v1520_v38 = vmul.bf16 1061961548, %v1456_v25  ;;  %v806_v41 = vadd.f32 %v805_v10, %v5224_v18 }
 0x159   : > { %v1521_v23 = vmul.bf16 1061961548, %v1457_v12  ;;  %v1267_v28 = vmul.bf16 1027030327, %v5471_v2  ;;  %v1709_v36 = vmul.bf16 %v1645_v17, %v1197_v22  ;;  %v808_v51 = vadd.f32 %v807_v15, %v5227_v20 }
 0x15a   : > { %v1330_v50 = vmul.bf16 %v1266_v31, %v5469_v3  ;;  %v1644_v54 = vadd.bf16 1065369472, %v4585_v32  ;;  %v1199_v12 = vmul.bf16 1056980736, %v5436_v44 }
 0x15b   : > { %v811_v33 = vpop.f32.mrb[54].mxu0  ;;  %4590 = vtanh.bf16 %v1521_v23  ;;  %v1331_v46 = vmul.bf16 %v1267_v28, %v5471_v2 }
 0x15c   : > { %v812_v42 = vadd.f32 %v811_v33, %v5224_v18  ;;  %v813_v43 = vpop.f32.mrb[55].mxu0  ;;  %1952 = vmatmul.mubr.bf16.gmra.mrb[160].mxu0 %v1706_v27  ;;  %4592 = vtanh.bf16 %v1520_v38  ;;  %v1394_v56 = vmul.bf16 %v1330_v50, %v5469_v3  ;;  %v1708_v15 = vmul.bf16 %v1644_v54, %v1196_v0 }
 0x15d   : > { %v814_v52 = vadd.f32 %v813_v43, %v5227_v20  ;;  %1959 = vmatprep.mubr.bf16.mxu0 %v1709_v36  ;;  %v1395_v55 = vmul.bf16 %v1331_v46, %v5471_v2  ;;  %v1201_v50 = vmul.bf16 1056980736, %v5454_v26  ;;  %v1198_v0 = vmul.bf16 1056980736, %v5433_v40 }
 0x15e   : > { %v5486_v53 = vpack.c.bf16 %v812_v42, %v806_v41  ;;  %v4587_v57 = vpop.eup %4586  ;;  %v1458_v10 = vadd.bf16 %v1394_v56, %v5469_v3 }
 0x15f   : > { %v5490_v58 = vpack.c.bf16 %v814_v52, %v808_v51  ;;  %v817_v60 = vpop.f32.mrb[56].mxu0  ;;  %v1647_v5 = vadd.bf16 1065369472, %v4587_v57  ;;  %v1459_v9 = vadd.bf16 %v1395_v55, %v5471_v2  ;;  %v4589_v22 = vpop.eup %4588 }
 0x160   : > { %v819_v62 = vpop.f32.mrb[57].mxu0  ;;  %v1522_v17 = vmul.bf16 1061961548, %v1458_v10  ;;  %v1268_v28 = vmul.bf16 1027030327, %v5486_v53  ;;  %v818_v31 = vadd.f32 %v817_v60, %v5224_v18 }
 0x161   : > { %v1269_v14 = vmul.bf16 1027030327, %v5490_v58  ;;  %v1523_v16 = vmul.bf16 1061961548, %v1459_v9  ;;  %v1711_v25 = vmul.bf16 %v1647_v5, %v1199_v12  ;;  %v820_v32 = vadd.f32 %v819_v62, %v5227_v20 }
 0x162   : > { %v1332_v42 = vmul.bf16 %v1268_v28, %v5486_v53  ;;  %v1646_v51 = vadd.bf16 1065369472, %v4589_v22  ;;  %v1200_v10 = vmul.bf16 1056980736, %v5450_v21 }
 0x163   : > { %v823_v23 = vpop.f32.mrb[58].mxu0  ;;  %v1333_v27 = vmul.bf16 %v1269_v14, %v5490_v58  ;;  %4594 = vtanh.bf16 %v1523_v16  ;;  %v4522_v16 = vld [vmem:[%s6668_s5] sm:$0xff]  }
 0x164   : > { %v824_v33 = vadd.f32 %v823_v23, %v5224_v18  ;;  %v825_v36 = vpop.f32.mrb[59].mxu0  ;;  %1960 = vmatmul.mubr.bf16.gmra.mrb[164].mxu0 %v1708_v15  ;;  %4596 = vtanh.bf16 %v1522_v17  ;;  %v1396_v57 = vmul.bf16 %v1332_v42, %v5486_v53  ;;  %v1710_v15 = vmul.bf16 %v1646_v51, %v1198_v0 }
 0x165   : > { %v826_v38 = vadd.f32 %v825_v36, %v5227_v20  ;;  %1967 = vmatprep.mubr.bf16.mxu0 %v1711_v25  ;;  %v1397_v41 = vmul.bf16 %v1333_v27, %v5490_v58 }
 0x166   : > { %v4591_v43 = vpop.eup %4590  ;;  %v5505_v46 = vpack.c.bf16 %v824_v33, %v818_v31  ;;  %v1460_v17 = vadd.bf16 %v1396_v57, %v5486_v53 }
 0x167   : > { %v5508_v52 = vpack.c.bf16 %v826_v38, %v820_v32  ;;  %v829_v54 = vpop.f32.mrb[60].mxu0  ;;  %v1649_v55 = vadd.bf16 1065369472, %v4591_v43  ;;  %v1461_v56 = vadd.bf16 %v1397_v41, %v5490_v58  ;;  %v4593_v60 = vpop.eup %4592 }
 0x168   : > { %v831_v62 = vpop.f32.mrb[61].mxu0  ;;  %v1270_v5 = vmul.bf16 1027030327, %v5505_v46  ;;  %v1648_v12 = vadd.bf16 1065369472, %v4593_v60  ;;  %v830_v25 = vadd.f32 %v829_v54, %v5224_v18 }
 0x169   : > { %v1713_v9 = vmul.bf16 %v1649_v55, %v1201_v50  ;;  %v1525_v14 = vmul.bf16 1061961548, %v1461_v56  ;;  %v1271_v22 = vmul.bf16 1027030327, %v5508_v52  ;;  %v1524_v33 = vmul.bf16 1061961548, %v1460_v17 }
 0x16a   : > { %v1334_v23 = vmul.bf16 %v1270_v5, %v5505_v46  ;;  %v1712_v28 = vmul.bf16 %v1648_v12, %v1200_v10  ;;  %v832_v41 = vadd.f32 %v831_v62, %v5227_v20  ;;  %v4523_v50 = vld [vmem:[%s6668_s5 + $0x8] sm:$0xff]   ;;  %v1203_v60 = vmul.bf16 1056980736, %v5471_v2  ;;  %v4524_v17 = vld [vmem:[%s6668_s5 + $0x10] sm:$0xff]  }
 0x16b   : > { %v835_v27 = vpop.f32.mrb[62].mxu0  ;;  %1975 = vmatprep.mubr.bf16.mxu1 %v1713_v9  ;;  %4598 = vtanh.bf16 %v1525_v14  ;;  %v1335_v36 = vmul.bf16 %v1271_v22, %v5508_v52  ;;  %v1202_v12 = vmul.bf16 1056980736, %v5469_v3 }
 0x16c   : > { %v836_v31 = vadd.f32 %v835_v27, %v5224_v18  ;;  %v837_v32 = vpop.f32.mrb[63].mxu0  ;;  %1968 = vmatmul.mubr.bf16.gmra.mrb[168].mxu0 %v1710_v15  ;;  %v1398_v38 = vmul.bf16 %v1334_v23, %v5505_v46  ;;  %1976 = vmatmul.mubr.bf16.vlgmr.msra.gmra.mrb[0].mxu1 %v1712_v28  ;;  %4600 = vtanh.bf16 %v1524_v33 }
 0x16d   : > { %v838_v42 = vadd.f32 %v837_v32, %v5227_v20  ;;  %3191 = vmatpush1.bf16.msra.mxu1 %v4522_v16  ;;  %v1399_v51 = vmul.bf16 %v1335_v36, %v5508_v52 }
 0x16e   : > { %v5527_v43 = vpack.c.bf16 %v836_v31, %v830_v25  ;;  %v1462_v54 = vadd.bf16 %v1398_v38, %v5505_v46  ;;  %v4595_v55 = vpop.eup %4594  ;;  %3192 = vmatprep.subr.bf16.mxu1 %v6673_v4 }
 0x16f   : > { %v5534_v56 = vpack.c.bf16 %v838_v42, %v832_v41  ;;  %v841_v57 = vpop.f32.mrb[64].mxu0  ;;  %v4597_v62 = vpop.eup %4596  ;;  %v1651_v5 = vadd.bf16 1065369472, %v4595_v55  ;;  %v1463_v9 = vadd.bf16 %v1399_v51, %v5508_v52  ;;  %v4525_v55 = vld [vmem:[%s6668_s5 + $0x18] sm:$0xff]  }
 0x170   : > { %v843_v0 = vpop.f32.mrb[65].mxu0  ;;  %v1526_v10 = vmul.bf16 1061961548, %v1462_v54  ;;  %v1650_v14 = vadd.bf16 1065369472, %v4597_v62  ;;  %v842_v31 = vadd.f32 %v841_v57, %v5224_v18 }
 0x171   : > { %v1273_v15 = vmul.bf16 1027030327, %v5534_v56  ;;  %v1715_v16 = vmul.bf16 %v1651_v5, %v1203_v60  ;;  %3193 = vmatpush1.bf16.msra.mxu1 %v4523_v50  ;;  %v1527_v22 = vmul.bf16 1061961548, %v1463_v9  ;;  %v1272_v28 = vmul.bf16 1027030327, %v5527_v43 }
 0x172   : > { %4602 = vtanh.bf16 %v1526_v10  ;;  %v1714_v25 = vmul.bf16 %v1650_v14, %v1202_v12  ;;  %3194 = vmatprep.subr.bf16.mxu1 %v6673_v4  ;;  %v844_v36 = vadd.f32 %v843_v0, %v5227_v20  ;;  %v1205_v54 = vmul.bf16 1056980736, %v5490_v58 }
 0x173   : > { %v847_v23 = vpop.f32.mrb[66].mxu0  ;;  %v1337_v27 = vmul.bf16 %v1273_v15, %v5534_v56  ;;  %1983 = vmatprep.mubr.bf16.mxu1 %v1715_v16  ;;  %4604 = vtanh.bf16 %v1527_v22  ;;  %v1336_v42 = vmul.bf16 %v1272_v28, %v5527_v43  ;;  %v1204_v22 = vmul.bf16 1056980736, %v5486_v53 }
 0x174   : > { %v848_v32 = vadd.f32 %v847_v23, %v5224_v18  ;;  %v849_v33 = vpop.f32.mrb[67].mxu0  ;;  %1984 = vmatmul.mubr.bf16.gmra.mrb[4].mxu1 %v1714_v25 }
 0x175   : > { %v850_v38 = vadd.f32 %v849_v33, %v5227_v20  ;;  %v1401_v41 = vmul.bf16 %v1337_v27, %v5534_v56  ;;  %3195 = vmatpush1.bf16.msra.mxu1 %v4524_v17  ;;  %v1400_v5 = vmul.bf16 %v1336_v42, %v5527_v43  ;;  %v4536_v17 = vld [vmem:[%s6669_s6] sm:$0xff]  }
 0x176   : > { %v4599_v50 = vpop.eup %4598  ;;  %v5553_v51 = vpack.c.bf16 %v848_v32, %v842_v31  ;;  %3196 = vmatprep.subr.bf16.mxu1 %v6673_v4  ;;  %v4526_v33 = vld [vmem:[%s6668_s5 + $0x20] sm:$0xff]   ;;  %4351 = vmatprep.subr.bf16.mxu0 %v4536_v17 }
 0x177   : > { %v5559_v57 = vpack.c.bf16 %v850_v38, %v844_v36  ;;  %v853_v60 = vpop.f32.mrb[68].mxu0  ;;  %v1653_v62 = vadd.bf16 1065369472, %v4599_v50  ;;  %v1465_v0 = vadd.bf16 %v1401_v41, %v5534_v56  ;;  %v4601_v12 = vpop.eup %4600  ;;  %v1464_v16 = vadd.bf16 %v1400_v5, %v5527_v43  ;;  %4352 = vmatpush3.bf16.msra.mxu0 %v4536_v17 }
 0x178   : > { %6709 = vst [vmem:[#allocation6_spill] sm:$0xff] %v5553_v51  ;;  %v855_v9 = vpop.f32.mrb[69].mxu0  ;;  %v1274_v10 = vmul.bf16 1027030327, %v5553_v51  ;;  %v1652_v23 = vadd.bf16 1065369472, %v4601_v12  ;;  %v854_v28 = vadd.f32 %v853_v60, %v5224_v18 }
 0x179   : > { %v1717_v14 = vmul.bf16 %v1653_v62, %v1205_v54  ;;  %v1529_v15 = vmul.bf16 1061961548, %v1465_v0  ;;  %3197 = vmatpush1.bf16.msra.mxu1 %v4525_v55  ;;  %v1275_v25 = vmul.bf16 1027030327, %v5559_v57  ;;  %v1528_v32 = vmul.bf16 1061961548, %v1464_v16 }
 0x17a   : > { %v1338_v27 = vmul.bf16 %v1274_v10, %v5553_v51  ;;  %3198 = vmatprep.subr.bf16.mxu1 %v6673_v4  ;;  %v1716_v41 = vmul.bf16 %v1652_v23, %v1204_v22  ;;  %v856_v55 = vadd.f32 %v855_v9, %v5227_v20  ;;  %v4537_v62 = vld [vmem:[%s6669_s6 + $0x8] sm:$0xff]   ;;  %v1207_v9 = vmul.bf16 1056980736, %v5508_v52 }
 0x17b   : > { %v859_v31 = vpop.f32.mrb[70].mxu0  ;;  %1991 = vmatprep.mubr.bf16.mxu1 %v1717_v14  ;;  %4606 = vtanh.bf16 %v1529_v15  ;;  %v1339_v42 = vmul.bf16 %v1275_v25, %v5559_v57  ;;  %v4527_v16 = vld [vmem:[%s6668_s5 + $0x28] sm:$0xff]   ;;  %4353 = vmatprep.subr.bf16.mxu0 %v4537_v62 }
 0x17c   : > { %v860_v36 = vadd.f32 %v859_v31, %v5224_v18  ;;  %v861_v38 = vpop.f32.mrb[71].mxu0  ;;  %v1402_v50 = vmul.bf16 %v1338_v27, %v5553_v51  ;;  %4608 = vtanh.bf16 %v1528_v32  ;;  %1992 = vmatmul.mubr.bf16.gmra.mrb[8].mxu1 %v1716_v41  ;;  %4354 = vmatpush3.bf16.msra.mxu0 %v4537_v62  ;;  %v1206_v32 = vmul.bf16 1056980736, %v5505_v46 }
 0x17d   : > { %v4603_v54 = vpop.eup %4602  ;;  %v862_v60 = vadd.f32 %v861_v38, %v5227_v20  ;;  %v1403_v5 = vmul.bf16 %v1339_v42, %v5559_v57  ;;  %3199 = vmatpush1.bf16.msra.mxu1 %v4526_v33 }
 0x17e   : > { %v5585_v0 = vpack.c.bf16 %v860_v36, %v854_v28  ;;  %v1466_v10 = vadd.bf16 %v1402_v50, %v5553_v51  ;;  %v4605_v12 = vpop.eup %4604  ;;  %v1654_v23 = vadd.bf16 1065369472, %v4603_v54  ;;  %3200 = vmatprep.subr.bf16.mxu1 %v6673_v4  ;;  %v4528_v50 = vld [vmem:[%s6668_s5 + $0x30] sm:$0xff]  }
 0x17f   : > { %v5589_v14 = vpack.c.bf16 %v862_v60, %v856_v55  ;;  %v865_v15 = vpop.f32.mrb[72].mxu0  ;;  %v1655_v22 = vadd.bf16 1065369472, %v4605_v12  ;;  %v1467_v25 = vadd.bf16 %v1403_v5, %v5559_v57  ;;  %v4538_v54 = vld [vmem:[%s6669_s6 + $0x10] sm:$0xff]  }
 0x180   : > { %6710 = vst [vmem:[#allocation7_spill] sm:$0xff] %v5585_v0  ;;  %v867_v17 = vpop.f32.mrb[73].mxu0  ;;  %v1530_v27 = vmul.bf16 1061961548, %v1466_v10  ;;  %v1276_v36 = vmul.bf16 1027030327, %v5585_v0  ;;  %v866_v38 = vadd.f32 %v865_v15, %v5224_v18  ;;  %v1718_v62 = vmul.bf16 %v1654_v23, %v1206_v32  ;;  %4355 = vmatprep.subr.bf16.mxu0 %v4538_v54 }
 0x181   : > { %6711 = vst [vmem:[#allocation8_spill] sm:$0xff] %v5589_v14  ;;  %v1277_v28 = vmul.bf16 1027030327, %v5589_v14  ;;  %v1719_v31 = vmul.bf16 %v1655_v22, %v1207_v9  ;;  %v1531_v33 = vmul.bf16 1061961548, %v1467_v25  ;;  %3201 = vmatpush1.bf16.msra.mxu1 %v4527_v16  ;;  %v868_v10 = vadd.f32 %v867_v17, %v5227_v20  ;;  %v4540_v9 = vld [vmem:[%s6669_s6 + $0x18] sm:$0xff]   ;;  %4356 = vmatpush3.bf16.msra.mxu0 %v4538_v54 }
 0x182   : > { %4610 = vtanh.bf16 %v1530_v27  ;;  %v1340_v5 = vmul.bf16 %v1276_v36, %v5585_v0  ;;  %3202 = vmatprep.subr.bf16.mxu1 %v6673_v4  ;;  %v1209_v17 = vmul.bf16 1056980736, %v5534_v56  ;;  %v4529_v32 = vld [vmem:[%s6668_s5 + $0x38] sm:$0xff]   ;;  %4357 = vmatprep.subr.bf16.mxu0 %v4540_v9 }
 0x183   : > { %v871_v41 = vpop.f32.mrb[74].mxu0  ;;  %v1341_v42 = vmul.bf16 %v1277_v28, %v5589_v14  ;;  %1999 = vmatprep.mubr.bf16.mxu1 %v1719_v31  ;;  %4612 = vtanh.bf16 %v1531_v33 }
 0x184   : > { %v872_v55 = vadd.f32 %v871_v41, %v5224_v18  ;;  %v873_v60 = vpop.f32.mrb[75].mxu0  ;;  %2000 = vmatmul.mubr.bf16.gmra.mrb[12].mxu1 %v1718_v62  ;;  %v1404_v23 = vmul.bf16 %v1340_v5, %v5585_v0 }
 0x185   : > { %v874_v12 = vadd.f32 %v873_v60, %v5227_v20  ;;  %v1405_v15 = vmul.bf16 %v1341_v42, %v5589_v14  ;;  %3203 = vmatpush1.bf16.msra.mxu1 %v4528_v50  ;;  %v4541_v50 = vld [vmem:[%s6669_s6 + $0x20] sm:$0xff]   ;;  %4358 = vmatpush3.bf16.msra.mxu0 %v4540_v9 }
 0x186   : > { %v4607_v16 = vpop.eup %4606  ;;  %v5617_v22 = vpack.c.bf16 %v872_v55, %v866_v38  ;;  %v1208_v38 = vmul.bf16 1056980736, %v5527_v43  ;;  %v1468_v41 = vadd.bf16 %v1404_v23, %v5585_v0  ;;  %3204 = vmatprep.subr.bf16.mxu1 %v6673_v4  ;;  %v4530_v23 = vld [vmem:[%s6668_s5 + $0x40] sm:$0xff]   ;;  %4359 = vmatprep.subr.bf16.mxu0 %v4541_v50 }
 0x187   : > { %v5620_v25 = vpack.c.bf16 %v874_v12, %v868_v10  ;;  %v877_v27 = vpop.f32.mrb[76].mxu0  ;;  %v1657_v28 = vadd.bf16 1065369472, %v4607_v16  ;;  %v1469_v31 = vadd.bf16 %v1405_v15, %v5589_v14  ;;  %v4609_v33 = vpop.eup %4608 }
 0x188   : > { %6712 = vst [vmem:[#allocation9_spill] sm:$0xff] %v5617_v22  ;;  %v879_v36 = vpop.f32.mrb[77].mxu0  ;;  %v1278_v42 = vmul.bf16 1027030327, %v5617_v22  ;;  %v1656_v55 = vadd.bf16 1065369472, %v4609_v33  ;;  %v878_v12 = vadd.f32 %v877_v27, %v5224_v18 }
 0x189   : > { %6713 = vst [vmem:[#allocation10_spill] sm:$0xff] %v5620_v25  ;;  %v1721_v54 = vmul.bf16 %v1657_v28, %v1209_v17  ;;  %v1533_v60 = vmul.bf16 1061961548, %v1469_v31  ;;  %v1532_v62 = vmul.bf16 1061961548, %v1468_v41  ;;  %3205 = vmatpush1.bf16.msra.mxu1 %v4529_v32  ;;  %v880_v9 = vadd.f32 %v879_v36, %v5227_v20  ;;  %v4543_v32 = vld [vmem:[%s6669_s6 + $0x28] sm:$0xff]   ;;  %4360 = vmatpush3.bf16.msra.mxu0 %v4541_v50 }
 0x18a   : > { %v1279_v5 = vmul.bf16 1027030327, %v5620_v25  ;;  %v1342_v10 = vmul.bf16 %v1278_v42, %v5617_v22  ;;  %v1720_v16 = vmul.bf16 %v1656_v55, %v1208_v38  ;;  %3206 = vmatprep.subr.bf16.mxu1 %v6673_v4  ;;  %v1211_v36 = vmul.bf16 1056980736, %v5559_v57  ;;  %4361 = vmatprep.subr.bf16.mxu0 %v4543_v32 }
 0x18b   : > { %v883_v15 = vpop.f32.mrb[78].mxu0  ;;  %2007 = vmatprep.mubr.bf16.mxu1 %v1721_v54  ;;  %4614 = vtanh.bf16 %v1533_v60 }
 0x18c   : > { %v884_v17 = vadd.f32 %v883_v15, %v5224_v18  ;;  %v885_v28 = vpop.f32.mrb[79].mxu0  ;;  %4616 = vtanh.bf16 %v1532_v62  ;;  %v1343_v31 = vmul.bf16 %v1279_v5, %v5620_v25  ;;  %v1406_v33 = vmul.bf16 %v1342_v10, %v5617_v22  ;;  %2008 = vmatmul.mubr.bf16.gmra.mrb[16].mxu1 %v1720_v16  ;;  %v4531_v10 = vld [vmem:[%s6668_s5 + $0x48] sm:$0xff]  }
 0x18d   : > { %v886_v27 = vadd.f32 %v885_v28, %v5227_v20  ;;  %v4611_v38 = vpop.eup %4610  ;;  %3207 = vmatpush1.bf16.msra.mxu1 %v4530_v23  ;;  %4362 = vmatpush3.bf16.msra.mxu0 %v4543_v32  ;;  %v4544_v23 = vld [vmem:[%s6669_s6 + $0x30] sm:$0xff]  }
 0x18e   : > { %v5649_v41 = vpack.c.bf16 %v884_v17, %v878_v12  ;;  %v1407_v42 = vmul.bf16 %v1343_v31, %v5620_v25  ;;  %v1470_v54 = vadd.bf16 %v1406_v33, %v5617_v22  ;;  %v4613_v55 = vpop.eup %4612  ;;  %v1658_v5 = vadd.bf16 1065369472, %v4611_v38  ;;  %3208 = vmatprep.subr.bf16.mxu1 %v6673_v4  ;;  %4363 = vmatprep.subr.bf16.mxu0 %v4544_v23 }
 0x18f   : > { %v5653_v60 = vpack.c.bf16 %v886_v27, %v880_v9  ;;  %v889_v62 = vpop.f32.mrb[80].mxu0  ;;  %v1659_v15 = vadd.bf16 1065369472, %v4613_v55  ;;  %v1210_v31 = vmul.bf16 1056980736, %v5553_v51 }
 0x190   : > { %6714 = vst [vmem:[#allocation11_spill] sm:$0xff] %v5649_v41  ;;  %v891_v12 = vpop.f32.mrb[81].mxu0  ;;  %v1471_v16 = vadd.bf16 %v1407_v42, %v5620_v25  ;;  %v1534_v17 = vmul.bf16 1061961548, %v1470_v54  ;;  %v1280_v38 = vmul.bf16 1027030327, %v5649_v41  ;;  %v890_v54 = vadd.f32 %v889_v62, %v5224_v18 }
 0x191   : > { %6715 = vst [vmem:[#allocation12_spill] sm:$0xff] %v5653_v60  ;;  %v1281_v50 = vmul.bf16 1027030327, %v5653_v60  ;;  %v1723_v28 = vmul.bf16 %v1659_v15, %v1211_v36  ;;  %3209 = vmatpush1.bf16.msra.mxu1 %v4531_v10  ;;  %v4532_v42 = vld [vmem:[%s6668_s5 + $0x50] sm:$0xff]   ;;  %v1722_v36 = vmul.bf16 %v1658_v5, %v1210_v31  ;;  %v892_v15 = vadd.f32 %v891_v12, %v5227_v20  ;;  %v4545_v5 = vld [vmem:[%s6669_s6 + $0x38] sm:$0xff]  }
 0x192   : > { %v1535_v33 = vmul.bf16 1061961548, %v1471_v16  ;;  %4618 = vtanh.bf16 %v1534_v17  ;;  %3210 = vmatprep.subr.bf16.mxu1 %v6673_v4  ;;  %v1344_v17 = vmul.bf16 %v1280_v38, %v5649_v41  ;;  %v1213_v62 = vmul.bf16 1056980736, %v5589_v14  ;;  %4364 = vmatpush3.bf16.msra.mxu0 %v4544_v23  ;;  %v4533_v38 = vld [vmem:[%s6668_s5 + $0x58] sm:$0xff]  }
 0x193   : > { %v895_v9 = vpop.f32.mrb[82].mxu0  ;;  %v1345_v27 = vmul.bf16 %v1281_v50, %v5653_v60  ;;  %2015 = vmatprep.mubr.bf16.mxu1 %v1723_v28  ;;  %4365 = vmatprep.subr.bf16.mxu0 %v4545_v5 }
 0x194   : > { %v896_v55 = vadd.f32 %v895_v9, %v5224_v18  ;;  %v897_v32 = vpop.f32.mrb[83].mxu0  ;;  %4620 = vtanh.bf16 %v1535_v33  ;;  %2016 = vmatmul.mubr.bf16.gmra.mrb[20].mxu1 %v1722_v36 }
 0x195   : > { %v898_v16 = vadd.f32 %v897_v32, %v5227_v20  ;;  %v1409_v10 = vmul.bf16 %v1345_v27, %v5653_v60  ;;  %v1408_v27 = vmul.bf16 %v1344_v17, %v5649_v41  ;;  %3211 = vmatpush1.bf16.msra.mxu1 %v4532_v42 }
 0x196   : > { %v4615_v50 = vpop.eup %4614  ;;  %v5678_v51 = vpack.c.bf16 %v896_v55, %v890_v54  ;;  %3212 = vmatprep.subr.bf16.mxu1 %v6673_v4  ;;  %4366 = vmatpush3.bf16.msra.mxu0 %v4545_v5  ;;  %v6718_v5 = vmov 0  }
 0x197   : > { %v4617_v28 = vpop.eup %4616  ;;  %v5684_v12 = vpack.c.bf16 %v898_v16, %v892_v15  ;;  %v901_v31 = vpop.f32.mrb[84].mxu0  ;;  %v1661_v33 = vadd.bf16 1065369472, %v4615_v50  ;;  %v1473_v9 = vadd.bf16 %v1409_v10, %v5653_v60  ;;  %v1472_v36 = vadd.bf16 %v1408_v27, %v5649_v41 }
 0x198   : > { %6716 = vst [vmem:[#allocation13_spill] sm:$0xff] %v5678_v51  ;;  %v903_v54 = vpop.f32.mrb[85].mxu0  ;;  %v1660_v23 = vadd.bf16 1065369472, %v4617_v28  ;;  %v1212_v15 = vmul.bf16 1056980736, %v5585_v0  ;;  %v902_v42 = vadd.f32 %v901_v31, %v5224_v18 }
 0x199   : > { %6717 = vst [vmem:[#allocation14_spill] sm:$0xff] %v5684_v12  ;;  %v1725_v55 = vmul.bf16 %v1661_v33, %v1213_v62  ;;  %v1537_v32 = vmul.bf16 1061961548, %v1473_v9  ;;  %v1283_v16 = vmul.bf16 1027030327, %v5684_v12  ;;  %3213 = vmatpush1.bf16.msra.mxu1 %v4533_v38  ;;  %v4534_v62 = vld [vmem:[%s6668_s5 + $0x60] sm:$0xff]  }
 0x19a   : > { %v1282_v10 = vmul.bf16 1027030327, %v5678_v51  ;;  %v1536_v50 = vmul.bf16 1061961548, %v1472_v36  ;;  %v1724_v9 = vmul.bf16 %v1660_v23, %v1212_v15  ;;  %3214 = vmatprep.subr.bf16.mxu1 %v6718_v5 }
 0x19b   : > { %v907_v17 = vpop.f32.mrb[86].mxu0  ;;  %2023 = vmatprep.mubr.bf16.mxu1 %v1725_v55  ;;  %4622 = vtanh.bf16 %v1537_v32  ;;  %v1347_v27 = vmul.bf16 %v1283_v16, %v5684_v12  ;;  %v904_v55 = vadd.f32 %v903_v54, %v5227_v20  ;;  %v4535_v54 = vld [vmem:[%s6668_s5 + $0x68] sm:$0xff]  }
 0x19c   : > { %v908_v28 = vadd.f32 %v907_v17, %v5224_v18  ;;  %v909_v33 = vpop.f32.mrb[87].mxu0  ;;  %v1346_v4 = vmul.bf16 %v1282_v10, %v5678_v51  ;;  %4624 = vtanh.bf16 %v1536_v50  ;;  %2024 = vmatmul.mubr.bf16.gmra.mrb[24].mxu1 %v1724_v9  ;;  %v1215_v10 = vmul.bf16 1056980736, %v5620_v25 }
 0x19d   : > { %v4619_v31 = vpop.eup %4618  ;;  %v910_v32 = vadd.f32 %v909_v33, %v5227_v20  ;;  %v1411_v36 = vmul.bf16 %v1347_v27, %v5684_v12  ;;  %3215 = vmatpush1.bf16.msra.mxu1 %v4534_v62 }
 0x19e   : > { %v5706_v38 = vpack.c.bf16 %v908_v28, %v902_v42  ;;  %v1410_v17 = vmul.bf16 %v1346_v4, %v5678_v51  ;;  %v1662_v42 = vadd.bf16 1065369472, %v4619_v31  ;;  %3216 = vmatprep.subr.bf16.mxu1 %v6718_v5 }
 0x19f   : > { %v4621_v23 = vpop.eup %4620  ;;  %v5710_v15 = vpack.c.bf16 %v910_v32, %v904_v55  ;;  %v913_v16 = vpop.f32.mrb[88].mxu0  ;;  %v1475_v28 = vadd.bf16 %v1411_v36, %v5684_v12  ;;  %v1214_v55 = vmul.bf16 1056980736, %v5617_v22  ;;  %v4539_v36 = vld [vmem:[%s6668_s5 + $0x70] sm:$0xff]  }
 0x1a0   : > { %6719 = vst [vmem:[#allocation15_spill] sm:$0xff] %v5706_v38  ;;  %v915_v33 = vpop.f32.mrb[89].mxu0  ;;  %v1663_v50 = vadd.bf16 1065369472, %v4621_v23  ;;  %v1474_v4 = vadd.bf16 %v1410_v17, %v5678_v51  ;;  %v1284_v62 = vmul.bf16 1027030327, %v5706_v38  ;;  %v914_v25 = vadd.f32 %v913_v16, %v5224_v18 }
 0x1a1   : > { %6720 = vst [vmem:[#allocation16_spill] sm:$0xff] %v5710_v15  ;;  %v1285_v9 = vmul.bf16 1027030327, %v5710_v15  ;;  %v1539_v32 = vmul.bf16 1061961548, %v1475_v28  ;;  %3217 = vmatpush1.bf16.msra.mxu1 %v4535_v54  ;;  %v916_v16 = vadd.f32 %v915_v33, %v5227_v20 }
 0x1a2   : > { %v1727_v27 = vmul.bf16 %v1663_v50, %v1215_v10  ;;  %v1538_v14 = vmul.bf16 1061961548, %v1474_v4  ;;  %v1726_v10 = vmul.bf16 %v1662_v42, %v1214_v55  ;;  %v1348_v50 = vmul.bf16 %v1284_v62, %v5706_v38  ;;  %3218 = vmatprep.subr.bf16.mxu1 %v6718_v5 }
 0x1a3   : > { %v919_v0 = vpop.f32.mrb[90].mxu0  ;;  %v1349_v31 = vmul.bf16 %v1285_v9, %v5710_v15  ;;  %4626 = vtanh.bf16 %v1539_v32  ;;  %v1217_v55 = vmul.bf16 1056980736, %v5653_v60 }
 0x1a4   : > { %v920_v17 = vadd.f32 %v919_v0, %v5224_v18  ;;  %2031 = vmatprep.mubr.bf16.mxu1 %v1727_v27  ;;  %v921_v23 = vpop.f32.mrb[91].mxu0  ;;  %4628 = vtanh.bf16 %v1538_v14  ;;  %v1412_v0 = vmul.bf16 %v1348_v50, %v5706_v38  ;;  %v4542_v14 = vld [vmem:[%s6668_s5 + $0x78] sm:$0xff]  }
 0x1a5   : > { %v922_v28 = vadd.f32 %v921_v23, %v5227_v20  ;;  %v1413_v54 = vmul.bf16 %v1349_v31, %v5710_v15  ;;  %2032 = vmatmul.mubr.bf16.gmra.mrb[28].mxu1 %v1726_v10  ;;  %v1216_v10 = vmul.bf16 1056980736, %v5649_v41 }
 0x1a6   : > { %v4623_v4 = vpop.eup %4622  ;;  %v5733_v9 = vpack.c.bf16 %v920_v17, %v914_v25  ;;  %3219 = vmatpush1.bf16.msra.mxu1 %v4539_v36  ;;  %v1476_v25 = vadd.bf16 %v1412_v0, %v5706_v38 }
 0x1a7   : > { %v5736_v27 = vpack.c.bf16 %v922_v28, %v916_v16  ;;  %v925_v42 = vpop.f32.mrb[92].mxu0  ;;  %v1665_v32 = vadd.bf16 1065369472, %v4623_v4  ;;  %v1477_v62 = vadd.bf16 %v1413_v54, %v5710_v15  ;;  %v4625_v33 = vpop.eup %4624  ;;  %3220 = vmatprep.subr.bf16.mxu1 %v6718_v5 }
 0x1a8   : > { %6721 = vst [vmem:[#allocation17_spill] sm:$0xff] %v5733_v9  ;;  %v927_v31 = vpop.f32.mrb[93].mxu0  ;;  %v1286_v17 = vmul.bf16 1027030327, %v5733_v9  ;;  %v1664_v50 = vadd.bf16 1065369472, %v4625_v33  ;;  %v926_v4 = vadd.f32 %v925_v42, %v5224_v18 }
 0x1a9   : > { %6722 = vst [vmem:[#allocation18_spill] sm:$0xff] %v5736_v27  ;;  %v1729_v23 = vmul.bf16 %v1665_v32, %v1217_v55  ;;  %v1541_v16 = vmul.bf16 1061961548, %v1477_v62  ;;  %v1540_v28 = vmul.bf16 1061961548, %v1476_v25  ;;  %v928_v62 = vadd.f32 %v927_v31, %v5227_v20 }
 0x1aa   : > { %v1287_v36 = vmul.bf16 1027030327, %v5736_v27  ;;  %v1350_v54 = vmul.bf16 %v1286_v17, %v5733_v9  ;;  %v1728_v22 = vmul.bf16 %v1664_v50, %v1216_v10  ;;  %3221 = vmatpush1.bf16.msra.mxu1 %v4542_v14  ;;  %v1219_v10 = vmul.bf16 1056980736, %v5684_v12 }
 0x1ab   : > { %v931_v60 = vpop.f32.mrb[94].mxu0  ;;  %2039 = vmatprep.mubr.bf16.mxu1 %v1729_v23  ;;  %4630 = vtanh.bf16 %v1541_v16 }
 0x1ac   : > { %v932_v0 = vadd.f32 %v931_v60, %v5224_v18  ;;  %v933_v5 = vpop.f32.mrb[95].mxu0  ;;  %4632 = vtanh.bf16 %v1540_v28  ;;  %v1351_v55 = vmul.bf16 %v1287_v36, %v5736_v27  ;;  %v1414_v32 = vmul.bf16 %v1350_v54, %v5733_v9 }
 0x1ad   : > { %v934_v33 = vadd.f32 %v933_v5, %v5227_v20  ;;  %2040 = vmatmul.mubr.bf16.gmra.mrb[32].mxu1 %v1728_v22 }
 0x1ae   : > { %v5755_v25 = vpack.c.bf16 %v932_v0, %v926_v4  ;;  %v1415_v42 = vmul.bf16 %v1351_v55, %v5736_v27  ;;  %v1478_v17 = vadd.bf16 %v1414_v32, %v5733_v9  ;;  %v4627_v14 = vpop.eup %4626  ;;  %v1218_v0 = vmul.bf16 1056980736, %v5678_v51 }
 0x1af   : > { %v5759_v23 = vpack.c.bf16 %v934_v33, %v928_v62  ;;  %v937_v60 = vpop.f32.mrb[96].mxu0  ;;  %v4629_v50 = vpop.eup %4628  ;;  %v1667_v28 = vadd.bf16 1065369472, %v4627_v14 }
 0x1b0   : > { %6723 = vst [vmem:[#allocation19_spill] sm:$0xff] %v5755_v25  ;;  %v939_v16 = vpop.f32.mrb[97].mxu0  ;;  %v1479_v31 = vadd.bf16 %v1415_v42, %v5736_v27  ;;  %v1542_v36 = vmul.bf16 1061961548, %v1478_v17  ;;  %v1666_v54 = vadd.bf16 1065369472, %v4629_v50  ;;  %v938_v33 = vadd.f32 %v937_v60, %v5224_v18 }
 0x1b1   : > { %6724 = vst [vmem:[#allocation20_spill] sm:$0xff] %v5759_v23  ;;  %v1289_v4 = vmul.bf16 1027030327, %v5759_v23  ;;  %v1731_v22 = vmul.bf16 %v1667_v28, %v1219_v10  ;;  %v1288_v62 = vmul.bf16 1027030327, %v5755_v25  ;;  %v940_v50 = vadd.f32 %v939_v16, %v5227_v20 }
 0x1b2   : > { %v1543_v5 = vmul.bf16 1061961548, %v1479_v31  ;;  %4634 = vtanh.bf16 %v1542_v36  ;;  %v1730_v17 = vmul.bf16 %v1666_v54, %v1218_v0  ;;  %v1221_v60 = vmul.bf16 1056980736, %v5710_v15 }
 0x1b3   : > { %v943_v55 = vpop.f32.mrb[98].mxu0  ;;  %v1353_v32 = vmul.bf16 %v1289_v4, %v5759_v23  ;;  %2047 = vmatprep.mubr.bf16.mxu1 %v1731_v22  ;;  %v1352_v31 = vmul.bf16 %v1288_v62, %v5755_v25 }
 0x1b4   : > { %v944_v14 = vadd.f32 %v943_v55, %v5224_v18  ;;  %v945_v42 = vpop.f32.mrb[99].mxu0  ;;  %4636 = vtanh.bf16 %v1543_v5 }
 0x1b5   : > { %v946_v10 = vadd.f32 %v945_v42, %v5227_v20  ;;  %v1417_v28 = vmul.bf16 %v1353_v32, %v5759_v23  ;;  %2048 = vmatmul.mubr.bf16.gmra.mrb[36].mxu1 %v1730_v17  ;;  %v1416_v16 = vmul.bf16 %v1352_v31, %v5755_v25 }
 0x1b6   : > { %v4631_v36 = vpop.eup %4630  ;;  %v5773_v4 = vpack.c.bf16 %v944_v14, %v938_v33  ;;  %v1220_v33 = vmul.bf16 1056980736, %v5706_v38 }
 0x1b7   : > { %v4633_v51 = vpop.eup %4632  ;;  %v5776_v55 = vpack.c.bf16 %v946_v10, %v940_v50  ;;  %v949_v22 = vpop.f32.mrb[100].mxu0  ;;  %v1669_v54 = vadd.bf16 1065369472, %v4631_v36  ;;  %v1481_v0 = vadd.bf16 %v1417_v28, %v5759_v23  ;;  %v1480_v62 = vadd.bf16 %v1416_v16, %v5755_v25 }
 0x1b8   : > { %6725 = vst [vmem:[#allocation21_spill] sm:$0xff] %v5773_v4  ;;  %v951_v5 = vpop.f32.mrb[101].mxu0  ;;  %v1668_v42 = vadd.bf16 1065369472, %v4633_v51  ;;  %v1290_v17 = vmul.bf16 1027030327, %v5773_v4  ;;  %v950_v50 = vadd.f32 %v949_v22, %v5224_v18 }
 0x1b9   : > { %6726 = vst [vmem:[#allocation22_spill] sm:$0xff] %v5776_v55  ;;  %v1733_v32 = vmul.bf16 %v1669_v54, %v1221_v60  ;;  %v1545_v12 = vmul.bf16 1061961548, %v1481_v0  ;;  %v1291_v14 = vmul.bf16 1027030327, %v5776_v55  ;;  %v952_v16 = vadd.f32 %v951_v5, %v5227_v20 }
 0x1ba   : > { %v1544_v28 = vmul.bf16 1061961548, %v1480_v62  ;;  %v1732_v51 = vmul.bf16 %v1668_v42, %v1220_v33  ;;  %v1354_v54 = vmul.bf16 %v1290_v17, %v5773_v4  ;;  %v1223_v33 = vmul.bf16 1056980736, %v5736_v27 }
 0x1bb   : > { %v955_v10 = vpop.f32.mrb[102].mxu0  ;;  %2055 = vmatprep.mubr.bf16.mxu1 %v1733_v32  ;;  %4638 = vtanh.bf16 %v1545_v12  ;;  %v1355_v60 = vmul.bf16 %v1291_v14, %v5776_v55 }
 0x1bc   : > { %v956_v31 = vadd.f32 %v955_v10, %v5224_v18  ;;  %v957_v36 = vpop.f32.mrb[103].mxu0  ;;  %4640 = vtanh.bf16 %v1544_v28  ;;  %v1418_v22 = vmul.bf16 %v1354_v54, %v5773_v4 }
 0x1bd   : > { %v4635_v0 = vpop.eup %4634  ;;  %v958_v38 = vadd.f32 %v957_v36, %v5227_v20  ;;  %2056 = vmatmul.mubr.bf16.gmra.mrb[40].mxu1 %v1732_v51  ;;  %v1419_v12 = vmul.bf16 %v1355_v60, %v5776_v55  ;;  %v1222_v36 = vmul.bf16 1056980736, %v5733_v9 }
 0x1be   : > { %v5790_v15 = vpack.c.bf16 %v956_v31, %v950_v50  ;;  %v1670_v10 = vadd.bf16 1065369472, %v4635_v0  ;;  %v1482_v28 = vadd.bf16 %v1418_v22, %v5773_v4 }
 0x1bf   : > { %v4637_v32 = vpop.eup %4636  ;;  %v5794_v62 = vpack.c.bf16 %v958_v38, %v952_v16  ;;  %v961_v42 = vpop.f32.mrb[104].mxu0  ;;  %v1483_v5 = vadd.bf16 %v1419_v12, %v5776_v55 }
 0x1c0   : > { %6727 = vst [vmem:[#allocation23_spill] sm:$0xff] %v5790_v15  ;;  %v963_v14 = vpop.f32.mrb[105].mxu0  ;;  %v1671_v17 = vadd.bf16 1065369472, %v4637_v32  ;;  %v1292_v60 = vmul.bf16 1027030327, %v5790_v15  ;;  %v962_v38 = vadd.f32 %v961_v42, %v5224_v18  ;;  %v1734_v32 = vmul.bf16 %v1670_v10, %v1222_v36 }
 0x1c1   : > { %6728 = vst [vmem:[#allocation24_spill] sm:$0xff] %v5794_v62  ;;  %v1293_v50 = vmul.bf16 1027030327, %v5794_v62  ;;  %v1547_v51 = vmul.bf16 1061961548, %v1483_v5 }
 0x1c2   : > { %v1735_v31 = vmul.bf16 %v1671_v17, %v1223_v33  ;;  %v1546_v16 = vmul.bf16 1061961548, %v1482_v28  ;;  %v1356_v22 = vmul.bf16 %v1292_v60, %v5790_v15  ;;  %v964_v33 = vadd.f32 %v963_v14, %v5227_v20 }
 0x1c3   : > { %v967_v54 = vpop.f32.mrb[106].mxu0  ;;  %v1357_v27 = vmul.bf16 %v1293_v50, %v5794_v62  ;;  %4642 = vtanh.bf16 %v1547_v51  ;;  %v1225_v10 = vmul.bf16 1056980736, %v5759_v23 }
 0x1c4   : > { %v968_v0 = vadd.f32 %v967_v54, %v5224_v18  ;;  %2063 = vmatprep.mubr.bf16.mxu1 %v1735_v31  ;;  %v969_v12 = vpop.f32.mrb[107].mxu0  ;;  %4644 = vtanh.bf16 %v1546_v16  ;;  %v1420_v28 = vmul.bf16 %v1356_v22, %v5790_v15 }
 0x1c5   : > { %v970_v17 = vadd.f32 %v969_v12, %v5227_v20  ;;  %v1421_v5 = vmul.bf16 %v1357_v27, %v5794_v62  ;;  %2064 = vmatmul.mubr.bf16.gmra.mrb[44].mxu1 %v1734_v32 }
 0x1c6   : > { %v4639_v42 = vpop.eup %4638  ;;  %v5809_v9 = vpack.c.bf16 %v968_v0, %v962_v38  ;;  %v1484_v54 = vadd.bf16 %v1420_v28, %v5790_v15  ;;  %v1224_v38 = vmul.bf16 1056980736, %v5755_v25 }
 0x1c7   : > { %v5812_v50 = vpack.c.bf16 %v970_v17, %v964_v33  ;;  %v973_v31 = vpop.f32.mrb[108].mxu0  ;;  %v1673_v36 = vadd.bf16 1065369472, %v4639_v42  ;;  %v1485_v51 = vadd.bf16 %v1421_v5, %v5794_v62  ;;  %v4641_v14 = vpop.eup %4640 }
 0x1c8   : > { %6729 = vst [vmem:[#allocation25_spill] sm:$0xff] %v5809_v9  ;;  %v975_v60 = vpop.f32.mrb[109].mxu0  ;;  %v1294_v27 = vmul.bf16 1027030327, %v5809_v9  ;;  %v1672_v0 = vadd.bf16 1065369472, %v4641_v14  ;;  %v974_v17 = vadd.f32 %v973_v31, %v5224_v18 }
 0x1c9   : > { %6730 = vst [vmem:[#allocation26_spill] sm:$0xff] %v5812_v50  ;;  %v1737_v16 = vmul.bf16 %v1673_v36, %v1225_v10  ;;  %v1549_v12 = vmul.bf16 1061961548, %v1485_v51  ;;  %v1548_v32 = vmul.bf16 1061961548, %v1484_v54  ;;  %v976_v51 = vadd.f32 %v975_v60, %v5227_v20 }
 0x1ca   : > { %v1295_v22 = vmul.bf16 1027030327, %v5812_v50  ;;  %v1358_v33 = vmul.bf16 %v1294_v27, %v5809_v9  ;;  %v1736_v5 = vmul.bf16 %v1672_v0, %v1224_v38 }
 0x1cb   : > { %v979_v42 = vpop.f32.mrb[110].mxu0  ;;  %2071 = vmatprep.mubr.bf16.mxu1 %v1737_v16  ;;  %4646 = vtanh.bf16 %v1549_v12  ;;  %v1227_v12 = vmul.bf16 1056980736, %v5776_v55 }
 0x1cc   : > { %v980_v28 = vadd.f32 %v979_v42, %v5224_v18  ;;  %v981_v23 = vpop.f32.mrb[111].mxu0  ;;  %4648 = vtanh.bf16 %v1548_v32  ;;  %v1359_v10 = vmul.bf16 %v1295_v22, %v5812_v50  ;;  %v1422_v36 = vmul.bf16 %v1358_v33, %v5809_v9 }
 0x1cd   : > { %v982_v14 = vadd.f32 %v981_v23, %v5227_v20  ;;  %2072 = vmatmul.mubr.bf16.gmra.mrb[48].mxu1 %v1736_v5 }
 0x1ce   : > { %v5827_v54 = vpack.c.bf16 %v980_v28, %v974_v17  ;;  %v1423_v31 = vmul.bf16 %v1359_v10, %v5812_v50  ;;  %v1486_v27 = vadd.bf16 %v1422_v36, %v5809_v9  ;;  %v4643_v16 = vpop.eup %4642  ;;  %v1226_v28 = vmul.bf16 1056980736, %v5773_v4 }
 0x1cf   : > { %v5831_v38 = vpack.c.bf16 %v982_v14, %v976_v51  ;;  %v985_v0 = vpop.f32.mrb[112].mxu0  ;;  %v4645_v32 = vpop.eup %4644  ;;  %v1675_v33 = vadd.bf16 1065369472, %v4643_v16 }
 0x1d0   : > { %6731 = vst [vmem:[#allocation27_spill] sm:$0xff] %v5827_v54  ;;  %v987_v22 = vpop.f32.mrb[113].mxu0  ;;  %v1487_v60 = vadd.bf16 %v1423_v31, %v5812_v50  ;;  %v1550_v42 = vmul.bf16 1061961548, %v1486_v27  ;;  %v1674_v23 = vadd.bf16 1065369472, %v4645_v32  ;;  %v986_v55 = vadd.f32 %v985_v0, %v5224_v18 }
 0x1d1   : > { %6732 = vst [vmem:[#allocation28_spill] sm:$0xff] %v5831_v38  ;;  %v1297_v17 = vmul.bf16 1027030327, %v5831_v38  ;;  %v1739_v5 = vmul.bf16 %v1675_v33, %v1227_v12  ;;  %v1296_v14 = vmul.bf16 1027030327, %v5827_v54  ;;  %v988_v32 = vadd.f32 %v987_v22, %v5227_v20 }
 0x1d2   : > { %v1551_v10 = vmul.bf16 1061961548, %v1487_v60  ;;  %4650 = vtanh.bf16 %v1550_v42  ;;  %v1738_v27 = vmul.bf16 %v1674_v23, %v1226_v28  ;;  %v1229_v0 = vmul.bf16 1056980736, %v5794_v62 }
 0x1d3   : > { %v991_v36 = vpop.f32.mrb[114].mxu0  ;;  %v1361_v51 = vmul.bf16 %v1297_v17, %v5831_v38  ;;  %2079 = vmatprep.mubr.bf16.mxu1 %v1739_v5  ;;  %v1360_v60 = vmul.bf16 %v1296_v14, %v5827_v54 }
 0x1d4   : > { %v992_v16 = vadd.f32 %v991_v36, %v5224_v18  ;;  %v993_v31 = vpop.f32.mrb[115].mxu0  ;;  %4652 = vtanh.bf16 %v1551_v10 }
 0x1d5   : > { %v994_v12 = vadd.f32 %v993_v31, %v5227_v20  ;;  %v1425_v33 = vmul.bf16 %v1361_v51, %v5831_v38  ;;  %2080 = vmatmul.mubr.bf16.gmra.mrb[52].mxu1 %v1738_v27  ;;  %v1424_v22 = vmul.bf16 %v1360_v60, %v5827_v54 }
 0x1d6   : > { %v4647_v42 = vpop.eup %4646  ;;  %v5845_v17 = vpack.c.bf16 %v992_v16, %v986_v55  ;;  %v1228_v55 = vmul.bf16 1056980736, %v5790_v15 }
 0x1d7   : > { %v4649_v4 = vpop.eup %4648  ;;  %v5848_v36 = vpack.c.bf16 %v994_v12, %v988_v32  ;;  %v997_v5 = vpop.f32.mrb[116].mxu0  ;;  %v1677_v23 = vadd.bf16 1065369472, %v4647_v42  ;;  %v1489_v28 = vadd.bf16 %v1425_v33, %v5831_v38  ;;  %v1488_v14 = vadd.bf16 %v1424_v22, %v5827_v54 }
 0x1d8   : > { %6733 = vst [vmem:[#allocation29_spill] sm:$0xff] %v5845_v17  ;;  %v999_v10 = vpop.f32.mrb[117].mxu0  ;;  %v1676_v31 = vadd.bf16 1065369472, %v4649_v4  ;;  %v1298_v27 = vmul.bf16 1027030327, %v5845_v17  ;;  %v998_v32 = vadd.f32 %v997_v5, %v5224_v18 }
 0x1d9   : > { %6734 = vst [vmem:[#allocation30_spill] sm:$0xff] %v5848_v36  ;;  %v1741_v51 = vmul.bf16 %v1677_v23, %v1229_v0  ;;  %v1553_v25 = vmul.bf16 1061961548, %v1489_v28  ;;  %v1299_v16 = vmul.bf16 1027030327, %v5848_v36  ;;  %v1000_v22 = vadd.f32 %v999_v10, %v5227_v20 }
 0x1da   : > { %v1552_v33 = vmul.bf16 1061961548, %v1488_v14  ;;  %v1740_v4 = vmul.bf16 %v1676_v31, %v1228_v55  ;;  %v1362_v23 = vmul.bf16 %v1298_v27, %v5845_v17  ;;  %v1231_v55 = vmul.bf16 1056980736, %v5812_v50 }
 0x1db   : > { %v1003_v12 = vpop.f32.mrb[118].mxu0  ;;  %2087 = vmatprep.mubr.bf16.mxu1 %v1741_v51  ;;  %4654 = vtanh.bf16 %v1553_v25  ;;  %v1363_v0 = vmul.bf16 %v1299_v16, %v5848_v36 }
 0x1dc   : > { %v1004_v60 = vadd.f32 %v1003_v12, %v5224_v18  ;;  %v1005_v42 = vpop.f32.mrb[119].mxu0  ;;  %4656 = vtanh.bf16 %v1552_v33  ;;  %v1426_v5 = vmul.bf16 %v1362_v23, %v5845_v17 }
 0x1dd   : > { %v4651_v28 = vpop.eup %4650  ;;  %v1006_v15 = vadd.f32 %v1005_v42, %v5227_v20  ;;  %2088 = vmatmul.mubr.bf16.gmra.mrb[56].mxu1 %v1740_v4  ;;  %v1427_v25 = vmul.bf16 %v1363_v0, %v5848_v36  ;;  %v1230_v42 = vmul.bf16 1056980736, %v5809_v9 }
 0x1de   : > { %v5862_v62 = vpack.c.bf16 %v1004_v60, %v998_v32  ;;  %v1678_v12 = vadd.bf16 1065369472, %v4651_v28  ;;  %v1490_v33 = vadd.bf16 %v1426_v5, %v5845_v17 }
 0x1df   : > { %v4653_v51 = vpop.eup %4652  ;;  %v5866_v14 = vpack.c.bf16 %v1006_v15, %v1000_v22  ;;  %v1009_v31 = vpop.f32.mrb[120].mxu0  ;;  %v1491_v10 = vadd.bf16 %v1427_v25, %v5848_v36  ;;  %v1128_v22 = vld [vmem:[%s6667_s4] sm:$0x1] }
 0x1e0   : > { %6735 = vst [vmem:[#allocation31_spill] sm:$0xff] %v5862_v62  ;;  %v1011_v16 = vpop.f32.mrb[121].mxu0  ;;  %v1679_v27 = vadd.bf16 1065369472, %v4653_v51  ;;  %v1300_v0 = vmul.bf16 1027030327, %v5862_v62  ;;  %v1010_v15 = vadd.f32 %v1009_v31, %v5224_v18 }
 0x1e1   : > { %6736 = vst [vmem:[#allocation32_spill] sm:$0xff] %v5866_v14  ;;  %v1301_v32 = vmul.bf16 1027030327, %v5866_v14  ;;  %v1555_v4 = vmul.bf16 1061961548, %v1491_v10  ;;  %v1012_v10 = vadd.f32 %v1011_v16, %v5227_v20 }
 0x1e2   : > { %v1743_v60 = vmul.bf16 %v1679_v27, %v1231_v55  ;;  %v1554_v28 = vmul.bf16 1061961548, %v1490_v33  ;;  %v1742_v55 = vmul.bf16 %v1678_v12, %v1230_v42  ;;  %v1364_v27 = vmul.bf16 %v1300_v0, %v5862_v62 }
 0x1e3   : > { %v1015_v23 = vpop.f32.mrb[122].mxu0  ;;  %v1365_v25 = vmul.bf16 %v1301_v32, %v5866_v14  ;;  %4658 = vtanh.bf16 %v1555_v4  ;;  %v1754_v33 = vunpack.c.l.bf16 %v1128_v22  ;;  %v1233_v42 = vmul.bf16 1056980736, %v5831_v38 }
 0x1e4   : > { %v1016_v5 = vadd.f32 %v1015_v23, %v5224_v18  ;;  %2095 = vmatprep.mubr.bf16.mxu1 %v1743_v60  ;;  %v1017_v51 = vpop.f32.mrb[123].mxu0  ;;  %4660 = vtanh.bf16 %v1554_v28  ;;  %v1428_v32 = vmul.bf16 %v1364_v27, %v5862_v62 }
 0x1e5   : > { %v1018_v31 = vadd.f32 %v1017_v51, %v5227_v20  ;;  %v1429_v9 = vmul.bf16 %v1365_v25, %v5866_v14  ;;  %2096 = vmatmul.mubr.bf16.gmra.mrb[60].mxu1 %v1742_v55  ;;  %v5898_v38 = vrot.slane %v1754_v33, %v5216_v13 }
 0x1e6   : > { %v4655_v50 = vpop.eup %4654  ;;  %v5884_v41 = vpack.c.bf16 %v1016_v5, %v1010_v15  ;;  %v1492_v28 = vadd.bf16 %v1428_v32, %v5862_v62  ;;  %v1232_v5 = vmul.bf16 1056980736, %v5827_v54 }
 0x1e7   : > { %v5887_v60 = vpack.c.bf16 %v1018_v31, %v1012_v10  ;;  %v1021_v12 = vpop.f32.mrb[124].mxu0  ;;  %v1681_v4 = vadd.bf16 1065369472, %v4655_v50  ;;  %v1493_v16 = vadd.bf16 %v1429_v9, %v5866_v14  ;;  %v4657_v0 = vpop.eup %4656 }
 0x1e8   : > { %6737 = vst [vmem:[#allocation33_spill] sm:$0xff] %v5884_v41  ;;  %v1023_v23 = vpop.f32.mrb[125].mxu0  ;;  %v1302_v25 = vmul.bf16 1027030327, %v5884_v41  ;;  %v1680_v22 = vadd.bf16 1065369472, %v4657_v0  ;;  %v1022_v50 = vadd.f32 %v1021_v12, %v5224_v18 }
 0x1e9   : > { %6738 = vst [vmem:[#allocation34_spill] sm:$0xff] %v5887_v60  ;;  %v1745_v15 = vmul.bf16 %v1681_v4, %v1233_v42  ;;  %v1557_v51 = vmul.bf16 1061961548, %v1493_v16  ;;  %v1556_v55 = vmul.bf16 1061961548, %v1492_v28  ;;  %v1024_v0 = vadd.f32 %v1023_v23, %v5227_v20 }
 0x1ea   : > { %v1303_v27 = vmul.bf16 1027030327, %v5887_v60  ;;  %v1366_v10 = vmul.bf16 %v1302_v25, %v5884_v41  ;;  %v1744_v9 = vmul.bf16 %v1680_v22, %v1232_v5  ;;  %v1235_v22 = vmul.bf16 1056980736, %v5848_v36 }
 0x1eb   : > { %v1027_v31 = vpop.f32.mrb[126].mxu0  ;;  %2103 = vmatprep.mubr.bf16.mxu1 %v1745_v15  ;;  %4662 = vtanh.bf16 %v1557_v51 }
 0x1ec   : > { %v1028_v32 = vadd.f32 %v1027_v31, %v5224_v18  ;;  %v1029_v42 = vpop.f32.mrb[127].mxu0  ;;  %4664 = vtanh.bf16 %v1556_v55  ;;  %v1367_v4 = vmul.bf16 %v1303_v27, %v5887_v60  ;;  %v1430_v16 = vmul.bf16 %v1366_v10, %v5884_v41 }
 0x1ed   : > { %v1030_v28 = vadd.f32 %v1029_v42, %v5227_v20  ;;  %2104 = vmatmul.mubr.bf16.gmra.mrb[64].mxu1 %v1744_v9  ;;  %v1234_v31 = vmul.bf16 1056980736, %v5845_v17 }
 0x1ee   : > { %v5905_v12 = vpack.c.bf16 %v1028_v32, %v1022_v50  ;;  %v1431_v25 = vmul.bf16 %v1367_v4, %v5887_v60  ;;  %v1494_v33 = vadd.bf16 %v1430_v16, %v5884_v41  ;;  %v4659_v15 = vpop.eup %4658 }
 0x1ef   : > { %v5909_v5 = vpack.c.bf16 %v1030_v28, %v1024_v0  ;;  %v1889_v18 = vpop.f32.mrb[128].mxu0  ;;  %v4661_v51 = vpop.eup %4660  ;;  %v1683_v27 = vadd.bf16 1065369472, %v4659_v15 }
 0x1f0   : > { %6739 = vst [vmem:[#allocation35_spill] sm:$0xff] %v5905_v12  ;;  %v5913_v55 = vadd.f32 %v1889_v18, %v5898_v38  ;;  %v1891_v23 = vpop.f32.mrb[129].mxu0  ;;  %v1495_v20 = vadd.bf16 %v1431_v25, %v5887_v60  ;;  %v1558_v10 = vmul.bf16 1061961548, %v1494_v33  ;;  %v1682_v9 = vadd.bf16 1065369472, %v4661_v51 }
 0x1f1   : > { %6740 = vst [vmem:[#allocation36_spill] sm:$0xff] %v5909_v5  ;;  %v1892_v50 = vpop.f32.mrb[130].mxu0  ;;  %v1747_v16 = vmul.bf16 %v1683_v27, %v1235_v22  ;;  %v1305_v18 = vmul.bf16 1027030327, %v5909_v5  ;;  %v1304_v33 = vmul.bf16 1027030327, %v5905_v12 }
 0x1f2   : > { %v2208_v32 = vmul.f32 0.044715, %v5913_v55  ;;  %v5919_v42 = vadd.f32 %v1892_v50, %v5898_v38  ;;  %v1894_v4 = vpop.f32.mrb[131].mxu0  ;;  %v1559_v0 = vmul.bf16 1061961548, %v1495_v20  ;;  %v1746_v28 = vmul.bf16 %v1682_v9, %v1234_v31 }
 0x1f3   : > { %4666 = vtanh.bf16 %v1558_v10  ;;  %2111 = vmatprep.mubr.bf16.mxu1 %v1747_v16  ;;  %v1369_v51 = vmul.bf16 %v1305_v18, %v5909_v5  ;;  %v1368_v27 = vmul.bf16 %v1304_v33, %v5905_v12  ;;  %v1237_v31 = vmul.bf16 1056980736, %v5866_v14 }
 0x1f4   : > { %v2272_v15 = vmul.f32 %v2208_v32, %v5913_v55  ;;  %v2209_v25 = vmul.f32 0.044715, %v5919_v42  ;;  %4668 = vtanh.bf16 %v1559_v0 }
 0x1f5   : > { %2112 = vmatmul.mubr.bf16.gmra.mrb[68].mxu1 %v1746_v28  ;;  %v1433_v32 = vmul.bf16 %v1369_v51, %v5909_v5 }
 0x1f6   : > { %v4663_v23 = vpop.eup %4662  ;;  %v2336_v50 = vmul.f32 %v2272_v15, %v5913_v55  ;;  %v2273_v22 = vmul.f32 %v2209_v25, %v5919_v42  ;;  %v1432_v15 = vmul.bf16 %v1368_v27, %v5905_v12 }
 0x1f7   : > { %v4665_v20 = vpop.eup %4664  ;;  %v1897_v10 = vpop.f32.mrb[132].mxu0  ;;  %v1685_v9 = vadd.bf16 1065369472, %v4663_v23  ;;  %v1497_v33 = vadd.bf16 %v1433_v32, %v5909_v5 }
 0x1f8   : > { %v2337_v4 = vmul.f32 %v2273_v22, %v5919_v42  ;;  %v5933_v16 = vadd.f32 %v1897_v10, %v5898_v38  ;;  %v1899_v0 = vpop.f32.mrb[133].mxu0  ;;  %v1684_v18 = vadd.bf16 1065369472, %v4665_v20  ;;  %v2400_v17 = vadd.f32 %v2336_v50, %v5913_v55 }
 0x1f9   : > { %v1900_v25 = vpop.f32.mrb[134].mxu0  ;;  %v1749_v28 = vmul.bf16 %v1685_v9, %v1237_v31  ;;  %v1236_v22 = vmul.bf16 1056980736, %v5862_v62  ;;  %v1561_v10 = vmul.bf16 1061961548, %v1497_v33  ;;  %v1496_v20 = vadd.bf16 %v1432_v15, %v5905_v12 }
 0x1fa   : > { %v2210_v14 = vmul.f32 0.044715, %v5933_v16  ;;  %v5940_v23 = vadd.f32 %v1900_v25, %v5898_v38  ;;  %v1902_v51 = vpop.f32.mrb[135].mxu0  ;;  %v2401_v27 = vadd.f32 %v2337_v4, %v5919_v42  ;;  %v2464_v0 = vmul.f32 0.7978846, %v2400_v17 }
 0x1fb   : > { %2119 = vmatprep.mubr.bf16.mxu1 %v1749_v28  ;;  %v1748_v50 = vmul.bf16 %v1684_v18, %v1236_v22  ;;  %4670 = vtanh.bf16 %v1561_v10  ;;  %v1560_v32 = vmul.bf16 1061961548, %v1496_v20  ;;  %v1239_v20 = vmul.bf16 1056980736, %v5887_v60 }
 0x1fc   : > { %v2274_v31 = vmul.f32 %v2210_v14, %v5933_v16  ;;  %v2211_v9 = vmul.f32 0.044715, %v5940_v23  ;;  %v2465_v36 = vmul.f32 0.7978846, %v2401_v27  ;;  %4672 = vtanh.f32 %v2464_v0 }
 0x1fd   : > { %2120 = vmatmul.mubr.bf16.gmra.mrb[72].mxu1 %v1748_v50  ;;  %4674 = vtanh.bf16 %v1560_v32  ;;  %v1238_v27 = vmul.bf16 1056980736, %v5884_v41 }
 0x1fe   : > { %v4667_v25 = vpop.eup %4666  ;;  %v2338_v51 = vmul.f32 %v2274_v31, %v5933_v16  ;;  %v2275_v62 = vmul.f32 %v2211_v9, %v5940_v23  ;;  %4676 = vtanh.f32 %v2465_v36 }
 0x1ff   : > { %v4669_v28 = vpop.eup %4668  ;;  %v1905_v15 = vpop.f32.mrb[136].mxu0  ;;  %v1686_v33 = vadd.bf16 1065369472, %v4667_v25 }
 0x200   : > { %v2402_v17 = vadd.f32 %v2338_v51, %v5933_v16  ;;  %v2339_v14 = vmul.f32 %v2275_v62, %v5940_v23  ;;  %v5952_v4 = vadd.f32 %v1905_v15, %v5898_v38  ;;  %v1907_v18 = vpop.f32.mrb[137].mxu0  ;;  %v1687_v22 = vadd.bf16 1065369472, %v4669_v28 }
 0x201   : > { %v1908_v10 = vpop.f32.mrb[138].mxu0  ;;  %v1750_v25 = vmul.bf16 %v1686_v33, %v1238_v27 }
 0x202   : > { %v2466_v0 = vmul.f32 0.7978846, %v2402_v17  ;;  %v2403_v31 = vadd.f32 %v2339_v14, %v5940_v23  ;;  %v2212_v9 = vmul.f32 0.044715, %v5952_v4  ;;  %v5959_v50 = vadd.f32 %v1908_v10, %v5898_v38  ;;  %v1910_v62 = vpop.f32.mrb[139].mxu0 }
 0x203   : > { %v1751_v32 = vmul.bf16 %v1687_v22, %v1239_v20  ;;  %v1241_v20 = vmul.bf16 1056980736, %v5909_v5 }
 0x204   : > { %4678 = vtanh.f32 %v2466_v0  ;;  %v2467_v51 = vmul.f32 0.7978846, %v2403_v31  ;;  %v2276_v28 = vmul.f32 %v2212_v9, %v5952_v4  ;;  %v2213_v15 = vmul.f32 0.044715, %v5959_v50 }
 0x205   : > { %2127 = vmatprep.mubr.bf16.mxu1 %v1751_v32  ;;  %v1240_v9 = vmul.bf16 1056980736, %v5905_v12 }
 0x206   : > { %4680 = vtanh.f32 %v2467_v51  ;;  %v2340_v36 = vmul.f32 %v2276_v28, %v5952_v4  ;;  %v2277_v17 = vmul.f32 %v2213_v15, %v5959_v50  ;;  %2128 = vmatmul.mubr.bf16.gmra.mrb[76].mxu1 %v1750_v25  ;;  %v4671_v18 = vpop.eup %4670 }
 0x207   : > { %v1913_v14 = vpop.f32.mrb[140].mxu0  ;;  %v4673_v10 = vpop.eup %4672  ;;  %v1689_v31 = vadd.bf16 1065369472, %v4671_v18  ;;  %v2145_v18 = vmul.f32 0.5, %v5919_v42 }
 0x208   : > { %v2341_v62 = vmul.f32 %v2277_v17, %v5959_v50  ;;  %v5967_v33 = vadd.f32 %v1913_v14, %v5898_v38  ;;  %v1915_v22 = vpop.f32.mrb[141].mxu0  ;;  %v2404_v27 = vadd.f32 %v2340_v36, %v5952_v4  ;;  %v2592_v32 = vadd.f32 1.0, %v4673_v10  ;;  %v4675_v51 = vpop.eup %4674 }
 0x209   : > { %v1916_v0 = vpop.f32.mrb[142].mxu0  ;;  %v4677_v22 = vpop.eup %4676  ;;  %v1753_v41 = vmul.bf16 %v1689_v31, %v1241_v20  ;;  %v1688_v5 = vadd.bf16 1065369472, %v4675_v51  ;;  %v2144_v36 = vmul.f32 0.5, %v5913_v55 }
 0x20a   : > { %v2214_v25 = vmul.f32 0.044715, %v5967_v33  ;;  %v5974_v28 = vadd.f32 %v1916_v0, %v5898_v38  ;;  %v1918_v15 = vpop.f32.mrb[143].mxu0  ;;  %v2405_v17 = vadd.f32 %v2341_v62, %v5959_v50  ;;  %v2468_v14 = vmul.f32 0.7978846, %v2404_v27 }
 0x20b   : > { %v2593_v60 = vadd.f32 1.0, %v4677_v22  ;;  %2135 = vmatprep.mubr.bf16.mxu1 %v1753_v41  ;;  %v1752_v0 = vmul.bf16 %v1688_v5, %v1240_v9  ;;  %v2656_v13 = vmul.f32 %v2592_v32, %v2144_v36 }
 0x20c   : > { %v2278_v12 = vmul.f32 %v2214_v25, %v5967_v33  ;;  %v2215_v10 = vmul.f32 0.044715, %v5974_v28  ;;  %v2469_v54 = vmul.f32 0.7978846, %v2405_v17  ;;  %4682 = vtanh.f32 %v2468_v14 }
 0x20d   : > { %v2657_v27 = vmul.f32 %v2593_v60, %v2145_v18  ;;  %v2147_v60 = vmul.f32 0.5, %v5940_v23 }
 0x20e   : > { %v4679_v15 = vpop.eup %4678  ;;  %v2342_v62 = vmul.f32 %v2278_v12, %v5967_v33  ;;  %v2279_v20 = vmul.f32 %v2215_v10, %v5974_v28  ;;  %4684 = vtanh.f32 %v2469_v54  ;;  %2136 = vmatmul.mubr.bf16.gmra.mrb[80].mxu1 %v1752_v0  ;;  %v2146_v12 = vmul.f32 0.5, %v5933_v16 }
 0x20f   : > { %v1921_v55 = vpop.f32.mrb[144].mxu0  ;;  %v2594_v42 = vadd.f32 1.0, %v4679_v15  ;;  %3222 = vmatprep.mubr.bf16.mxu1 %v5240_v30  ;;  %v2720_v5 = vpack.c.bf16 %v2657_v27, %v2656_v13 }
 0x210   : > { %v4681_v31 = vpop.eup %4680  ;;  %v2343_v51 = vmul.f32 %v2279_v20, %v5974_v28  ;;  %v5986_v41 = vadd.f32 %v1921_v55, %v5898_v38  ;;  %v1923_v9 = vpop.f32.mrb[145].mxu0  ;;  %v2406_v32 = vadd.f32 %v2342_v62, %v5967_v33 }
 0x211   : > { %v1924_v54 = vpop.f32.mrb[146].mxu0  ;;  %v2595_v25 = vadd.f32 1.0, %v4681_v31  ;;  %4367 = vmatprep.mubr.bf16.mxu0 %v2720_v5  ;;  %v2658_v13 = vmul.f32 %v2594_v42, %v2146_v12  ;;  %v2148_v12 = vmul.f32 0.5, %v5952_v4 }
 0x212   : > { %v2216_v17 = vmul.f32 0.044715, %v5986_v41  ;;  %v5993_v14 = vadd.f32 %v1924_v54, %v5898_v38  ;;  %v1926_v30 = vpop.f32.mrb[147].mxu0  ;;  %v2407_v22 = vadd.f32 %v2343_v51, %v5974_v28  ;;  %v2470_v36 = vmul.f32 0.7978846, %v2406_v32 }
 0x213   : > { %v2659_v18 = vmul.f32 %v2595_v25, %v2147_v60  ;;  %v2149_v60 = vmul.f32 0.5, %v5959_v50 }
 0x214   : > { %v2280_v10 = vmul.f32 %v2216_v17, %v5986_v41  ;;  %v2217_v16 = vmul.f32 0.044715, %v5993_v14  ;;  %v2471_v0 = vmul.f32 0.7978846, %v2407_v22  ;;  %4686 = vtanh.f32 %v2470_v36 }
 0x215   : > { %v2721_v23 = vpack.c.bf16 %v2659_v18, %v2658_v13 }
 0x216   : > { %v2344_v15 = vmul.f32 %v2280_v10, %v5986_v41  ;;  %v2281_v62 = vmul.f32 %v2217_v16, %v5993_v14  ;;  %4688 = vtanh.f32 %v2471_v0  ;;  %v4683_v20 = vpop.eup %4682  ;;  %3223 = vmatmul.mubr.bf16.vlgmr.msra.gmra.mrb[84].mxu1 %v5238_v29 }
 0x217   : > { %v1929_v27 = vpop.f32.mrb[148].mxu0  ;;  %4368 = vmatmul.mubr.bf16.vlgmr.msra.gmra.mrb[172].mxu0 %v2721_v23  ;;  %3230 = vmatprep.mubr.bf16.mxu1 %v5260_v48  ;;  %v2596_v5 = vadd.f32 1.0, %v4683_v20 }
 0x218   : > { %v4685_v55 = vpop.eup %4684  ;;  %v2345_v42 = vmul.f32 %v2281_v62, %v5993_v14  ;;  %v6004_v31 = vadd.f32 %v1929_v27, %v5898_v38  ;;  %v1931_v51 = vpop.f32.mrb[149].mxu0  ;;  %v2408_v9 = vadd.f32 %v2344_v15, %v5986_v41 }
 0x219   : > { %v1932_v32 = vpop.f32.mrb[150].mxu0  ;;  %v2597_v29 = vadd.f32 1.0, %v4685_v55  ;;  %v2660_v30 = vmul.f32 %v2596_v5, %v2148_v12  ;;  %v2150_v5 = vmul.f32 0.5, %v5967_v33 }
 0x21a   : > { %v2218_v54 = vmul.f32 0.044715, %v6004_v31  ;;  %v6011_v25 = vadd.f32 %v1932_v32, %v5898_v38  ;;  %v1934_v17 = vpop.f32.mrb[151].mxu0  ;;  %v2409_v48 = vadd.f32 %v2345_v42, %v5993_v14  ;;  %v2472_v36 = vmul.f32 0.7978846, %v2408_v9 }
 0x21b   : > { %v2661_v22 = vmul.f32 %v2597_v29, %v2149_v60  ;;  %v2151_v9 = vmul.f32 0.5, %v5974_v28 }
 0x21c   : > { %v2282_v13 = vmul.f32 %v2218_v54, %v6004_v31  ;;  %v2219_v18 = vmul.f32 0.044715, %v6011_v25  ;;  %v2473_v10 = vmul.f32 0.7978846, %v2409_v48  ;;  %4690 = vtanh.f32 %v2472_v36 }
 0x21d   : > { %v2722_v4 = vpack.c.bf16 %v2661_v22, %v2660_v30 }
 0x21e   : > { %v4687_v50 = vpop.eup %4686  ;;  %v2346_v16 = vmul.f32 %v2282_v13, %v6004_v31  ;;  %v2283_v0 = vmul.f32 %v2219_v18, %v6011_v25  ;;  %4692 = vtanh.f32 %v2473_v10  ;;  %3231 = vmatmul.mubr.bf16.gmra.mrb[88].mxu1 %v5258_v47 }
 0x21f   : > { %v1937_v23 = vpop.f32.mrb[152].mxu0  ;;  %4371 = vmatprep.mubr.bf16.mxu0 %v2722_v4  ;;  %v2598_v15 = vadd.f32 1.0, %v4687_v50  ;;  %3238 = vmatprep.mubr.bf16.mxu1 %v5282_v8 }
 0x220   : > { %v4689_v62 = vpop.eup %4688  ;;  %v2347_v20 = vmul.f32 %v2283_v0, %v6011_v25  ;;  %v6022_v27 = vadd.f32 %v1937_v23, %v5898_v38  ;;  %v1939_v55 = vpop.f32.mrb[153].mxu0  ;;  %v2410_v42 = vadd.f32 %v2346_v16, %v6004_v31 }
 0x221   : > { %v1940_v51 = vpop.f32.mrb[154].mxu0  ;;  %v2599_v47 = vadd.f32 1.0, %v4689_v62  ;;  %v2662_v54 = vmul.f32 %v2598_v15, %v2150_v5  ;;  %v2152_v62 = vmul.f32 0.5, %v5986_v41 }
 0x222   : > { %v2220_v32 = vmul.f32 0.044715, %v6022_v27  ;;  %v6029_v12 = vadd.f32 %v1940_v51, %v5898_v38  ;;  %v1942_v60 = vpop.f32.mrb[155].mxu0  ;;  %v2411_v8 = vadd.f32 %v2347_v20, %v6011_v25  ;;  %v2474_v29 = vmul.f32 0.7978846, %v2410_v42 }
 0x223   : > { %v2663_v17 = vmul.f32 %v2599_v47, %v2151_v9  ;;  %v2153_v20 = vmul.f32 0.5, %v5993_v14 }
 0x224   : > { %v2284_v48 = vmul.f32 %v2220_v32, %v6022_v27  ;;  %v2221_v30 = vmul.f32 0.044715, %v6029_v12  ;;  %v2475_v22 = vmul.f32 0.7978846, %v2411_v8  ;;  %4694 = vtanh.f32 %v2474_v29 }
 0x225   : > { %v2723_v33 = vpack.c.bf16 %v2663_v17, %v2662_v54 }
 0x226   : > { %v2348_v28 = vmul.f32 %v2284_v48, %v6022_v27  ;;  %v2285_v36 = vmul.f32 %v2221_v30, %v6029_v12  ;;  %4696 = vtanh.f32 %v2475_v22  ;;  %v4691_v13 = vpop.eup %4690  ;;  %3239 = vmatmul.mubr.bf16.gmra.mrb[92].mxu1 %v5279_v6 }
 0x227   : > { %v1945_v18 = vpop.f32.mrb[156].mxu0  ;;  %4372 = vmatmul.mubr.bf16.gmra.mrb[176].mxu0 %v2723_v33  ;;  %3246 = vmatprep.mubr.bf16.mxu1 %v5304_v35  ;;  %v2600_v0 = vadd.f32 1.0, %v4691_v13 }
 0x228   : > { %v4693_v10 = vpop.eup %4692  ;;  %v2349_v4 = vmul.f32 %v2285_v36, %v6029_v12  ;;  %v6040_v50 = vadd.f32 %v1945_v18, %v5898_v38  ;;  %v1947_v16 = vpop.f32.mrb[157].mxu0  ;;  %v2412_v23 = vadd.f32 %v2348_v28, %v6022_v27  ;;  %v2154_v18 = vmul.f32 0.5, %v6004_v31 }
 0x229   : > { %v1948_v15 = vpop.f32.mrb[158].mxu0  ;;  %v2601_v6 = vadd.f32 1.0, %v4693_v10  ;;  %v2664_v5 = vmul.f32 %v2600_v0, %v2152_v62  ;;  %v2155_v10 = vmul.f32 0.5, %v6011_v25 }
 0x22a   : > { %v2222_v55 = vmul.f32 0.044715, %v6040_v50  ;;  %v6047_v42 = vadd.f32 %v1948_v15, %v5898_v38  ;;  %v1950_v51 = vpop.f32.mrb[159].mxu0  ;;  %v2413_v35 = vadd.f32 %v2349_v4, %v6029_v12  ;;  %v2476_v47 = vmul.f32 0.7978846, %v2412_v23 }
 0x22b   : > { %v2665_v9 = vmul.f32 %v2601_v6, %v2153_v20 }
 0x22c   : > { %v2286_v32 = vmul.f32 %v2222_v55, %v6040_v50  ;;  %v2223_v60 = vmul.f32 0.044715, %v6047_v42  ;;  %v2477_v8 = vmul.f32 0.7978846, %v2413_v35  ;;  %4698 = vtanh.f32 %v2476_v47 }
 0x22d   : > { %v2724_v41 = vpack.c.bf16 %v2665_v9, %v2664_v5 }
 0x22e   : > { %v4695_v14 = vpop.eup %4694  ;;  %v2350_v29 = vmul.f32 %v2286_v32, %v6040_v50  ;;  %v2287_v54 = vmul.f32 %v2223_v60, %v6047_v42  ;;  %4700 = vtanh.f32 %v2477_v8  ;;  %3247 = vmatmul.mubr.bf16.gmra.mrb[96].mxu1 %v5302_v34 }
 0x22f   : > { %v1953_v17 = vpop.f32.mrb[160].mxu0  ;;  %4375 = vmatprep.mubr.bf16.mxu0 %v2724_v41  ;;  %v2602_v48 = vadd.f32 1.0, %v4695_v14  ;;  %3254 = vmatprep.mubr.bf16.mxu1 %v5327_v1 }
 0x230   : > { %v4697_v30 = vpop.eup %4696  ;;  %v2351_v22 = vmul.f32 %v2287_v54, %v6047_v42  ;;  %v6058_v33 = vadd.f32 %v1953_v17, %v5898_v38  ;;  %v1955_v28 = vpop.f32.mrb[161].mxu0  ;;  %v2414_v36 = vadd.f32 %v2350_v29, %v6040_v50  ;;  %v2156_v29 = vmul.f32 0.5, %v6022_v27 }
 0x231   : > { %v1956_v13 = vpop.f32.mrb[162].mxu0  ;;  %v2603_v34 = vadd.f32 1.0, %v4697_v30  ;;  %v2666_v15 = vmul.f32 %v2602_v48, %v2154_v18  ;;  %v2157_v54 = vmul.f32 0.5, %v6029_v12 }
 0x232   : > { %v2224_v4 = vmul.f32 0.044715, %v6058_v33  ;;  %v6065_v16 = vadd.f32 %v1956_v13, %v5898_v38  ;;  %v1958_v0 = vpop.f32.mrb[163].mxu0  ;;  %v2415_v1 = vadd.f32 %v2351_v22, %v6047_v42  ;;  %v2478_v23 = vmul.f32 0.7978846, %v2414_v36 }
 0x233   : > { %v2667_v62 = vmul.f32 %v2603_v34, %v2155_v10 }
 0x234   : > { %v2288_v20 = vmul.f32 %v2224_v4, %v6058_v33  ;;  %v2225_v6 = vmul.f32 0.044715, %v6065_v16  ;;  %v2479_v55 = vmul.f32 0.7978846, %v2415_v1  ;;  %4702 = vtanh.f32 %v2478_v23 }
 0x235   : > { %v2725_v31 = vpack.c.bf16 %v2667_v62, %v2666_v15 }
 0x236   : > { %v2352_v25 = vmul.f32 %v2288_v20, %v6058_v33  ;;  %v2289_v51 = vmul.f32 %v2225_v6, %v6065_v16  ;;  %4704 = vtanh.f32 %v2479_v55  ;;  %v4699_v35 = vpop.eup %4698  ;;  %3255 = vmatmul.mubr.bf16.gmra.mrb[100].mxu1 %v5323_v61 }
 0x237   : > { %v1961_v5 = vpop.f32.mrb[164].mxu0  ;;  %4376 = vmatmul.mubr.bf16.gmra.mrb[180].mxu0 %v2725_v31  ;;  %3262 = vmatprep.mubr.bf16.mxu1 %v5345_v39  ;;  %v2604_v8 = vadd.f32 1.0, %v4699_v35  ;;  %v2159_v35 = vmul.f32 0.5, %v6047_v42 }
 0x238   : > { %v4701_v9 = vpop.eup %4700  ;;  %v2353_v47 = vmul.f32 %v2289_v51, %v6065_v16  ;;  %v6076_v32 = vadd.f32 %v1961_v5, %v5898_v38  ;;  %v1963_v60 = vpop.f32.mrb[165].mxu0  ;;  %v2416_v41 = vadd.f32 %v2352_v25, %v6058_v33  ;;  %v2158_v51 = vmul.f32 0.5, %v6040_v50 }
 0x239   : > { %v1964_v14 = vpop.f32.mrb[166].mxu0  ;;  %v2605_v61 = vadd.f32 1.0, %v4701_v9  ;;  %v2668_v22 = vmul.f32 %v2604_v8, %v2156_v29 }
 0x23a   : > { %v2226_v17 = vmul.f32 0.044715, %v6076_v32  ;;  %v6083_v48 = vadd.f32 %v1964_v14, %v5898_v38  ;;  %v1966_v30 = vpop.f32.mrb[167].mxu0  ;;  %v2417_v39 = vadd.f32 %v2353_v47, %v6065_v16  ;;  %v2480_v36 = vmul.f32 0.7978846, %v2416_v41 }
 0x23b   : > { %v2669_v28 = vmul.f32 %v2605_v61, %v2157_v54 }
 0x23c   : > { %v2290_v13 = vmul.f32 %v2226_v17, %v6076_v32  ;;  %v2227_v18 = vmul.f32 0.044715, %v6083_v48  ;;  %v2481_v10 = vmul.f32 0.7978846, %v2417_v39  ;;  %4706 = vtanh.f32 %v2480_v36 }
 0x23d   : > { %v2726_v27 = vpack.c.bf16 %v2669_v28, %v2668_v22 }
 0x23e   : > { %v4703_v12 = vpop.eup %4702  ;;  %v2354_v34 = vmul.f32 %v2290_v13, %v6076_v32  ;;  %v2291_v4 = vmul.f32 %v2227_v18, %v6083_v48  ;;  %4708 = vtanh.f32 %v2481_v10  ;;  %3263 = vmatmul.mubr.bf16.gmra.mrb[104].mxu1 %v5343_v37 }
 0x23f   : > { %v1969_v0 = vpop.f32.mrb[168].mxu0  ;;  %4379 = vmatprep.mubr.bf16.mxu0 %v2726_v27  ;;  %v2606_v1 = vadd.f32 1.0, %v4703_v12  ;;  %3270 = vmatprep.mubr.bf16.mxu1 %v5364_v11  ;;  %v1977_v20 = vpop.f32.mrb[0].mxu1  ;;  %v2160_v12 = vmul.f32 0.5, %v6058_v33 }
 0x240   : > { %v4705_v23 = vpop.eup %4704  ;;  %v2355_v15 = vmul.f32 %v2291_v4, %v6083_v48  ;;  %v6094_v62 = vadd.f32 %v1969_v0, %v5898_v38  ;;  %v1971_v6 = vpop.f32.mrb[169].mxu0  ;;  %v2418_v55 = vadd.f32 %v2354_v34, %v6076_v32  ;;  %v6098_v31 = vadd.f32 %v1977_v20, %v5898_v38 }
 0x241   : > { %v1979_v25 = vpop.f32.mrb[1].mxu1  ;;  %v1972_v37 = vpop.f32.mrb[170].mxu0  ;;  %v2607_v5 = vadd.f32 1.0, %v4705_v23  ;;  %v2670_v50 = vmul.f32 %v2606_v1, %v2158_v51  ;;  %v2161_v1 = vmul.f32 0.5, %v6065_v16 }
 0x242   : > { %v2228_v9 = vmul.f32 0.044715, %v6094_v62  ;;  %v6104_v11 = vadd.f32 %v1972_v37, %v5898_v38  ;;  %v1980_v47 = vpop.f32.mrb[2].mxu1  ;;  %v1974_v60 = vpop.f32.mrb[171].mxu0  ;;  %v2419_v8 = vadd.f32 %v2355_v15, %v6083_v48  ;;  %v2482_v41 = vmul.f32 0.7978846, %v2418_v55 }
 0x243   : > { %v2230_v14 = vmul.f32 0.044715, %v6098_v31  ;;  %v6109_v29 = vadd.f32 %v1980_v47, %v5898_v38  ;;  %v1982_v54 = vpop.f32.mrb[3].mxu1  ;;  %v2671_v61 = vmul.f32 %v2607_v5, %v2159_v35 }
 0x244   : > { %v2292_v42 = vmul.f32 %v2228_v9, %v6094_v62  ;;  %v2229_v17 = vmul.f32 0.044715, %v6104_v11  ;;  %v2483_v30 = vmul.f32 0.7978846, %v2419_v8  ;;  %4710 = vtanh.f32 %v2482_v41 }
 0x245   : > { %v2294_v39 = vmul.f32 %v2230_v14, %v6098_v31  ;;  %v2231_v22 = vmul.f32 0.044715, %v6109_v29  ;;  %v2727_v28 = vpack.c.bf16 %v2671_v61, %v2670_v50 }
 0x246   : > { %v2356_v36 = vmul.f32 %v2292_v42, %v6094_v62  ;;  %v2293_v13 = vmul.f32 %v2229_v17, %v6104_v11  ;;  %4712 = vtanh.f32 %v2483_v30  ;;  %v4707_v18 = vpop.eup %4706  ;;  %3271 = vmatmul.mubr.bf16.gmra.mrb[108].mxu1 %v5361_v7 }
 0x247   : > { %v2358_v10 = vmul.f32 %v2294_v39, %v6098_v31  ;;  %v2295_v27 = vmul.f32 %v2231_v22, %v6109_v29  ;;  %4380 = vmatmul.mubr.bf16.gmra.mrb[184].mxu0 %v2727_v28  ;;  %3278 = vmatprep.mubr.bf16.mxu1 %v5381_v49  ;;  %v1985_v0 = vpop.f32.mrb[4].mxu1  ;;  %v2608_v23 = vadd.f32 1.0, %v4707_v18  ;;  %v2162_v22 = vmul.f32 0.5, %v6076_v32 }
 0x248   : > { %v4709_v34 = vpop.eup %4708  ;;  %v2357_v4 = vmul.f32 %v2293_v13, %v6104_v11  ;;  %v2420_v15 = vadd.f32 %v2356_v36, %v6094_v62  ;;  %v6127_v6 = vadd.f32 %v1985_v0, %v5898_v38  ;;  %v1987_v7 = vpop.f32.mrb[5].mxu1  ;;  %v2163_v13 = vmul.f32 0.5, %v6083_v48 }
 0x249   : > { %v2359_v20 = vmul.f32 %v2295_v27, %v6109_v29  ;;  %v2609_v55 = vadd.f32 1.0, %v4709_v34  ;;  %v2422_v33 = vadd.f32 %v2358_v10, %v6098_v31  ;;  %v1988_v25 = vpop.f32.mrb[6].mxu1  ;;  %v2672_v37 = vmul.f32 %v2608_v23, %v2160_v12 }
 0x24a   : > { %v2421_v51 = vadd.f32 %v2357_v4, %v6104_v11  ;;  %v2484_v49 = vmul.f32 0.7978846, %v2420_v15  ;;  %v2232_v35 = vmul.f32 0.044715, %v6127_v6  ;;  %v6133_v16 = vadd.f32 %v1988_v25, %v5898_v38  ;;  %v1990_v5 = vpop.f32.mrb[7].mxu1 }
 0x24b   : > { %v2673_v9 = vmul.f32 %v2609_v55, %v2161_v1  ;;  %v2423_v47 = vadd.f32 %v2359_v20, %v6109_v29  ;;  %v2486_v8 = vmul.f32 0.7978846, %v2422_v33  ;;  %v2164_v5 = vmul.f32 0.5, %v6094_v62 }
 0x24c   : > { %v2485_v60 = vmul.f32 0.7978846, %v2421_v51  ;;  %4714 = vtanh.f32 %v2484_v49  ;;  %v2296_v41 = vmul.f32 %v2232_v35, %v6127_v6  ;;  %v2233_v14 = vmul.f32 0.044715, %v6133_v16 }
 0x24d   : > { %v2728_v54 = vpack.c.bf16 %v2673_v9, %v2672_v37  ;;  %v2487_v50 = vmul.f32 0.7978846, %v2423_v47  ;;  %v2165_v9 = vmul.f32 0.5, %v6104_v11  ;;  %v2167_v62 = vmul.f32 0.5, %v6109_v29 }
 0x24e   : > { %v4711_v61 = vpop.eup %4710  ;;  %4716 = vtanh.f32 %v2485_v60  ;;  %v2360_v42 = vmul.f32 %v2296_v41, %v6127_v6  ;;  %v2297_v17 = vmul.f32 %v2233_v14, %v6133_v16  ;;  %3279 = vmatmul.mubr.bf16.gmra.mrb[112].mxu1 %v5379_v45  ;;  %v2166_v60 = vmul.f32 0.5, %v6098_v31 }
 0x24f   : > { %4383 = vmatprep.mubr.bf16.mxu0 %v2728_v54  ;;  %v2610_v30 = vadd.f32 1.0, %v4711_v61  ;;  %4718 = vtanh.f32 %v2486_v8  ;;  %3286 = vmatprep.mubr.bf16.mxu1 %v5400_v24  ;;  %v1993_v36 = vpop.f32.mrb[8].mxu1 }
 0x250   : > { %v4713_v39 = vpop.eup %4712  ;;  %4720 = vtanh.f32 %v2487_v50  ;;  %v2361_v28 = vmul.f32 %v2297_v17, %v6133_v16  ;;  %v2424_v10 = vadd.f32 %v2360_v42, %v6127_v6  ;;  %v6147_v27 = vadd.f32 %v1993_v36, %v5898_v38  ;;  %v1995_v45 = vpop.f32.mrb[9].mxu1 }
 0x251   : > { %v2611_v18 = vadd.f32 1.0, %v4713_v39  ;;  %v1996_v12 = vpop.f32.mrb[10].mxu1  ;;  %v2674_v34 = vmul.f32 %v2610_v30, %v2162_v22 }
 0x252   : > { %v2425_v24 = vadd.f32 %v2361_v28, %v6133_v16  ;;  %v2488_v0 = vmul.f32 0.7978846, %v2424_v10  ;;  %v2234_v32 = vmul.f32 0.044715, %v6147_v27  ;;  %v6152_v1 = vadd.f32 %v1996_v12, %v5898_v38  ;;  %v1998_v23 = vpop.f32.mrb[11].mxu1 }
 0x253   : > { %v2675_v4 = vmul.f32 %v2611_v18, %v2163_v13  ;;  %v2168_v23 = vmul.f32 0.5, %v6127_v6 }
 0x254   : > { %v2489_v15 = vmul.f32 0.7978846, %v2425_v24  ;;  %4722 = vtanh.f32 %v2488_v0  ;;  %v2298_v7 = vmul.f32 %v2234_v32, %v6147_v27  ;;  %v2235_v55 = vmul.f32 0.044715, %v6152_v1 }
 0x255   : > { %v2729_v48 = vpack.c.bf16 %v2675_v4, %v2674_v34 }
 0x256   : > { %v4715_v20 = vpop.eup %4714  ;;  %3287 = vmatmul.mubr.bf16.gmra.mrb[116].mxu1 %v5397_v19  ;;  %4724 = vtanh.f32 %v2489_v15  ;;  %v2362_v37 = vmul.f32 %v2298_v7, %v6147_v27  ;;  %v2299_v51 = vmul.f32 %v2235_v55, %v6152_v1 }
 0x257   : > { %4384 = vmatmul.mubr.bf16.gmra.mrb[188].mxu0 %v2729_v48  ;;  %v2612_v33 = vadd.f32 1.0, %v4715_v20  ;;  %3294 = vmatprep.mubr.bf16.mxu1 %v5418_v63  ;;  %v2001_v35 = vpop.f32.mrb[12].mxu1  ;;  %v2169_v20 = vmul.f32 0.5, %v6133_v16 }
 0x258   : > { %v4717_v25 = vpop.eup %4716  ;;  %v2363_v8 = vmul.f32 %v2299_v51, %v6152_v1  ;;  %v6165_v41 = vadd.f32 %v2001_v35, %v5898_v38  ;;  %v2003_v14 = vpop.f32.mrb[13].mxu1  ;;  %v2426_v50 = vadd.f32 %v2362_v37, %v6147_v27 }
 0x259   : > { %v4719_v49 = vpop.eup %4718  ;;  %v2613_v47 = vadd.f32 1.0, %v4717_v25  ;;  %v2004_v63 = vpop.f32.mrb[14].mxu1  ;;  %v2676_v61 = vmul.f32 %v2612_v33, %v2164_v5 }
 0x25a   : > { %v4721_v19 = vpop.eup %4720  ;;  %v2614_v54 = vadd.f32 1.0, %v4719_v49  ;;  %v2236_v11 = vmul.f32 0.044715, %v6165_v41  ;;  %v6171_v31 = vadd.f32 %v2004_v63, %v5898_v38  ;;  %v2006_v30 = vpop.f32.mrb[15].mxu1  ;;  %v2427_v39 = vadd.f32 %v2363_v8, %v6152_v1 }
 0x25b   : > { %v2677_v42 = vmul.f32 %v2613_v47, %v2165_v9  ;;  %v2615_v17 = vadd.f32 1.0, %v4721_v19  ;;  %v2490_v13 = vmul.f32 0.7978846, %v2426_v50 }
 0x25c   : > { %v2678_v28 = vmul.f32 %v2614_v54, %v2166_v60  ;;  %v2300_v18 = vmul.f32 %v2236_v11, %v6165_v41  ;;  %v2237_v10 = vmul.f32 0.044715, %v6171_v31  ;;  %v2491_v45 = vmul.f32 0.7978846, %v2427_v39 }
 0x25d   : > { %v2730_v22 = vpack.c.bf16 %v2677_v42, %v2676_v61  ;;  %v2679_v36 = vmul.f32 %v2615_v17, %v2167_v62  ;;  %4726 = vtanh.f32 %v2490_v13  ;;  %v2170_v17 = vmul.f32 0.5, %v6147_v27 }
 0x25e   : > { %v4723_v12 = vpop.eup %4722  ;;  %3295 = vmatmul.mubr.bf16.gmra.mrb[120].mxu1 %v5415_v59  ;;  %v2364_v34 = vmul.f32 %v2300_v18, %v6165_v41  ;;  %v2301_v4 = vmul.f32 %v2237_v10, %v6171_v31  ;;  %4728 = vtanh.f32 %v2491_v45  ;;  %v2171_v11 = vmul.f32 0.5, %v6152_v1 }
 0x25f   : > { %4387 = vmatprep.mubr.bf16.mxu0 %v2730_v22  ;;  %v2731_v29 = vpack.c.bf16 %v2679_v36, %v2678_v28  ;;  %3302 = vmatprep.mubr.bf16.mxu1 %v5436_v44  ;;  %v2616_v24 = vadd.f32 1.0, %v4723_v12  ;;  %v2009_v32 = vpop.f32.mrb[16].mxu1 }
 0x260   : > { %v4725_v0 = vpop.eup %4724  ;;  %v2365_v48 = vmul.f32 %v2301_v4, %v6171_v31  ;;  %v6183_v59 = vadd.f32 %v2009_v32, %v5898_v38  ;;  %v2011_v15 = vpop.f32.mrb[17].mxu1  ;;  %v2428_v44 = vadd.f32 %v2364_v34, %v6165_v41 }
 0x261   : > { %4388 = vmatmul.mubr.bf16.gmra.mrb[192].mxu0 %v2731_v29  ;;  %v2617_v7 = vadd.f32 1.0, %v4725_v0  ;;  %v2012_v55 = vpop.f32.mrb[18].mxu1  ;;  %v2680_v33 = vmul.f32 %v2616_v24, %v2168_v23 }
 0x262   : > { %v2238_v25 = vmul.f32 0.044715, %v6183_v59  ;;  %v6189_v37 = vadd.f32 %v2012_v55, %v5898_v38  ;;  %v2014_v51 = vpop.f32.mrb[19].mxu1  ;;  %v2429_v49 = vadd.f32 %v2365_v48, %v6171_v31  ;;  %v2492_v35 = vmul.f32 0.7978846, %v2428_v44 }
 0x263   : > { %v2681_v6 = vmul.f32 %v2617_v7, %v2169_v20  ;;  %v2172_v20 = vmul.f32 0.5, %v6165_v41  ;;  %v2173_v7 = vmul.f32 0.5, %v6171_v31 }
 0x264   : > { %v2302_v5 = vmul.f32 %v2238_v25, %v6183_v59  ;;  %v2239_v9 = vmul.f32 0.044715, %v6189_v37  ;;  %v2493_v47 = vmul.f32 0.7978846, %v2429_v49  ;;  %4730 = vtanh.f32 %v2492_v35 }
 0x265   : > { %v2732_v16 = vpack.c.bf16 %v2681_v6, %v2680_v33 }
 0x266   : > { %3303 = vmatmul.mubr.bf16.gmra.mrb[124].mxu1 %v5433_v40  ;;  %v2366_v60 = vmul.f32 %v2302_v5, %v6183_v59  ;;  %v2303_v19 = vmul.f32 %v2239_v9, %v6189_v37  ;;  %4732 = vtanh.f32 %v2493_v47 }
 0x267   : > { %3310 = vmatprep.mubr.bf16.mxu1 %v5454_v26  ;;  %4391 = vmatprep.mubr.bf16.mxu0 %v2732_v16  ;;  %v4727_v8 = vpop.eup %4726  ;;  %v2017_v14 = vpop.f32.mrb[20].mxu1 }
 0x268   : > { %v4729_v54 = vpop.eup %4728  ;;  %v2367_v50 = vmul.f32 %v2303_v19, %v6189_v37  ;;  %v6200_v63 = vadd.f32 %v2017_v14, %v5898_v38  ;;  %v2019_v61 = vpop.f32.mrb[21].mxu1  ;;  %v2618_v42 = vadd.f32 1.0, %v4727_v8  ;;  %v2430_v40 = vadd.f32 %v2366_v60, %v6183_v59 }
 0x269   : > { %v2020_v62 = vpop.f32.mrb[22].mxu1  ;;  %v2619_v26 = vadd.f32 1.0, %v4729_v54 }
 0x26a   : > { %v2240_v30 = vmul.f32 0.044715, %v6200_v63  ;;  %v6207_v39 = vadd.f32 %v2020_v62, %v5898_v38  ;;  %v2022_v22 = vpop.f32.mrb[23].mxu1  ;;  %v2431_v28 = vadd.f32 %v2367_v50, %v6189_v37  ;;  %v2682_v36 = vmul.f32 %v2618_v42, %v2170_v17 }
 0x26b   : > { %v2683_v13 = vmul.f32 %v2619_v26, %v2171_v11  ;;  %v2494_v18 = vmul.f32 0.7978846, %v2430_v40  ;;  %v2174_v42 = vmul.f32 0.5, %v6183_v59  ;;  %v2175_v40 = vmul.f32 0.5, %v6189_v37 }
 0x26c   : > { %v2304_v10 = vmul.f32 %v2240_v30, %v6200_v63  ;;  %v2241_v45 = vmul.f32 0.044715, %v6207_v39  ;;  %v2495_v12 = vmul.f32 0.7978846, %v2431_v28 }
 0x26d   : > { %v2733_v27 = vpack.c.bf16 %v2683_v13, %v2682_v36  ;;  %4734 = vtanh.f32 %v2494_v18 }
 0x26e   : > { %3311 = vmatmul.mubr.bf16.gmra.mrb[128].mxu1 %v5450_v21  ;;  %v2368_v1 = vmul.f32 %v2304_v10, %v6200_v63  ;;  %v2305_v29 = vmul.f32 %v2241_v45, %v6207_v39  ;;  %4736 = vtanh.f32 %v2495_v12  ;;  %v4731_v34 = vpop.eup %4730 }
 0x26f   : > { %3318 = vmatprep.mubr.bf16.mxu1 %v5471_v2  ;;  %v2025_v4 = vpop.f32.mrb[24].mxu1  ;;  %4392 = vmatmul.mubr.bf16.gmra.mrb[196].mxu0 %v2733_v27  ;;  %v2620_v21 = vadd.f32 1.0, %v4731_v34 }
 0x270   : > { %v4733_v24 = vpop.eup %4732  ;;  %v2369_v0 = vmul.f32 %v2305_v29, %v6207_v39  ;;  %v6218_v32 = vadd.f32 %v2025_v4, %v5898_v38  ;;  %v2027_v23 = vpop.f32.mrb[25].mxu1  ;;  %v2432_v48 = vadd.f32 %v2368_v1, %v6200_v63 }
 0x271   : > { %v2028_v15 = vpop.f32.mrb[26].mxu1  ;;  %v2621_v2 = vadd.f32 1.0, %v4733_v24  ;;  %v2684_v51 = vmul.f32 %v2620_v21, %v2172_v20  ;;  %v2177_v23 = vmul.f32 0.5, %v6207_v39 }
 0x272   : > { %v2242_v55 = vmul.f32 0.044715, %v6218_v32  ;;  %v6225_v33 = vadd.f32 %v2028_v15, %v5898_v38  ;;  %v2030_v44 = vpop.f32.mrb[27].mxu1  ;;  %v2433_v25 = vadd.f32 %v2369_v0, %v6207_v39  ;;  %v2496_v49 = vmul.f32 0.7978846, %v2432_v48 }
 0x273   : > { %v2685_v6 = vmul.f32 %v2621_v2, %v2173_v7  ;;  %v2176_v0 = vmul.f32 0.5, %v6200_v63 }
 0x274   : > { %v2306_v35 = vmul.f32 %v2242_v55, %v6218_v32  ;;  %v2243_v5 = vmul.f32 0.044715, %v6225_v33  ;;  %v2497_v9 = vmul.f32 0.7978846, %v2433_v25  ;;  %4738 = vtanh.f32 %v2496_v49 }
 0x275   : > { %v2734_v41 = vpack.c.bf16 %v2685_v6, %v2684_v51 }
 0x276   : > { %3319 = vmatmul.mubr.bf16.gmra.mrb[132].mxu1 %v5469_v3  ;;  %v2370_v31 = vmul.f32 %v2306_v35, %v6218_v32  ;;  %v2307_v16 = vmul.f32 %v2243_v5, %v6225_v33  ;;  %4740 = vtanh.f32 %v2497_v9 }
 0x277   : > { %3326 = vmatprep.mubr.bf16.mxu1 %v5490_v58  ;;  %v4735_v47 = vpop.eup %4734  ;;  %4395 = vmatprep.mubr.bf16.mxu0 %v2734_v41 }
 0x278   : > { %v2033_v60 = vpop.f32.mrb[28].mxu1  ;;  %v4737_v19 = vpop.eup %4736  ;;  %v2371_v8 = vmul.f32 %v2307_v16, %v6225_v33  ;;  %v2622_v3 = vadd.f32 1.0, %v4735_v47  ;;  %v2434_v50 = vadd.f32 %v2370_v31, %v6218_v32 }
 0x279   : > { %v6236_v14 = vadd.f32 %v2033_v60, %v5898_v38  ;;  %v2035_v54 = vpop.f32.mrb[29].mxu1  ;;  %v2623_v58 = vadd.f32 1.0, %v4737_v19  ;;  %v2178_v60 = vmul.f32 0.5, %v6218_v32  ;;  %v2179_v19 = vmul.f32 0.5, %v6225_v33 }
 0x27a   : > { %v2036_v61 = vpop.f32.mrb[30].mxu1  ;;  %v2435_v26 = vadd.f32 %v2371_v8, %v6225_v33  ;;  %v2686_v30 = vmul.f32 %v2622_v3, %v2174_v42  ;;  %v2498_v28 = vmul.f32 0.7978846, %v2434_v50 }
 0x27b   : > { %v2244_v62 = vmul.f32 0.044715, %v6236_v14  ;;  %v6243_v17 = vadd.f32 %v2036_v61, %v5898_v38  ;;  %v2038_v11 = vpop.f32.mrb[31].mxu1  ;;  %v2687_v22 = vmul.f32 %v2623_v58, %v2175_v40 }
 0x27c   : > { %v2499_v18 = vmul.f32 0.7978846, %v2435_v26  ;;  %4742 = vtanh.f32 %v2498_v28 }
 0x27d   : > { %v2308_v36 = vmul.f32 %v2244_v62, %v6236_v14  ;;  %v2245_v13 = vmul.f32 0.044715, %v6243_v17  ;;  %v2735_v59 = vpack.c.bf16 %v2687_v22, %v2686_v30 }
 0x27e   : > { %3327 = vmatmul.mubr.bf16.gmra.mrb[136].mxu1 %v5486_v53  ;;  %4744 = vtanh.f32 %v2499_v18  ;;  %v4739_v45 = vpop.eup %4738 }
 0x27f   : > { %v2372_v37 = vmul.f32 %v2308_v36, %v6236_v14  ;;  %v2309_v10 = vmul.f32 %v2245_v13, %v6243_v17  ;;  %3334 = vmatprep.mubr.bf16.mxu1 %v5508_v52  ;;  %4396 = vmatmul.mubr.bf16.gmra.mrb[200].mxu0 %v2735_v59  ;;  %v2624_v53 = vadd.f32 1.0, %v4739_v45  ;;  %v2181_v45 = vmul.f32 0.5, %v6243_v17 }
 0x280   : > { %v2041_v12 = vpop.f32.mrb[32].mxu1  ;;  %v4741_v27 = vpop.eup %4740 }
 0x281   : > { %v2373_v1 = vmul.f32 %v2309_v10, %v6243_v17  ;;  %v6254_v29 = vadd.f32 %v2041_v12, %v5898_v38  ;;  %v2043_v34 = vpop.f32.mrb[33].mxu1  ;;  %v2436_v4 = vadd.f32 %v2372_v37, %v6236_v14  ;;  %v2625_v52 = vadd.f32 1.0, %v4741_v27 }
 0x282   : > { %v2044_v24 = vpop.f32.mrb[34].mxu1  ;;  %v2688_v7 = vmul.f32 %v2624_v53, %v2176_v0  ;;  %v2180_v10 = vmul.f32 0.5, %v6236_v14  ;;  %v6741_v14 = vld [vmem:[#allocation6_spill] sm:$0xff] }
 0x283   : > { %v2246_v21 = vmul.f32 0.044715, %v6254_v29  ;;  %v6261_v48 = vadd.f32 %v2044_v24, %v5898_v38  ;;  %v2046_v15 = vpop.f32.mrb[35].mxu1  ;;  %v2437_v20 = vadd.f32 %v2373_v1, %v6243_v17  ;;  %v2689_v2 = vmul.f32 %v2625_v52, %v2177_v23 }
 0x284   : > { %v2500_v55 = vmul.f32 0.7978846, %v2436_v4 }
 0x285   : > { %v2310_v44 = vmul.f32 %v2246_v21, %v6254_v29  ;;  %v2247_v25 = vmul.f32 0.044715, %v6261_v48  ;;  %v2501_v51 = vmul.f32 0.7978846, %v2437_v20  ;;  %v2736_v63 = vpack.c.bf16 %v2689_v2, %v2688_v7  ;;  %v6742_v20 = vld [vmem:[#allocation8_spill] sm:$0xff] }
 0x286   : > { %3335 = vmatmul.mubr.bf16.gmra.mrb[140].mxu1 %v5505_v46  ;;  %4746 = vtanh.f32 %v2500_v55  ;;  %v4743_v49 = vpop.eup %4742 }
 0x287   : > { %v2374_v39 = vmul.f32 %v2310_v44, %v6254_v29  ;;  %v2311_v6 = vmul.f32 %v2247_v25, %v6261_v48  ;;  %3342 = vmatprep.mubr.bf16.mxu1 %v5534_v56  ;;  %4748 = vtanh.f32 %v2501_v51  ;;  %4399 = vmatprep.mubr.bf16.mxu0 %v2736_v63  ;;  %v2626_v46 = vadd.f32 1.0, %v4743_v49 }
 0x288   : > { %v2049_v35 = vpop.f32.mrb[36].mxu1  ;;  %v4745_v5 = vpop.eup %4744  ;;  %v2182_v49 = vmul.f32 0.5, %v6254_v29 }
 0x289   : > { %v2375_v9 = vmul.f32 %v2311_v6, %v6261_v48  ;;  %v6272_v41 = vadd.f32 %v2049_v35, %v5898_v38  ;;  %v2051_v31 = vpop.f32.mrb[37].mxu1  ;;  %v2438_v16 = vadd.f32 %v2374_v39, %v6254_v29  ;;  %v2627_v56 = vadd.f32 1.0, %v4745_v5  ;;  %v6743_v29 = vld [vmem:[#allocation7_spill] sm:$0xff] }
 0x28a   : > { %v2052_v47 = vpop.f32.mrb[38].mxu1  ;;  %v2690_v61 = vmul.f32 %v2626_v46, %v2178_v60  ;;  %v2183_v35 = vmul.f32 0.5, %v6261_v48 }
 0x28b   : > { %v2248_v8 = vmul.f32 0.044715, %v6272_v41  ;;  %v6279_v54 = vadd.f32 %v2052_v47, %v5898_v38  ;;  %v2054_v3 = vpop.f32.mrb[39].mxu1  ;;  %v2439_v50 = vadd.f32 %v2375_v9, %v6261_v48  ;;  %v2691_v42 = vmul.f32 %v2627_v56, %v2179_v19 }
 0x28c   : > { %v2502_v40 = vmul.f32 0.7978846, %v2438_v16 }
 0x28d   : > { %v2312_v58 = vmul.f32 %v2248_v8, %v6272_v41  ;;  %v2249_v62 = vmul.f32 0.044715, %v6279_v54  ;;  %v2503_v11 = vmul.f32 0.7978846, %v2439_v50  ;;  %v2737_v32 = vpack.c.bf16 %v2691_v42, %v2690_v61  ;;  %v6744_v42 = vld [vmem:[#allocation10_spill] sm:$0xff] }
 0x28e   : > { %3343 = vmatmul.mubr.bf16.gmra.mrb[144].mxu1 %v5527_v43  ;;  %4750 = vtanh.f32 %v2502_v40 }
 0x28f   : > { %v2376_v33 = vmul.f32 %v2312_v58, %v6272_v41  ;;  %v2313_v26 = vmul.f32 %v2249_v62, %v6279_v54  ;;  %3350 = vmatprep.mubr.bf16.mxu1 %v5559_v57  ;;  %4752 = vtanh.f32 %v2503_v11  ;;  %4400 = vmatmul.mubr.bf16.gmra.mrb[204].mxu0 %v2737_v32 }
 0x290   : > { %v4747_v30 = vpop.eup %4746  ;;  %v2057_v22 = vpop.f32.mrb[40].mxu1 }
 0x291   : > { %v4749_v28 = vpop.eup %4748  ;;  %v2377_v36 = vmul.f32 %v2313_v26, %v6279_v54  ;;  %v6290_v13 = vadd.f32 %v2057_v22, %v5898_v38  ;;  %v2059_v18 = vpop.f32.mrb[41].mxu1  ;;  %v2628_v43 = vadd.f32 1.0, %v4747_v30  ;;  %v2440_v59 = vadd.f32 %v2376_v33, %v6272_v41 }
 0x292   : > { %v2060_v37 = vpop.f32.mrb[42].mxu1  ;;  %v2629_v57 = vadd.f32 1.0, %v4749_v28  ;;  %v2184_v28 = vmul.f32 0.5, %v6272_v41  ;;  %v6745_v41 = vld [vmem:[#allocation9_spill] sm:$0xff] }
 0x293   : > { %v2250_v12 = vmul.f32 0.044715, %v6290_v13  ;;  %v6297_v27 = vadd.f32 %v2060_v37, %v5898_v38  ;;  %v2062_v1 = vpop.f32.mrb[43].mxu1  ;;  %v2441_v34 = vadd.f32 %v2377_v36, %v6279_v54  ;;  %v2692_v53 = vmul.f32 %v2628_v43, %v2180_v10 }
 0x294   : > { %v2693_v4 = vmul.f32 %v2629_v57, %v2181_v45  ;;  %v2504_v24 = vmul.f32 0.7978846, %v2440_v59  ;;  %v2185_v36 = vmul.f32 0.5, %v6279_v54 }
 0x295   : > { %v2314_v0 = vmul.f32 %v2250_v12, %v6290_v13  ;;  %v2251_v23 = vmul.f32 0.044715, %v6297_v27  ;;  %v2505_v52 = vmul.f32 0.7978846, %v2441_v34 }
 0x296   : > { %3351 = vmatmul.mubr.bf16.gmra.mrb[148].mxu1 %v6741_v14  ;;  %v2738_v17 = vpack.c.bf16 %v2693_v4, %v2692_v53  ;;  %4754 = vtanh.f32 %v2504_v24 }
 0x297   : > { %v2378_v21 = vmul.f32 %v2314_v0, %v6290_v13  ;;  %v2315_v15 = vmul.f32 %v2251_v23, %v6297_v27  ;;  %3358 = vmatprep.mubr.bf16.mxu1 %v6742_v20  ;;  %4756 = vtanh.f32 %v2505_v52  ;;  %v6746_v0 = vld [vmem:[#allocation12_spill] sm:$0xff] }
 0x298   : > { %v4751_v7 = vpop.eup %4750  ;;  %v2065_v2 = vpop.f32.mrb[44].mxu1  ;;  %4403 = vmatprep.mubr.bf16.mxu0 %v2738_v17 }
 0x299   : > { %v4753_v55 = vpop.eup %4752  ;;  %v2379_v44 = vmul.f32 %v2315_v15, %v6297_v27  ;;  %v6308_v25 = vadd.f32 %v2065_v2, %v5898_v38  ;;  %v2067_v51 = vpop.f32.mrb[45].mxu1  ;;  %v2630_v63 = vadd.f32 1.0, %v4751_v7  ;;  %v2442_v39 = vadd.f32 %v2378_v21, %v6290_v13 }
 0x29a   : > { %v2068_v6 = vpop.f32.mrb[46].mxu1  ;;  %v2631_v5 = vadd.f32 1.0, %v4753_v55  ;;  %v2186_v55 = vmul.f32 0.5, %v6290_v13  ;;  %v6747_v13 = vld [vmem:[#allocation11_spill] sm:$0xff] }
 0x29b   : > { %v2252_v9 = vmul.f32 0.044715, %v6308_v25  ;;  %v6315_v31 = vadd.f32 %v2068_v6, %v5898_v38  ;;  %v2070_v46 = vpop.f32.mrb[47].mxu1  ;;  %v2443_v16 = vadd.f32 %v2379_v44, %v6297_v27  ;;  %v2694_v47 = vmul.f32 %v2630_v63, %v2182_v49 }
 0x29c   : > { %v2695_v60 = vmul.f32 %v2631_v5, %v2183_v35  ;;  %v2506_v19 = vmul.f32 0.7978846, %v2442_v39  ;;  %v2187_v44 = vmul.f32 0.5, %v6297_v27 }
 0x29d   : > { %v2316_v56 = vmul.f32 %v2252_v9, %v6308_v25  ;;  %v2253_v8 = vmul.f32 0.044715, %v6315_v31  ;;  %v2507_v3 = vmul.f32 0.7978846, %v2443_v16 }
 0x29e   : > { %3359 = vmatmul.mubr.bf16.gmra.mrb[152].mxu1 %v6743_v29  ;;  %v2739_v48 = vpack.c.bf16 %v2695_v60, %v2694_v47  ;;  %4758 = vtanh.f32 %v2506_v19 }
 0x29f   : > { %v2380_v50 = vmul.f32 %v2316_v56, %v6308_v25  ;;  %v2317_v61 = vmul.f32 %v2253_v8, %v6315_v31  ;;  %3366 = vmatprep.mubr.bf16.mxu1 %v6744_v42  ;;  %4760 = vtanh.f32 %v2507_v3  ;;  %v6748_v56 = vld [vmem:[#allocation14_spill] sm:$0xff] }
 0x2a0   : > { %v4755_v40 = vpop.eup %4754  ;;  %v2073_v58 = vpop.f32.mrb[48].mxu1  ;;  %4404 = vmatmul.mubr.bf16.gmra.mrb[208].mxu0 %v2739_v48 }
 0x2a1   : > { %v4757_v62 = vpop.eup %4756  ;;  %v2381_v11 = vmul.f32 %v2317_v61, %v6315_v31  ;;  %v6326_v32 = vadd.f32 %v2073_v58, %v5898_v38  ;;  %v2075_v33 = vpop.f32.mrb[49].mxu1  ;;  %v2632_v26 = vadd.f32 1.0, %v4755_v40  ;;  %v2444_v30 = vadd.f32 %v2380_v50, %v6308_v25 }
 0x2a2   : > { %v2076_v22 = vpop.f32.mrb[50].mxu1  ;;  %v2633_v18 = vadd.f32 1.0, %v4757_v62  ;;  %v2188_v62 = vmul.f32 0.5, %v6308_v25  ;;  %v6749_v25 = vld [vmem:[#allocation13_spill] sm:$0xff] }
 0x2a3   : > { %v2254_v43 = vmul.f32 0.044715, %v6326_v32  ;;  %v6333_v59 = vadd.f32 %v2076_v22, %v5898_v38  ;;  %v2078_v37 = vpop.f32.mrb[51].mxu1  ;;  %v2445_v10 = vadd.f32 %v2381_v11, %v6315_v31  ;;  %v2696_v45 = vmul.f32 %v2632_v26, %v2184_v28 }
 0x2a4   : > { %v2697_v57 = vmul.f32 %v2633_v18, %v2185_v36  ;;  %v2508_v12 = vmul.f32 0.7978846, %v2444_v30  ;;  %v2189_v11 = vmul.f32 0.5, %v6315_v31 }
 0x2a5   : > { %v2318_v1 = vmul.f32 %v2254_v43, %v6326_v32  ;;  %v2255_v34 = vmul.f32 0.044715, %v6333_v59  ;;  %v2509_v53 = vmul.f32 0.7978846, %v2445_v10 }
 0x2a6   : > { %3367 = vmatmul.mubr.bf16.gmra.mrb[156].mxu1 %v6745_v41  ;;  %v2740_v54 = vpack.c.bf16 %v2697_v57, %v2696_v45  ;;  %4762 = vtanh.f32 %v2508_v12 }
 0x2a7   : > { %v2382_v4 = vmul.f32 %v2318_v1, %v6326_v32  ;;  %v2319_v24 = vmul.f32 %v2255_v34, %v6333_v59  ;;  %3374 = vmatprep.mubr.bf16.mxu1 %v6746_v0  ;;  %4764 = vtanh.f32 %v2509_v53  ;;  %v6750_v1 = vld [vmem:[#allocation16_spill] sm:$0xff] }
 0x2a8   : > { %v4759_v23 = vpop.eup %4758  ;;  %v2081_v52 = vpop.f32.mrb[52].mxu1  ;;  %4407 = vmatprep.mubr.bf16.mxu0 %v2740_v54 }
 0x2a9   : > { %v4761_v14 = vpop.eup %4760  ;;  %v2383_v17 = vmul.f32 %v2319_v24, %v6333_v59  ;;  %v6344_v21 = vadd.f32 %v2081_v52, %v5898_v38  ;;  %v2083_v15 = vpop.f32.mrb[53].mxu1  ;;  %v2634_v20 = vadd.f32 1.0, %v4759_v23  ;;  %v2446_v7 = vadd.f32 %v2382_v4, %v6326_v32 }
 0x2aa   : > { %v2084_v2 = vpop.f32.mrb[54].mxu1  ;;  %v2635_v51 = vadd.f32 1.0, %v4761_v14  ;;  %v2190_v14 = vmul.f32 0.5, %v6326_v32  ;;  %v6751_v32 = vld [vmem:[#allocation15_spill] sm:$0xff] }
 0x2ab   : > { %v2256_v63 = vmul.f32 0.044715, %v6344_v21  ;;  %v6351_v39 = vadd.f32 %v2084_v2, %v5898_v38  ;;  %v2086_v6 = vpop.f32.mrb[55].mxu1  ;;  %v2447_v49 = vadd.f32 %v2383_v17, %v6333_v59  ;;  %v2698_v35 = vmul.f32 %v2634_v20, %v2186_v55 }
 0x2ac   : > { %v2699_v5 = vmul.f32 %v2635_v51, %v2187_v44  ;;  %v2510_v9 = vmul.f32 0.7978846, %v2446_v7  ;;  %v2191_v17 = vmul.f32 0.5, %v6333_v59 }
 0x2ad   : > { %v2320_v46 = vmul.f32 %v2256_v63, %v6344_v21  ;;  %v2257_v16 = vmul.f32 0.044715, %v6351_v39  ;;  %v2511_v47 = vmul.f32 0.7978846, %v2447_v49 }
 0x2ae   : > { %3375 = vmatmul.mubr.bf16.gmra.mrb[160].mxu1 %v6747_v13  ;;  %v2741_v27 = vpack.c.bf16 %v2699_v5, %v2698_v35  ;;  %4766 = vtanh.f32 %v2510_v9 }
 0x2af   : > { %v2384_v60 = vmul.f32 %v2320_v46, %v6344_v21  ;;  %v2321_v19 = vmul.f32 %v2257_v16, %v6351_v39  ;;  %3382 = vmatprep.mubr.bf16.mxu1 %v6748_v56  ;;  %4768 = vtanh.f32 %v2511_v47  ;;  %v6752_v46 = vld [vmem:[#allocation18_spill] sm:$0xff] }
 0x2b0   : > { %v4763_v8 = vpop.eup %4762  ;;  %v2089_v3 = vpop.f32.mrb[56].mxu1  ;;  %4408 = vmatmul.mubr.bf16.gmra.mrb[212].mxu0 %v2741_v27 }
 0x2b1   : > { %v4765_v29 = vpop.eup %4764  ;;  %v2385_v48 = vmul.f32 %v2321_v19, %v6351_v39  ;;  %v6362_v50 = vadd.f32 %v2089_v3, %v5898_v38  ;;  %v2091_v61 = vpop.f32.mrb[57].mxu1  ;;  %v2636_v42 = vadd.f32 1.0, %v4763_v8  ;;  %v2448_v40 = vadd.f32 %v2384_v60, %v6344_v21 }
 0x2b2   : > { %v2092_v58 = vpop.f32.mrb[58].mxu1  ;;  %v2637_v33 = vadd.f32 1.0, %v4765_v29  ;;  %v2192_v29 = vmul.f32 0.5, %v6344_v21  ;;  %v6753_v21 = vld [vmem:[#allocation17_spill] sm:$0xff] }
 0x2b3   : > { %v2258_v26 = vmul.f32 0.044715, %v6362_v50  ;;  %v6369_v30 = vadd.f32 %v2092_v58, %v5898_v38  ;;  %v2094_v22 = vpop.f32.mrb[59].mxu1  ;;  %v2449_v28 = vadd.f32 %v2385_v48, %v6351_v39  ;;  %v2700_v36 = vmul.f32 %v2636_v42, %v2188_v62 }
 0x2b4   : > { %v2701_v18 = vmul.f32 %v2637_v33, %v2189_v11  ;;  %v2512_v43 = vmul.f32 0.7978846, %v2448_v40  ;;  %v2193_v48 = vmul.f32 0.5, %v6351_v39 }
 0x2b5   : > { %v2322_v37 = vmul.f32 %v2258_v26, %v6362_v50  ;;  %v2259_v10 = vmul.f32 0.044715, %v6369_v30  ;;  %v2513_v45 = vmul.f32 0.7978846, %v2449_v28 }
 0x2b6   : > { %3383 = vmatmul.mubr.bf16.gmra.mrb[164].mxu1 %v6749_v25  ;;  %v2742_v31 = vpack.c.bf16 %v2701_v18, %v2700_v36  ;;  %4770 = vtanh.f32 %v2512_v43 }
 0x2b7   : > { %v2386_v57 = vmul.f32 %v2322_v37, %v6362_v50  ;;  %v2323_v12 = vmul.f32 %v2259_v10, %v6369_v30  ;;  %3390 = vmatprep.mubr.bf16.mxu1 %v6750_v1  ;;  %4772 = vtanh.f32 %v2513_v45  ;;  %v6754_v37 = vld [vmem:[#allocation20_spill] sm:$0xff] }
 0x2b8   : > { %v4767_v34 = vpop.eup %4766  ;;  %v2097_v53 = vpop.f32.mrb[60].mxu1  ;;  %4411 = vmatprep.mubr.bf16.mxu0 %v2742_v31 }
 0x2b9   : > { %v4769_v41 = vpop.eup %4768  ;;  %v2387_v54 = vmul.f32 %v2323_v12, %v6369_v30  ;;  %v6380_v4 = vadd.f32 %v2097_v53, %v5898_v38  ;;  %v2099_v24 = vpop.f32.mrb[61].mxu1  ;;  %v2638_v0 = vadd.f32 1.0, %v4767_v34  ;;  %v2450_v23 = vadd.f32 %v2386_v57, %v6362_v50 }
 0x2ba   : > { %v2100_v52 = vpop.f32.mrb[62].mxu1  ;;  %v2639_v15 = vadd.f32 1.0, %v4769_v41  ;;  %v2194_v41 = vmul.f32 0.5, %v6362_v50  ;;  %v6755_v50 = vld [vmem:[#allocation19_spill] sm:$0xff] }
 0x2bb   : > { %v2260_v20 = vmul.f32 0.044715, %v6380_v4  ;;  %v6387_v7 = vadd.f32 %v2100_v52, %v5898_v38  ;;  %v2102_v2 = vpop.f32.mrb[63].mxu1  ;;  %v2451_v55 = vadd.f32 %v2387_v54, %v6369_v30  ;;  %v2702_v44 = vmul.f32 %v2638_v0, %v2190_v14 }
 0x2bc   : > { %v2703_v51 = vmul.f32 %v2639_v15, %v2191_v17  ;;  %v2514_v63 = vmul.f32 0.7978846, %v2450_v23  ;;  %v2195_v54 = vmul.f32 0.5, %v6369_v30 }
 0x2bd   : > { %v2324_v6 = vmul.f32 %v2260_v20, %v6380_v4  ;;  %v2261_v49 = vmul.f32 0.044715, %v6387_v7  ;;  %v2515_v35 = vmul.f32 0.7978846, %v2451_v55 }
 0x2be   : > { %3391 = vmatmul.mubr.bf16.gmra.mrb[168].mxu1 %v6751_v32  ;;  %v2743_v59 = vpack.c.bf16 %v2703_v51, %v2702_v44  ;;  %4774 = vtanh.f32 %v2514_v63 }
 0x2bf   : > { %v2388_v5 = vmul.f32 %v2324_v6, %v6380_v4  ;;  %v2325_v9 = vmul.f32 %v2261_v49, %v6387_v7  ;;  %3398 = vmatprep.mubr.bf16.mxu1 %v6752_v46  ;;  %4776 = vtanh.f32 %v2515_v35  ;;  %v6756_v6 = vld [vmem:[#allocation22_spill] sm:$0xff] }
 0x2c0   : > { %v4771_v16 = vpop.eup %4770  ;;  %v2105_v47 = vpop.f32.mrb[64].mxu1  ;;  %4412 = vmatmul.mubr.bf16.gmra.mrb[216].mxu0 %v2743_v59 }
 0x2c1   : > { %v4773_v13 = vpop.eup %4772  ;;  %v2389_v27 = vmul.f32 %v2325_v9, %v6387_v7  ;;  %v6398_v60 = vadd.f32 %v2105_v47, %v5898_v38  ;;  %v2107_v19 = vpop.f32.mrb[65].mxu1  ;;  %v2640_v56 = vadd.f32 1.0, %v4771_v16  ;;  %v2452_v8 = vadd.f32 %v2388_v5, %v6380_v4 }
 0x2c2   : > { %v2108_v3 = vpop.f32.mrb[66].mxu1  ;;  %v2641_v61 = vadd.f32 1.0, %v4773_v13  ;;  %v2196_v13 = vmul.f32 0.5, %v6380_v4  ;;  %v6757_v4 = vld [vmem:[#allocation21_spill] sm:$0xff] }
 0x2c3   : > { %v2262_v42 = vmul.f32 0.044715, %v6398_v60  ;;  %v6405_v40 = vadd.f32 %v2108_v3, %v5898_v38  ;;  %v2110_v58 = vpop.f32.mrb[67].mxu1  ;;  %v2453_v62 = vadd.f32 %v2389_v27, %v6387_v7  ;;  %v2704_v11 = vmul.f32 %v2640_v56, %v2192_v29 }
 0x2c4   : > { %v2705_v33 = vmul.f32 %v2641_v61, %v2193_v48  ;;  %v2516_v26 = vmul.f32 0.7978846, %v2452_v8  ;;  %v2197_v27 = vmul.f32 0.5, %v6387_v7 }
 0x2c5   : > { %v2326_v22 = vmul.f32 %v2262_v42, %v6398_v60  ;;  %v2263_v28 = vmul.f32 0.044715, %v6405_v40  ;;  %v2517_v36 = vmul.f32 0.7978846, %v2453_v62 }
 0x2c6   : > { %3399 = vmatmul.mubr.bf16.gmra.mrb[172].mxu1 %v6753_v21  ;;  %v2744_v39 = vpack.c.bf16 %v2705_v33, %v2704_v11  ;;  %4778 = vtanh.f32 %v2516_v26 }
 0x2c7   : > { %v2390_v18 = vmul.f32 %v2326_v22, %v6398_v60  ;;  %v2327_v43 = vmul.f32 %v2263_v28, %v6405_v40  ;;  %3406 = vmatprep.mubr.bf16.mxu1 %v6754_v37  ;;  %4780 = vtanh.f32 %v2517_v36  ;;  %v6758_v22 = vld [vmem:[#allocation24_spill] sm:$0xff] }
 0x2c8   : > { %v4775_v10 = vpop.eup %4774  ;;  %v2113_v45 = vpop.f32.mrb[68].mxu1  ;;  %4415 = vmatprep.mubr.bf16.mxu0 %v2744_v39 }
 0x2c9   : > { %v4777_v25 = vpop.eup %4776  ;;  %v2391_v31 = vmul.f32 %v2327_v43, %v6405_v40  ;;  %v6416_v57 = vadd.f32 %v2113_v45, %v5898_v38  ;;  %v2115_v12 = vpop.f32.mrb[69].mxu1  ;;  %v2642_v1 = vadd.f32 1.0, %v4775_v10  ;;  %v2454_v34 = vadd.f32 %v2390_v18, %v6398_v60 }
 0x2ca   : > { %v2116_v53 = vpop.f32.mrb[70].mxu1  ;;  %v2643_v24 = vadd.f32 1.0, %v4777_v25  ;;  %v2198_v25 = vmul.f32 0.5, %v6398_v60  ;;  %v6759_v60 = vld [vmem:[#allocation23_spill] sm:$0xff] }
 0x2cb   : > { %v2264_v0 = vmul.f32 0.044715, %v6416_v57  ;;  %v6423_v23 = vadd.f32 %v2116_v53, %v5898_v38  ;;  %v2118_v52 = vpop.f32.mrb[71].mxu1  ;;  %v2455_v14 = vadd.f32 %v2391_v31, %v6405_v40  ;;  %v2706_v17 = vmul.f32 %v2642_v1, %v2194_v41 }
 0x2cc   : > { %v2707_v15 = vmul.f32 %v2643_v24, %v2195_v54  ;;  %v2518_v20 = vmul.f32 0.7978846, %v2454_v34  ;;  %v2199_v31 = vmul.f32 0.5, %v6405_v40 }
 0x2cd   : > { %v2328_v2 = vmul.f32 %v2264_v0, %v6416_v57  ;;  %v2265_v55 = vmul.f32 0.044715, %v6423_v23  ;;  %v2519_v44 = vmul.f32 0.7978846, %v2455_v14 }
 0x2ce   : > { %3407 = vmatmul.mubr.bf16.gmra.mrb[176].mxu1 %v6755_v50  ;;  %v2745_v30 = vpack.c.bf16 %v2707_v15, %v2706_v17  ;;  %4782 = vtanh.f32 %v2518_v20 }
 0x2cf   : > { %v2392_v51 = vmul.f32 %v2328_v2, %v6416_v57  ;;  %v2329_v63 = vmul.f32 %v2265_v55, %v6423_v23  ;;  %3414 = vmatprep.mubr.bf16.mxu1 %v6756_v6  ;;  %4784 = vtanh.f32 %v2519_v44  ;;  %v6760_v2 = vld [vmem:[#allocation26_spill] sm:$0xff]  ;;  %v1177_v44 = vld [vmem:[%s6670_s7] sm:$0x1] }
 0x2d0   : > { %v4779_v49 = vpop.eup %4778  ;;  %v2121_v35 = vpop.f32.mrb[72].mxu1  ;;  %4416 = vmatmul.mubr.bf16.gmra.mrb[220].mxu0 %v2745_v30 }
 0x2d1   : > { %v4781_v32 = vpop.eup %4780  ;;  %v2393_v59 = vmul.f32 %v2329_v63, %v6423_v23  ;;  %v6434_v5 = vadd.f32 %v2121_v35, %v5898_v38  ;;  %v2123_v9 = vpop.f32.mrb[73].mxu1  ;;  %v2644_v46 = vadd.f32 1.0, %v4779_v49  ;;  %v2456_v16 = vadd.f32 %v2392_v51, %v6416_v57 }
 0x2d2   : > { %v2124_v47 = vpop.f32.mrb[74].mxu1  ;;  %v2645_v19 = vadd.f32 1.0, %v4781_v32  ;;  %v2200_v32 = vmul.f32 0.5, %v6416_v57 }
 0x2d3   : > { %v2266_v56 = vmul.f32 0.044715, %v6434_v5  ;;  %v6441_v8 = vadd.f32 %v2124_v47, %v5898_v38  ;;  %v2126_v3 = vpop.f32.mrb[75].mxu1  ;;  %v2457_v29 = vadd.f32 %v2393_v59, %v6423_v23  ;;  %v2708_v48 = vmul.f32 %v2644_v46, %v2196_v13 }
 0x2d4   : > { %v2709_v61 = vmul.f32 %v2645_v19, %v2197_v27  ;;  %v2520_v42 = vmul.f32 0.7978846, %v2456_v16  ;;  %v2201_v59 = vmul.f32 0.5, %v6423_v23  ;;  %v2752_v16 = vunpack.c.l.bf16 %v1177_v44 }
 0x2d5   : > { %v2330_v58 = vmul.f32 %v2266_v56, %v6434_v5  ;;  %v2267_v62 = vmul.f32 0.044715, %v6441_v8  ;;  %v2521_v11 = vmul.f32 0.7978846, %v2457_v29 }
 0x2d6   : > { %3415 = vmatmul.mubr.bf16.gmra.mrb[180].mxu1 %v6757_v4  ;;  %v2746_v7 = vpack.c.bf16 %v2709_v61, %v2708_v48  ;;  %4786 = vtanh.f32 %v2520_v42  ;;  %v6761_v61 = vld [vmem:[#allocation25_spill] sm:$0xff] }
 0x2d7   : > { %v2394_v33 = vmul.f32 %v2330_v58, %v6434_v5  ;;  %v2331_v26 = vmul.f32 %v2267_v62, %v6441_v8  ;;  %3422 = vmatprep.mubr.bf16.mxu1 %v6758_v22  ;;  %4788 = vtanh.f32 %v2521_v11  ;;  %v6762_v58 = vld [vmem:[#allocation28_spill] sm:$0xff]  ;;  %v6763_v62 = vld [vmem:[#allocation5_spill] sm:$0xff] }
 0x2d8   : > { %v4783_v28 = vpop.eup %4782  ;;  %4419 = vmatprep.mubr.bf16.mxu0 %v2746_v7  ;;  %v6488_v11 = vrot.slane %v2752_v16, %v6763_v62 }
 0x2d9   : > { %v2129_v36 = vpop.f32.mrb[76].mxu1  ;;  %v4785_v21 = vpop.eup %4784  ;;  %v2395_v39 = vmul.f32 %v2331_v26, %v6441_v8  ;;  %v2646_v37 = vadd.f32 1.0, %v4783_v28  ;;  %v2458_v10 = vadd.f32 %v2394_v33, %v6434_v5  ;;  %v2202_v28 = vmul.f32 0.5, %v6434_v5 }
 0x2da   : > { %v6452_v18 = vadd.f32 %v2129_v36, %v5898_v38  ;;  %v2131_v43 = vpop.f32.mrb[77].mxu1  ;;  %v2647_v12 = vadd.f32 1.0, %v4785_v21 }
 0x2db   : > { %v2132_v45 = vpop.f32.mrb[78].mxu1  ;;  %v2459_v41 = vadd.f32 %v2395_v39, %v6441_v8  ;;  %v2710_v54 = vmul.f32 %v2646_v37, %v2198_v25  ;;  %v2522_v0 = vmul.f32 0.7978846, %v2458_v10  ;;  %v2203_v37 = vmul.f32 0.5, %v6441_v8  ;;  %v6764_v8 = vld [vmem:[#allocation27_spill] sm:$0xff] }
 0x2dc   : > { %v2268_v1 = vmul.f32 0.044715, %v6452_v18  ;;  %v6459_v34 = vadd.f32 %v2132_v45, %v5898_v38  ;;  %v2134_v53 = vpop.f32.mrb[79].mxu1  ;;  %v2711_v24 = vmul.f32 %v2647_v12, %v2199_v31 }
 0x2dd   : > { %v2523_v17 = vmul.f32 0.7978846, %v2459_v41  ;;  %4790 = vtanh.f32 %v2522_v0 }
 0x2de   : > { %v2332_v52 = vmul.f32 %v2268_v1, %v6452_v18  ;;  %v2269_v14 = vmul.f32 0.044715, %v6459_v34  ;;  %3423 = vmatmul.mubr.bf16.gmra.mrb[184].mxu1 %v6759_v60  ;;  %v2747_v40 = vpack.c.bf16 %v2711_v24, %v2710_v54 }
 0x2df   : > { %3430 = vmatprep.mubr.bf16.mxu1 %v6760_v2  ;;  %4792 = vtanh.f32 %v2523_v17 }
 0x2e0   : > { %v2396_v15 = vmul.f32 %v2332_v52, %v6452_v18  ;;  %v2333_v20 = vmul.f32 %v2269_v14, %v6459_v34  ;;  %v4787_v55 = vpop.eup %4786  ;;  %4420 = vmatmul.mubr.bf16.gmra.mrb[224].mxu0 %v2747_v40 }
 0x2e1   : > { %v4789_v50 = vpop.eup %4788  ;;  %v2137_v51 = vpop.f32.mrb[80].mxu1  ;;  %v2648_v63 = vadd.f32 1.0, %v4787_v55 }
 0x2e2   : > { %v2397_v30 = vmul.f32 %v2333_v20, %v6459_v34  ;;  %v2460_v6 = vadd.f32 %v2396_v15, %v6452_v18  ;;  %v6474_v49 = vadd.f32 %v2137_v51, %v5898_v38  ;;  %v2139_v35 = vpop.f32.mrb[81].mxu1  ;;  %v2649_v9 = vadd.f32 1.0, %v4789_v50  ;;  %v6765_v15 = vld [vmem:[#allocation30_spill] sm:$0xff] }
 0x2e3   : > { %v2140_v46 = vpop.f32.mrb[82].mxu1  ;;  %v2712_v3 = vmul.f32 %v2648_v63, %v2200_v32  ;;  %v2205_v35 = vmul.f32 0.5, %v6459_v34 }
 0x2e4   : > { %v2461_v47 = vadd.f32 %v2397_v30, %v6459_v34  ;;  %v2524_v13 = vmul.f32 0.7978846, %v2460_v6  ;;  %v2270_v27 = vmul.f32 0.044715, %v6474_v49  ;;  %v6481_v19 = vadd.f32 %v2140_v46, %v5898_v38  ;;  %v2142_v56 = vpop.f32.mrb[83].mxu1 }
 0x2e5   : > { %v2713_v29 = vmul.f32 %v2649_v9, %v2201_v59  ;;  %v2204_v30 = vmul.f32 0.5, %v6452_v18  ;;  %v6767_v56 = vld [vmem:[#allocation32_spill] sm:$0xff] }
 0x2e6   : > { %v2525_v48 = vmul.f32 0.7978846, %v2461_v47  ;;  %4794 = vtanh.f32 %v2524_v13  ;;  %v2334_v57 = vmul.f32 %v2270_v27, %v6474_v49  ;;  %v2271_v23 = vmul.f32 0.044715, %v6481_v19  ;;  %3431 = vmatmul.mubr.bf16.gmra.mrb[188].mxu1 %v6761_v61  ;;  %v6766_v27 = vld [vmem:[#allocation29_spill] sm:$0xff] }
 0x2e7   : > { %v2748_v42 = vpack.c.bf16 %v2713_v29, %v2712_v3  ;;  %3438 = vmatprep.mubr.bf16.mxu1 %v6762_v58  ;;  %v4791_v38 = vpop.eup %4790 }
 0x2e8   : > { %4796 = vtanh.f32 %v2525_v48  ;;  %v2398_v4 = vmul.f32 %v2334_v57, %v6474_v49  ;;  %v2335_v7 = vmul.f32 %v2271_v23, %v6481_v19  ;;  %v2650_v36 = vadd.f32 1.0, %v4791_v38 }
 0x2e9   : > { %4423 = vmatprep.mubr.bf16.mxu0 %v2748_v42  ;;  %v4793_v33 = vpop.eup %4792  ;;  %v3224_v26 = vpop.f32.mrb[84].mxu1  ;;  %v2206_v38 = vmul.f32 0.5, %v6474_v49 }
 0x2ea   : > { %v4369_v22 = vpop.f32.mrb[172].mxu0  ;;  %v2399_v21 = vmul.f32 %v2335_v7, %v6481_v19  ;;  %v3226_v39 = vpop.f32.mrb[85].mxu1  ;;  %v2651_v10 = vadd.f32 1.0, %v4793_v33  ;;  %v2462_v45 = vadd.f32 %v2398_v4, %v6474_v49  ;;  %v2714_v41 = vmul.f32 %v2650_v36, %v2202_v28 }
 0x2eb   : > { %v2839_v43 = vpop.f32.mrb[173].mxu0  ;;  %v3227_v25 = vpop.f32.mrb[86].mxu1  ;;  %v2848_v20 = vadd.f32 %v4369_v22, %v6488_v11  ;;  %v2207_v4 = vmul.f32 0.5, %v6481_v19  ;;  %v6768_v39 = vld [vmem:[#allocation31_spill] sm:$0xff] }
 0x2ec   : > { %v2840_v31 = vadd.f32 %v2839_v43, %v6488_v11  ;;  %v4370_v12 = vpop.f32.mrb[174].mxu0  ;;  %v3229_v1 = vpop.f32.mrb[87].mxu1  ;;  %v2715_v5 = vmul.f32 %v2651_v10, %v2203_v37  ;;  %v2463_v54 = vadd.f32 %v2399_v21, %v6481_v19  ;;  %v2526_v24 = vmul.f32 0.7978846, %v2462_v45  ;;  %v6769_v37 = vld [vmem:[#allocation34_spill] sm:$0xff] }
 0x2ed   : > { %v2842_v53 = vpop.f32.mrb[175].mxu0  ;;  %v2851_v51 = vadd.f32 %v4370_v12, %v6488_v11 }
 0x2ee   : > { %v3225_v0 = vadd.f32 %v3224_v26, %v2840_v31  ;;  %v2843_v52 = vadd.f32 %v2842_v53, %v6488_v11  ;;  %3439 = vmatmul.mubr.bf16.gmra.mrb[192].mxu1 %v6764_v8  ;;  %v2749_v14 = vpack.c.bf16 %v2715_v5, %v2714_v41  ;;  %v2527_v17 = vmul.f32 0.7978846, %v2463_v54  ;;  %v6770_v54 = vld [vmem:[#allocation33_spill] sm:$0xff] }
 0x2ef   : > { %4798 = vtanh.f32 %v2526_v24  ;;  %3446 = vmatprep.mubr.bf16.mxu1 %v6765_v15  ;;  %v6771_v24 = vld [vmem:[#allocation36_spill] sm:$0xff] }
 0x2f0   : > { %v4795_v60 = vpop.eup %4794  ;;  %v3228_v40 = vadd.f32 %v3227_v25, %v2843_v52  ;;  %4424 = vmatmul.mubr.bf16.gmra.mrb[228].mxu0 %v2749_v14  ;;  %4800 = vtanh.f32 %v2527_v17 }
 0x2f1   : > { %v2652_v2 = vadd.f32 1.0, %v4795_v60  ;;  %v3232_v50 = vpop.f32.mrb[88].mxu1 }
 0x2f2   : > { %v4797_v55 = vpop.eup %4796  ;;  %v4123_v44 = vpack.c.bf16 %v3228_v40, %v3225_v0  ;;  %v3233_v63 = vadd.f32 %v3232_v50, %v2848_v20  ;;  %v3234_v6 = vpop.f32.mrb[89].mxu1 }
 0x2f3   : > { %v2653_v32 = vadd.f32 1.0, %v4797_v55  ;;  %v3235_v59 = vpop.f32.mrb[90].mxu1  ;;  %v2716_v16 = vmul.f32 %v2652_v2, %v2204_v30 }
 0x2f4   : > { %4124 = vst [vmem:[%s6508_s24] sm:$0xff] %v4123_v44   ;;  %v3236_v9 = vadd.f32 %v3235_v59, %v2851_v51  ;;  %v3237_v46 = vpop.f32.mrb[91].mxu1  ;;  %v6772_v44 = vld [vmem:[#allocation35_spill] sm:$0xff] }
 0x2f5   : > { %v2717_v47 = vmul.f32 %v2653_v32, %v2205_v35 }
 0x2f6   : > { %v4128_v13 = vpack.c.bf16 %v3236_v9, %v3233_v63  ;;  %3447 = vmatmul.mubr.bf16.gmra.mrb[196].mxu1 %v6766_v27 }
 0x2f7   : > { %v2750_v18 = vpack.c.bf16 %v2717_v47, %v2716_v16  ;;  %3454 = vmatprep.mubr.bf16.mxu1 %v6767_v56 }
 0x2f8   : > { %4280 = vst [vmem:[%s6508_s24 + $0x8] sm:$0xff] %v4128_v13  }
 0x2f9   : > { %v4799_v3 = vpop.eup %4798  ;;  %4427 = vmatprep.mubr.bf16.mxu0 %v2750_v18  ;;  %v3240_v34 = vpop.f32.mrb[92].mxu1 }
 0x2fa   : > { %v4373_v29 = vpop.f32.mrb[176].mxu0  ;;  %v2654_v48 = vadd.f32 1.0, %v4799_v3  ;;  %v4801_v57 = vpop.eup %4800 }
 0x2fb   : > { %v3242_v23 = vpop.f32.mrb[93].mxu1  ;;  %v2855_v61 = vpop.f32.mrb[177].mxu0  ;;  %v2655_v7 = vadd.f32 1.0, %v4801_v57  ;;  %v2864_v49 = vadd.f32 %v4373_v29, %v6488_v11 }
 0x2fc   : > { %v3243_v42 = vpop.f32.mrb[94].mxu1  ;;  %v2856_v58 = vadd.f32 %v2855_v61, %v6488_v11  ;;  %v4374_v62 = vpop.f32.mrb[178].mxu0  ;;  %v2718_v36 = vmul.f32 %v2654_v48, %v2206_v38 }
 0x2fd   : > { %v3245_v33 = vpop.f32.mrb[95].mxu1  ;;  %v2858_v26 = vpop.f32.mrb[179].mxu0  ;;  %v2719_v21 = vmul.f32 %v2655_v7, %v2207_v4  ;;  %v2867_v25 = vadd.f32 %v4374_v62, %v6488_v11 }
 0x2fe   : > { %v3241_v22 = vadd.f32 %v3240_v34, %v2856_v58  ;;  %v2859_v28 = vadd.f32 %v2858_v26, %v6488_v11  ;;  %3455 = vmatmul.mubr.bf16.gmra.mrb[200].mxu1 %v6768_v39 }
 0x2ff   : > { %3462 = vmatprep.mubr.bf16.mxu1 %v6769_v37  ;;  %v2751_v10 = vpack.c.bf16 %v2719_v21, %v2718_v36 }
 0x300   : > { %v3244_v43 = vadd.f32 %v3243_v42, %v2859_v28 }
 0x301   : > { %4428 = vmatmul.mubr.bf16.gmra.mrb[232].mxu0 %v2751_v10  ;;  %v3248_v19 = vpop.f32.mrb[96].mxu1 }
 0x302   : > { %v4133_v45 = vpack.c.bf16 %v3244_v43, %v3241_v22  ;;  %v3249_v31 = vadd.f32 %v3248_v19, %v2864_v49  ;;  %v3250_v12 = vpop.f32.mrb[97].mxu1 }
 0x303   : > { %v3251_v1 = vpop.f32.mrb[98].mxu1 }
 0x304   : > { %4281 = vst [vmem:[%s6508_s24 + $0x10] sm:$0xff] %v4133_v45   ;;  %v3252_v53 = vadd.f32 %v3251_v1, %v2867_v25  ;;  %v3253_v41 = vpop.f32.mrb[99].mxu1 }
 0x306   : > { %v4138_v5 = vpack.c.bf16 %v3252_v53, %v3249_v31  ;;  %3463 = vmatmul.mubr.bf16.gmra.mrb[204].mxu1 %v6770_v54 }
 0x307   : > { %3470 = vmatprep.mubr.bf16.mxu1 %v6771_v24 }
 0x308   : > { %4282 = vst [vmem:[%s6508_s24 + $0x18] sm:$0xff] %v4138_v5  }
 0x309   : > { %v3256_v0 = vpop.f32.mrb[100].mxu1 }
 0x30a   : > { %v4377_v52 = vpop.f32.mrb[180].mxu0  ;;  %v3258_v8 = vpop.f32.mrb[101].mxu1 }
 0x30b   : > { %v2871_v14 = vpop.f32.mrb[181].mxu0  ;;  %v3259_v17 = vpop.f32.mrb[102].mxu1  ;;  %v2880_v30 = vadd.f32 %v4377_v52, %v6488_v11 }
 0x30c   : > { %v2872_v60 = vadd.f32 %v2871_v14, %v6488_v11  ;;  %v4378_v40 = vpop.f32.mrb[182].mxu0  ;;  %v3261_v15 = vpop.f32.mrb[103].mxu1 }
 0x30d   : > { %v2874_v20 = vpop.f32.mrb[183].mxu0  ;;  %v2883_v6 = vadd.f32 %v4378_v40, %v6488_v11 }
 0x30e   : > { %v3257_v2 = vadd.f32 %v3256_v0, %v2872_v60  ;;  %v2875_v55 = vadd.f32 %v2874_v20, %v6488_v11  ;;  %3471 = vmatmul.mubr.bf16.gmra.mrb[208].mxu1 %v6772_v44 }
 0x310   : > { %v3260_v50 = vadd.f32 %v3259_v17, %v2875_v55 }
 0x311   : > { %v3264_v63 = vpop.f32.mrb[104].mxu1 }
 0x312   : > { %v4143_v51 = vpack.c.bf16 %v3260_v50, %v3257_v2  ;;  %v3265_v35 = vadd.f32 %v3264_v63, %v2880_v30  ;;  %v3266_v32 = vpop.f32.mrb[105].mxu1 }
 0x313   : > { %v3267_v59 = vpop.f32.mrb[106].mxu1 }
 0x314   : > { %4283 = vst [vmem:[%s6508_s24 + $0x20] sm:$0xff] %v4143_v51   ;;  %v3268_v9 = vadd.f32 %v3267_v59, %v2883_v6  ;;  %v3269_v46 = vpop.f32.mrb[107].mxu1 }
 0x316   : > { %v4148_v16 = vpack.c.bf16 %v3268_v9, %v3265_v35 }
 0x318   : > { %4284 = vst [vmem:[%s6508_s24 + $0x28] sm:$0xff] %v4148_v16  }
 0x319   : > { %v3272_v47 = vpop.f32.mrb[108].mxu1 }
 0x31a   : > { %v4381_v13 = vpop.f32.mrb[184].mxu0  ;;  %v3274_v27 = vpop.f32.mrb[109].mxu1 }
 0x31b   : > { %v2887_v18 = vpop.f32.mrb[185].mxu0  ;;  %v3275_v56 = vpop.f32.mrb[110].mxu1  ;;  %v2896_v42 = vadd.f32 %v4381_v13, %v6488_v11 }
 0x31c   : > { %v2888_v3 = vadd.f32 %v2887_v18, %v6488_v11  ;;  %v4382_v34 = vpop.f32.mrb[186].mxu0  ;;  %v3277_v29 = vpop.f32.mrb[111].mxu1 }
 0x31d   : > { %v2890_v48 = vpop.f32.mrb[187].mxu0  ;;  %v2899_v38 = vadd.f32 %v4382_v34, %v6488_v11 }
 0x31e   : > { %v3273_v57 = vadd.f32 %v3272_v47, %v2888_v3  ;;  %v2891_v23 = vadd.f32 %v2890_v48, %v6488_v11 }
 0x320   : > { %v3276_v61 = vadd.f32 %v3275_v56, %v2891_v23 }
 0x321   : > { %v3280_v62 = vpop.f32.mrb[112].mxu1 }
 0x322   : > { %v4153_v58 = vpack.c.bf16 %v3276_v61, %v3273_v57  ;;  %v3281_v4 = vadd.f32 %v3280_v62, %v2896_v42  ;;  %v3282_v7 = vpop.f32.mrb[113].mxu1 }
 0x323   : > { %v3283_v33 = vpop.f32.mrb[114].mxu1 }
 0x324   : > { %4285 = vst [vmem:[%s6508_s24 + $0x30] sm:$0xff] %v4153_v58   ;;  %v3284_v26 = vadd.f32 %v3283_v33, %v2899_v38  ;;  %v3285_v22 = vpop.f32.mrb[115].mxu1 }
 0x326   : > { %v4158_v28 = vpack.c.bf16 %v3284_v26, %v3281_v4 }
 0x328   : > { %4286 = vst [vmem:[%s6508_s24 + $0x38] sm:$0xff] %v4158_v28  }
 0x329   : > { %v3288_v36 = vpop.f32.mrb[116].mxu1 }
 0x32a   : > { %v4385_v21 = vpop.f32.mrb[188].mxu0  ;;  %v3290_v39 = vpop.f32.mrb[117].mxu1 }
 0x32b   : > { %v2903_v43 = vpop.f32.mrb[189].mxu0  ;;  %v3291_v37 = vpop.f32.mrb[118].mxu1  ;;  %v2912_v1 = vadd.f32 %v4385_v21, %v6488_v11 }
 0x32c   : > { %v2904_v10 = vadd.f32 %v2903_v43, %v6488_v11  ;;  %v4386_v49 = vpop.f32.mrb[190].mxu0  ;;  %v3293_v45 = vpop.f32.mrb[119].mxu1 }
 0x32d   : > { %v2906_v19 = vpop.f32.mrb[191].mxu0  ;;  %v2915_v5 = vadd.f32 %v4386_v49, %v6488_v11 }
 0x32e   : > { %v3289_v25 = vadd.f32 %v3288_v36, %v2904_v10  ;;  %v2907_v31 = vadd.f32 %v2906_v19, %v6488_v11 }
 0x330   : > { %v3292_v12 = vadd.f32 %v3291_v37, %v2907_v31 }
 0x331   : > { %v3296_v41 = vpop.f32.mrb[120].mxu1 }
 0x332   : > { %v4163_v53 = vpack.c.bf16 %v3292_v12, %v3289_v25  ;;  %v3297_v54 = vadd.f32 %v3296_v41, %v2912_v1  ;;  %v3298_v24 = vpop.f32.mrb[121].mxu1 }
 0x333   : > { %v3299_v0 = vpop.f32.mrb[122].mxu1 }
 0x334   : > { %4287 = vst [vmem:[%s6508_s24 + $0x40] sm:$0xff] %v4163_v53   ;;  %v4389_v52 = vpop.f32.mrb[192].mxu0  ;;  %v3300_v8 = vadd.f32 %v3299_v0, %v2915_v5  ;;  %v3301_v14 = vpop.f32.mrb[123].mxu1 }
 0x335   : > { %v2919_v17 = vpop.f32.mrb[193].mxu0  ;;  %v2928_v35 = vadd.f32 %v4389_v52, %v6488_v11 }
 0x336   : > { %v4390_v60 = vpop.f32.mrb[194].mxu0  ;;  %v4168_v40 = vpack.c.bf16 %v3300_v8, %v3297_v54  ;;  %v2920_v15 = vadd.f32 %v2919_v17, %v6488_v11 }
 0x337   : > { %v2922_v20 = vpop.f32.mrb[195].mxu0  ;;  %v2931_v59 = vadd.f32 %v4390_v60, %v6488_v11 }
 0x338   : > { %4288 = vst [vmem:[%s6508_s24 + $0x48] sm:$0xff] %v4168_v40   ;;  %v2923_v2 = vadd.f32 %v2922_v20, %v6488_v11 }
 0x339   : > { %v3304_v55 = vpop.f32.mrb[124].mxu1 }
 0x33a   : > { %v3305_v44 = vadd.f32 %v3304_v55, %v2920_v15  ;;  %v3306_v50 = vpop.f32.mrb[125].mxu1 }
 0x33b   : > { %v3307_v30 = vpop.f32.mrb[126].mxu1 }
 0x33c   : > { %v3308_v51 = vadd.f32 %v3307_v30, %v2923_v2  ;;  %v3309_v63 = vpop.f32.mrb[127].mxu1 }
 0x33e   : > { %v4173_v6 = vpack.c.bf16 %v3308_v51, %v3305_v44 }
 0x340   : > { %4289 = vst [vmem:[%s6508_s24 + $0x50] sm:$0xff] %v4173_v6  }
 0x341   : > { %v3312_v32 = vpop.f32.mrb[128].mxu1 }
 0x342   : > { %v3313_v9 = vadd.f32 %v3312_v32, %v2928_v35  ;;  %v3314_v46 = vpop.f32.mrb[129].mxu1  ;;  %v4393_v47 = vpop.f32.mrb[196].mxu0 }
 0x343   : > { %v3315_v16 = vpop.f32.mrb[130].mxu1  ;;  %v2935_v18 = vpop.f32.mrb[197].mxu0  ;;  %v2944_v4 = vadd.f32 %v4393_v47, %v6488_v11 }
 0x344   : > { %v3316_v13 = vadd.f32 %v3315_v16, %v2931_v59  ;;  %v3317_v27 = vpop.f32.mrb[131].mxu1  ;;  %v4394_v56 = vpop.f32.mrb[198].mxu0  ;;  %v2936_v29 = vadd.f32 %v2935_v18, %v6488_v11 }
 0x345   : > { %v2938_v34 = vpop.f32.mrb[199].mxu0  ;;  %v2947_v33 = vadd.f32 %v4394_v56, %v6488_v11 }
 0x346   : > { %v4178_v3 = vpack.c.bf16 %v3316_v13, %v3313_v9  ;;  %v2939_v57 = vadd.f32 %v2938_v34, %v6488_v11 }
 0x348   : > { %4290 = vst [vmem:[%s6508_s24 + $0x58] sm:$0xff] %v4178_v3  }
 0x349   : > { %v3320_v48 = vpop.f32.mrb[132].mxu1 }
 0x34a   : > { %v3321_v23 = vadd.f32 %v3320_v48, %v2936_v29  ;;  %v3322_v61 = vpop.f32.mrb[133].mxu1 }
 0x34b   : > { %v3323_v42 = vpop.f32.mrb[134].mxu1 }
 0x34c   : > { %v3324_v58 = vadd.f32 %v3323_v42, %v2939_v57  ;;  %v3325_v62 = vpop.f32.mrb[135].mxu1 }
 0x34e   : > { %v4183_v38 = vpack.c.bf16 %v3324_v58, %v3321_v23 }
 0x350   : > { %4291 = vst [vmem:[%s6508_s24 + $0x60] sm:$0xff] %v4183_v38  }
 0x351   : > { %v3328_v7 = vpop.f32.mrb[136].mxu1 }
 0x352   : > { %v3329_v26 = vadd.f32 %v3328_v7, %v2944_v4  ;;  %v3330_v22 = vpop.f32.mrb[137].mxu1  ;;  %v4397_v36 = vpop.f32.mrb[200].mxu0 }
 0x353   : > { %v3331_v28 = vpop.f32.mrb[138].mxu1  ;;  %v2951_v43 = vpop.f32.mrb[201].mxu0  ;;  %v2960_v54 = vadd.f32 %v4397_v36, %v6488_v11 }
 0x354   : > { %v3332_v21 = vadd.f32 %v3331_v28, %v2947_v33  ;;  %v3333_v39 = vpop.f32.mrb[139].mxu1  ;;  %v4398_v37 = vpop.f32.mrb[202].mxu0  ;;  %v2952_v45 = vadd.f32 %v2951_v43, %v6488_v11 }
 0x355   : > { %v2954_v49 = vpop.f32.mrb[203].mxu0  ;;  %v2963_v0 = vadd.f32 %v4398_v37, %v6488_v11 }
 0x356   : > { %v4188_v10 = vpack.c.bf16 %v3332_v21, %v3329_v26  ;;  %v2955_v25 = vadd.f32 %v2954_v49, %v6488_v11 }
 0x358   : > { %4292 = vst [vmem:[%s6508_s24 + $0x68] sm:$0xff] %v4188_v10  }
 0x359   : > { %v3336_v19 = vpop.f32.mrb[140].mxu1 }
 0x35a   : > { %v3337_v31 = vadd.f32 %v3336_v19, %v2952_v45  ;;  %v3338_v12 = vpop.f32.mrb[141].mxu1 }
 0x35b   : > { %v3339_v1 = vpop.f32.mrb[142].mxu1 }
 0x35c   : > { %v3340_v53 = vadd.f32 %v3339_v1, %v2955_v25  ;;  %v3341_v41 = vpop.f32.mrb[143].mxu1 }
 0x35e   : > { %v4193_v5 = vpack.c.bf16 %v3340_v53, %v3337_v31 }
 0x360   : > { %4293 = vst [vmem:[%s6508_s24 + $0x70] sm:$0xff] %v4193_v5  }
 0x361   : > { %v3344_v24 = vpop.f32.mrb[144].mxu1 }
 0x362   : > { %v3345_v52 = vadd.f32 %v3344_v24, %v2960_v54  ;;  %v3346_v8 = vpop.f32.mrb[145].mxu1  ;;  %v4401_v17 = vpop.f32.mrb[204].mxu0 }
 0x363   : > { %v3347_v14 = vpop.f32.mrb[146].mxu1  ;;  %v2967_v15 = vpop.f32.mrb[205].mxu0  ;;  %v2976_v9 = vadd.f32 %v4401_v17, %v6488_v11 }
 0x364   : > { %v3348_v60 = vadd.f32 %v3347_v14, %v2963_v0  ;;  %v3349_v40 = vpop.f32.mrb[147].mxu1  ;;  %v4402_v20 = vpop.f32.mrb[206].mxu0  ;;  %v2968_v44 = vadd.f32 %v2967_v15, %v6488_v11 }
 0x365   : > { %v2970_v55 = vpop.f32.mrb[207].mxu0  ;;  %v2979_v16 = vadd.f32 %v4402_v20, %v6488_v11 }
 0x366   : > { %v4198_v2 = vpack.c.bf16 %v3348_v60, %v3345_v52  ;;  %v2971_v30 = vadd.f32 %v2970_v55, %v6488_v11 }
 0x368   : > { %4294 = vst [vmem:[%s6508_s24 + $0x78] sm:$0xff] %v4198_v2  }
 0x369   : > { %v3352_v50 = vpop.f32.mrb[148].mxu1 }
 0x36a   : > { %v3353_v51 = vadd.f32 %v3352_v50, %v2968_v44  ;;  %v3354_v63 = vpop.f32.mrb[149].mxu1 }
 0x36b   : > { %v3355_v6 = vpop.f32.mrb[150].mxu1 }
 0x36c   : > { %v3356_v35 = vadd.f32 %v3355_v6, %v2971_v30  ;;  %v3357_v32 = vpop.f32.mrb[151].mxu1 }
 0x36e   : > { %v4203_v59 = vpack.c.bf16 %v3356_v35, %v3353_v51 }
 0x370   : > { %4295 = vst [vmem:[%s6508_s24 + $0x80] sm:$0xff] %v4203_v59  }
 0x371   : > { %v3360_v46 = vpop.f32.mrb[152].mxu1 }
 0x372   : > { %v3361_v47 = vadd.f32 %v3360_v46, %v2976_v9  ;;  %v3362_v13 = vpop.f32.mrb[153].mxu1 }
 0x373   : > { %v3363_v27 = vpop.f32.mrb[154].mxu1  ;;  %v4405_v18 = vpop.f32.mrb[208].mxu0 }
 0x374   : > { %v3364_v56 = vadd.f32 %v3363_v27, %v2979_v16  ;;  %v3365_v3 = vpop.f32.mrb[155].mxu1  ;;  %v2983_v34 = vpop.f32.mrb[209].mxu0  ;;  %v2992_v26 = vadd.f32 %v4405_v18, %v6488_v11 }
 0x375   : > { %v4406_v29 = vpop.f32.mrb[210].mxu0  ;;  %v2984_v23 = vadd.f32 %v2983_v34, %v6488_v11 }
 0x376   : > { %v4208_v48 = vpack.c.bf16 %v3364_v56, %v3361_v47  ;;  %v2986_v57 = vpop.f32.mrb[211].mxu0  ;;  %v2995_v28 = vadd.f32 %v4406_v29, %v6488_v11 }
 0x377   : > { %v2987_v42 = vadd.f32 %v2986_v57, %v6488_v11 }
 0x378   : > { %4296 = vst [vmem:[%s6508_s24 + $0x88] sm:$0xff] %v4208_v48  }
 0x379   : > { %v3368_v61 = vpop.f32.mrb[156].mxu1 }
 0x37a   : > { %v3369_v58 = vadd.f32 %v3368_v61, %v2984_v23  ;;  %v3370_v62 = vpop.f32.mrb[157].mxu1 }
 0x37b   : > { %v3371_v38 = vpop.f32.mrb[158].mxu1 }
 0x37c   : > { %v3372_v4 = vadd.f32 %v3371_v38, %v2987_v42  ;;  %v3373_v7 = vpop.f32.mrb[159].mxu1 }
 0x37e   : > { %v4213_v33 = vpack.c.bf16 %v3372_v4, %v3369_v58 }
 0x380   : > { %4297 = vst [vmem:[%s6508_s24 + $0x90] sm:$0xff] %v4213_v33  }
 0x381   : > { %v3376_v22 = vpop.f32.mrb[160].mxu1 }
 0x382   : > { %v3377_v36 = vadd.f32 %v3376_v22, %v2992_v26  ;;  %v3378_v21 = vpop.f32.mrb[161].mxu1 }
 0x383   : > { %v3379_v39 = vpop.f32.mrb[162].mxu1  ;;  %v4409_v43 = vpop.f32.mrb[212].mxu0 }
 0x384   : > { %v3380_v37 = vadd.f32 %v3379_v39, %v2995_v28  ;;  %v3381_v10 = vpop.f32.mrb[163].mxu1  ;;  %v2999_v49 = vpop.f32.mrb[213].mxu0  ;;  %v3008_v52 = vadd.f32 %v4409_v43, %v6488_v11 }
 0x385   : > { %v4410_v45 = vpop.f32.mrb[214].mxu0  ;;  %v3000_v31 = vadd.f32 %v2999_v49, %v6488_v11 }
 0x386   : > { %v4218_v19 = vpack.c.bf16 %v3380_v37, %v3377_v36  ;;  %v3002_v25 = vpop.f32.mrb[215].mxu0  ;;  %v3011_v14 = vadd.f32 %v4410_v45, %v6488_v11 }
 0x387   : > { %v3003_v1 = vadd.f32 %v3002_v25, %v6488_v11 }
 0x388   : > { %4298 = vst [vmem:[%s6508_s24 + $0x98] sm:$0xff] %v4218_v19  }
 0x389   : > { %v3384_v12 = vpop.f32.mrb[164].mxu1 }
 0x38a   : > { %v3385_v53 = vadd.f32 %v3384_v12, %v3000_v31  ;;  %v3386_v41 = vpop.f32.mrb[165].mxu1 }
 0x38b   : > { %v3387_v5 = vpop.f32.mrb[166].mxu1 }
 0x38c   : > { %v3388_v54 = vadd.f32 %v3387_v5, %v3003_v1  ;;  %v3389_v24 = vpop.f32.mrb[167].mxu1 }
 0x38e   : > { %v4223_v0 = vpack.c.bf16 %v3388_v54, %v3385_v53 }
 0x390   : > { %4299 = vst [vmem:[%s6508_s24 + $0xa0] sm:$0xff] %v4223_v0  }
 0x391   : > { %v3392_v8 = vpop.f32.mrb[168].mxu1 }
 0x392   : > { %v3393_v17 = vadd.f32 %v3392_v8, %v3008_v52  ;;  %v3394_v60 = vpop.f32.mrb[169].mxu1 }
 0x393   : > { %v3395_v40 = vpop.f32.mrb[170].mxu1  ;;  %v4413_v15 = vpop.f32.mrb[216].mxu0 }
 0x394   : > { %v3396_v20 = vadd.f32 %v3395_v40, %v3011_v14  ;;  %v3397_v2 = vpop.f32.mrb[171].mxu1  ;;  %v3015_v55 = vpop.f32.mrb[217].mxu0  ;;  %v3024_v47 = vadd.f32 %v4413_v15, %v6488_v11 }
 0x395   : > { %v4414_v44 = vpop.f32.mrb[218].mxu0  ;;  %v3016_v51 = vadd.f32 %v3015_v55, %v6488_v11 }
 0x396   : > { %v4228_v50 = vpack.c.bf16 %v3396_v20, %v3393_v17  ;;  %v3018_v30 = vpop.f32.mrb[219].mxu0  ;;  %v3027_v27 = vadd.f32 %v4414_v44, %v6488_v11 }
 0x397   : > { %v3019_v6 = vadd.f32 %v3018_v30, %v6488_v11 }
 0x398   : > { %4300 = vst [vmem:[%s6508_s24 + $0xa8] sm:$0xff] %v4228_v50  }
 0x399   : > { %v3400_v63 = vpop.f32.mrb[172].mxu1 }
 0x39a   : > { %v3401_v35 = vadd.f32 %v3400_v63, %v3016_v51  ;;  %v3402_v32 = vpop.f32.mrb[173].mxu1 }
 0x39b   : > { %v3403_v59 = vpop.f32.mrb[174].mxu1 }
 0x39c   : > { %v3404_v9 = vadd.f32 %v3403_v59, %v3019_v6  ;;  %v3405_v46 = vpop.f32.mrb[175].mxu1 }
 0x39e   : > { %v4233_v16 = vpack.c.bf16 %v3404_v9, %v3401_v35 }
 0x3a0   : > { %4301 = vst [vmem:[%s6508_s24 + $0xb0] sm:$0xff] %v4233_v16  }
 0x3a1   : > { %v3408_v13 = vpop.f32.mrb[176].mxu1 }
 0x3a2   : > { %v3409_v18 = vadd.f32 %v3408_v13, %v3024_v47  ;;  %v3410_v56 = vpop.f32.mrb[177].mxu1 }
 0x3a3   : > { %v3411_v3 = vpop.f32.mrb[178].mxu1  ;;  %v4417_v34 = vpop.f32.mrb[220].mxu0 }
 0x3a4   : > { %v3412_v29 = vadd.f32 %v3411_v3, %v3027_v27  ;;  %v3413_v48 = vpop.f32.mrb[179].mxu1  ;;  %v3031_v57 = vpop.f32.mrb[221].mxu0  ;;  %v3040_v36 = vadd.f32 %v4417_v34, %v6488_v11 }
 0x3a5   : > { %v4418_v23 = vpop.f32.mrb[222].mxu0  ;;  %v3032_v58 = vadd.f32 %v3031_v57, %v6488_v11 }
 0x3a6   : > { %v4238_v61 = vpack.c.bf16 %v3412_v29, %v3409_v18  ;;  %v3034_v42 = vpop.f32.mrb[223].mxu0  ;;  %v3043_v39 = vadd.f32 %v4418_v23, %v6488_v11 }
 0x3a7   : > { %v3035_v38 = vadd.f32 %v3034_v42, %v6488_v11 }
 0x3a8   : > { %4302 = vst [vmem:[%s6508_s24 + $0xb8] sm:$0xff] %v4238_v61  }
 0x3a9   : > { %v3416_v62 = vpop.f32.mrb[180].mxu1 }
 0x3aa   : > { %v3417_v4 = vadd.f32 %v3416_v62, %v3032_v58  ;;  %v3418_v7 = vpop.f32.mrb[181].mxu1 }
 0x3ab   : > { %v3419_v33 = vpop.f32.mrb[182].mxu1 }
 0x3ac   : > { %v3420_v26 = vadd.f32 %v3419_v33, %v3035_v38  ;;  %v3421_v22 = vpop.f32.mrb[183].mxu1 }
 0x3ae   : > { %v4243_v28 = vpack.c.bf16 %v3420_v26, %v3417_v4 }
 0x3b0   : > { %4303 = vst [vmem:[%s6508_s24 + $0xc0] sm:$0xff] %v4243_v28  }
 0x3b1   : > { %v3424_v21 = vpop.f32.mrb[184].mxu1 }
 0x3b2   : > { %v3425_v43 = vadd.f32 %v3424_v21, %v3040_v36  ;;  %v3426_v37 = vpop.f32.mrb[185].mxu1 }
 0x3b3   : > { %v3427_v10 = vpop.f32.mrb[186].mxu1  ;;  %v4421_v49 = vpop.f32.mrb[224].mxu0 }
 0x3b4   : > { %v3428_v45 = vadd.f32 %v3427_v10, %v3043_v39  ;;  %v3429_v19 = vpop.f32.mrb[187].mxu1  ;;  %v3047_v25 = vpop.f32.mrb[225].mxu0  ;;  %v3056_v17 = vadd.f32 %v4421_v49, %v6488_v11 }
 0x3b5   : > { %v4422_v31 = vpop.f32.mrb[226].mxu0  ;;  %v3048_v53 = vadd.f32 %v3047_v25, %v6488_v11 }
 0x3b6   : > { %v4248_v12 = vpack.c.bf16 %v3428_v45, %v3425_v43  ;;  %v3050_v1 = vpop.f32.mrb[227].mxu0  ;;  %v3059_v40 = vadd.f32 %v4422_v31, %v6488_v11 }
 0x3b7   : > { %v3051_v5 = vadd.f32 %v3050_v1, %v6488_v11 }
 0x3b8   : > { %4304 = vst [vmem:[%s6508_s24 + $0xc8] sm:$0xff] %v4248_v12  }
 0x3b9   : > { %v3432_v41 = vpop.f32.mrb[188].mxu1 }
 0x3ba   : > { %v3433_v54 = vadd.f32 %v3432_v41, %v3048_v53  ;;  %v3434_v24 = vpop.f32.mrb[189].mxu1 }
 0x3bb   : > { %v3435_v0 = vpop.f32.mrb[190].mxu1 }
 0x3bc   : > { %v3436_v52 = vadd.f32 %v3435_v0, %v3051_v5  ;;  %v3437_v8 = vpop.f32.mrb[191].mxu1 }
 0x3be   : > { %v4253_v14 = vpack.c.bf16 %v3436_v52, %v3433_v54 }
 0x3c0   : > { %4305 = vst [vmem:[%s6508_s24 + $0xd0] sm:$0xff] %v4253_v14  }
 0x3c1   : > { %v3440_v60 = vpop.f32.mrb[192].mxu1 }
 0x3c2   : > { %v3441_v15 = vadd.f32 %v3440_v60, %v3056_v17  ;;  %v3442_v20 = vpop.f32.mrb[193].mxu1 }
 0x3c3   : > { %v3443_v2 = vpop.f32.mrb[194].mxu1  ;;  %v4425_v55 = vpop.f32.mrb[228].mxu0 }
 0x3c4   : > { %v3444_v44 = vadd.f32 %v3443_v2, %v3059_v40  ;;  %v3445_v50 = vpop.f32.mrb[195].mxu1  ;;  %v3063_v30 = vpop.f32.mrb[229].mxu0  ;;  %v3072_v18 = vadd.f32 %v4425_v55, %v6488_v11 }
 0x3c5   : > { %v4426_v51 = vpop.f32.mrb[230].mxu0  ;;  %v3064_v35 = vadd.f32 %v3063_v30, %v6488_v11 }
 0x3c6   : > { %v4258_v63 = vpack.c.bf16 %v3444_v44, %v3441_v15  ;;  %v3066_v6 = vpop.f32.mrb[231].mxu0  ;;  %v3075_v3 = vadd.f32 %v4426_v51, %v6488_v11 }
 0x3c7   : > { %v3067_v59 = vadd.f32 %v3066_v6, %v6488_v11 }
 0x3c8   : > { %4306 = vst [vmem:[%s6508_s24 + $0xd8] sm:$0xff] %v4258_v63  }
 0x3c9   : > { %v3448_v32 = vpop.f32.mrb[196].mxu1 }
 0x3ca   : > { %v3449_v9 = vadd.f32 %v3448_v32, %v3064_v35  ;;  %v3450_v46 = vpop.f32.mrb[197].mxu1 }
 0x3cb   : > { %v3451_v16 = vpop.f32.mrb[198].mxu1 }
 0x3cc   : > { %v3452_v47 = vadd.f32 %v3451_v16, %v3067_v59  ;;  %v3453_v13 = vpop.f32.mrb[199].mxu1 }
 0x3ce   : > { %v4263_v27 = vpack.c.bf16 %v3452_v47, %v3449_v9 }
 0x3d0   : > { %4307 = vst [vmem:[%s6508_s24 + $0xe0] sm:$0xff] %v4263_v27  }
 0x3d1   : > { %v3456_v56 = vpop.f32.mrb[200].mxu1 }
 0x3d2   : > { %v3457_v34 = vadd.f32 %v3456_v56, %v3072_v18  ;;  %v3458_v29 = vpop.f32.mrb[201].mxu1 }
 0x3d3   : > { %v3459_v48 = vpop.f32.mrb[202].mxu1 }
 0x3d4   : > { %v3460_v57 = vadd.f32 %v3459_v48, %v3075_v3  ;;  %v4429_v23 = vpop.f32.mrb[232].mxu0  ;;  %v3461_v61 = vpop.f32.mrb[203].mxu1 }
 0x3d5   : > { %v3079_v42 = vpop.f32.mrb[233].mxu0  ;;  %v3088_v43 = vadd.f32 %v4429_v23, %v6488_v11 }
 0x3d6   : > { %v4268_v58 = vpack.c.bf16 %v3460_v57, %v3457_v34  ;;  %v4430_v62 = vpop.f32.mrb[234].mxu0  ;;  %v3080_v4 = vadd.f32 %v3079_v42, %v6488_v11 }
 0x3d7   : > { %v3082_v38 = vpop.f32.mrb[235].mxu0  ;;  %v3091_v10 = vadd.f32 %v4430_v62, %v6488_v11 }
 0x3d8   : > { %4308 = vst [vmem:[%s6508_s24 + $0xe8] sm:$0xff] %v4268_v58   ;;  %v3083_v33 = vadd.f32 %v3082_v38, %v6488_v11 }
 0x3d9   : > { %v3464_v7 = vpop.f32.mrb[204].mxu1 }
 0x3da   : > { %v3465_v26 = vadd.f32 %v3464_v7, %v3080_v4  ;;  %v3466_v22 = vpop.f32.mrb[205].mxu1 }
 0x3db   : > { %v3467_v28 = vpop.f32.mrb[206].mxu1 }
 0x3dc   : > { %v3468_v36 = vadd.f32 %v3467_v28, %v3083_v33  ;;  %v3469_v21 = vpop.f32.mrb[207].mxu1 }
 0x3de   : > { %v4273_v39 = vpack.c.bf16 %v3468_v36, %v3465_v26 }
 0x3e0   : > { %4309 = vst [vmem:[%s6508_s24 + $0xf0] sm:$0xff] %v4273_v39  }
 0x3e1   : > { %v3472_v37 = vpop.f32.mrb[208].mxu1 }
 0x3e2   : > { %v3473_v49 = vadd.f32 %v3472_v37, %v3088_v43  ;;  %v3474_v45 = vpop.f32.mrb[209].mxu1 }
 0x3e3   : > { %v3475_v19 = vpop.f32.mrb[210].mxu1 }
 0x3e4   : > { %v3476_v25 = vadd.f32 %v3475_v19, %v3091_v10  ;;  %v3477_v31 = vpop.f32.mrb[211].mxu1 }
 0x3e6   : > { %v4278_v12 = vpack.c.bf16 %v3476_v25, %v3473_v49 }
 0x3e8   : > { %4310 = vst [vmem:[%s6508_s24 + $0xf8] sm:$0xff] %v4278_v12  }
 0x3e9   : > { %4815 = shalt.err (!%p4812_p3)
}
 0x3ea   : > { %s4816_s22 = scalar_lea.hbm %s6615_s17, 4096  ;;  %s4820_s24 = scalar_lea.hbm %s6671_s8, 8192 }
 0x3eb   : > { %p4817_p4 = scmp.ne.s32.totalorder %s6615_s17, %s4816_s22  ;;  %p4821_p9 = scmp.lt.u32.totalorder %s6615_s17, %s6671_s8 }
 0x3ec   : > { %p4822_p10 = scmp.lt.u32.totalorder %s4820_s24, %s4816_s22  ;;  %p4824_p12 = scmp.lt.u32.totalorder %s4816_s22, %s6615_s17 }
 0x3ed   : > { %p4818_p7 = pnand %p4817_p4, %p4954_p5 }
 0x3ee   : > { %p4823_p11 = por %p4822_p10, %p4821_p9 }
 0x3ef   : > { %p4819_p8 = pneg %p4818_p7 }
 0x3f0   : > { %p4825_p13 = por %p4824_p12, %p4823_p11 }
 0x3f2   : > { %p4826_p0 = pnand %p4825_p13, %p4819_p8 }
 0x3f4   : > { %4829 = shalt.err (!%p4826_p0)
}
 0x3f5   : > { %s4869_s12 = smov 64   ;;  %s4870_s9 = smov 4  }
 0x3f6   : > { %4463 = dma.vmem_to_hbm [thread:$0]  (%p4954_p5), %s6617_s26, 4096, %s6615_s17, %s6622_s18, %s4869_s12, %s4869_s12, %s4870_s9  }
 0x3f7 PF: > { %p4469_p1 = scmp.ge.s32.totalorder %s4864_s30, 2  ;;  %s3828_s19 = sand.u32 1, %s4852_s27  }
 0x3f8   : > { %s3829_s20 = scalar_lea.sflag [#allocation3], %s3828_s19 }
 0x3f9   : > { %p4466_p2 = pnand %p4469_p1, %p4958_p6 }
 0x3fb   : > { %4847 = dma.done.wait (!%p4466_p2), %s3829_s20, 4096  }
 0x3fc   : > { %4849 = vsyncadd (!%p4466_p2), %s3829_s20, 4294963200  ;;  %p18_p3 = scmp.ge.s32.totalorder %s4941_s11, 4   ;;  %s6773_s27 = smov %s4856_s28 }
 0x3fd   : > { %s6774_s28 = smov %s4860_s29  ;;  %s6775_s29 = smov %s4952_s14 }
 0x3fe   : > { %s6776_s30 = smov %s4941_s11  ;;  %20 = sbr.rel (!%p18_p3) target bundleno = 3 (0x3), region = 87 }
 0x405   :  { %3834 = vsyncpa [#allocation3], 1 }
 0x406   :  { %3836 = vsyncpa [#allocation3 + $0x1], 1 }

</bundles_post_ra>
